<compile_context>
chip_gen: v6e
topology: v6e:2x2x1
jax: 0.10.0
libtpu: 0.0.40
codegen_flags: <defaults>
</compile_context>

<pallas_src>
import functools

import jax
import jax.numpy as jnp
from jax import lax
from jax.experimental import pallas as pl
from jax.experimental.pallas import tpu as pltpu

EPS = 1e-5
KSIZE = 11
PAD = (KSIZE - 1) // 2


def _init_block_kernel(x_ref, wp_ref, g1_ref, b1_ref, wbd_ref, g2_ref, b2_ref,
                       rc_ref, out_ref, *, H, W):
    # x_ref   : (1, C, HW)        input sample, spatial flattened (lane-dense)
    # wp_ref  : (F, C)            1x1 conv weight (pointwise)
    # g1/b1   : (F, 1)            InstanceNorm affine after pointwise conv
    # wbd_ref : (K*K, F, HW)      depthwise weights pre-broadcast across lanes
    # g2/b2   : (F, 1)            InstanceNorm affine after depthwise conv
    # rc_ref  : (2, HW) int32     precomputed row / col index of each pixel
    # out_ref : (1, F + C, HW)    concat([Initsq(x), LN(x)], channel)
    x = x_ref[0].astype(jnp.float32)                      # (C, HW)
    C, HW = x.shape
    F_ = wp_ref.shape[0]
    inv_hw = 1.0 / HW

    # ---- n1: LayerNorm over (C, HW), no affine (two-pass stats) ----
    n1 = C * HW
    mu0 = jnp.sum(x) / n1
    xc = x - mu0
    var0 = jnp.sum(xc * xc) / n1
    xt = xc * lax.rsqrt(var0 + EPS)                       # (C, HW), skip branch

    # Store the skip branch.  (Pallas writes the whole output block back after
    # the grid step; this early store only ends xt's logical live range, it
    # does not overlap HBM writeback with the remaining compute.)
    out_ref[0, F_:, :] = xt.astype(out_ref.dtype)

    # ---- pCnv: 1x1 conv.  Tiny K (=C) -> exact-f32 VPU broadcast-FMAs. ----
    wp = wp_ref[...].astype(jnp.float32)                  # (F, C)
    if C <= 8:
        y = wp[:, 0:1] * xt[0:1, :]                       # (F, HW)
        for c in range(1, C):
            y = y + wp[:, c:c + 1] * xt[c:c + 1, :]
    else:
        y = jnp.dot(wp, xt, preferred_element_type=jnp.float32)

    # ---- InstanceNorm2d(affine): per-channel over HW (two-pass) ----
    mu1 = jnp.sum(y, axis=1, keepdims=True) * inv_hw
    yc = y - mu1
    var1 = jnp.sum(yc * yc, axis=1, keepdims=True) * inv_hw
    y = yc * lax.rsqrt(var1 + EPS)
    y = y * g1_ref[...] + b1_ref[...]

    # ---- Softmax over the channel dim (axis 0), exact denominator ----
    y = y - jnp.max(y, axis=0, keepdims=True)
    ey = jnp.exp(y)
    y = ey / jnp.sum(ey, axis=0, keepdims=True)

    # ---- dsCnv: depthwise 11x11 conv, SAME padding, no bias ----
    # out[f,i,j] = sum_{oy,ox} wd[f,oy+5,ox+5] * y[f,i+oy,j+ox]   (zero pad)
    # Done on the flattened (F, HW) slab with pltpu.roll + edge masks:
    #   1) build the 11 column-shifted (masked) copies once (shared by all oy)
    #   2) per oy: weighted sum over ox, then one row-shift (roll by oy*W).
    # Weights arrive pre-broadcast across the lane dim, so each tap is a plain
    # vld instead of a lane splat on the saturated VALU/XLU path.
    row = rc_ref[0:1, :]                                  # (1, HW) int32
    col = rc_ref[1:2, :]                                  # (1, HW) int32

    col_shifts = []
    for ox in range(-PAD, PAD + 1):
        if ox == 0:
            col_shifts.append(y)
        else:
            shifted = pltpu.roll(y, shift=(-ox) % HW, axis=1)
            cmask = jnp.logical_and(col + ox >= 0, col + ox < W)
            col_shifts.append(jnp.where(cmask, shifted, 0.0))
    # (11 live (F,HW) f32 slabs = 22 vregs at HW=256 — spill-free; restream
    #  per oy for HW >= ~512, see TODO at top.)

    # Two independent accumulators over oy, two partial sums over ox: breaks
    # the serial add chains so the scheduler can fill the VALU slots.
    acc0 = jnp.zeros((F_, HW), jnp.float32)
    acc1 = jnp.zeros((F_, HW), jnp.float32)
    for oy in range(-PAD, PAD + 1):
        t0 = (oy + PAD) * KSIZE
        tmp0 = wbd_ref[t0 + 0] * col_shifts[0]
        tmp1 = wbd_ref[t0 + 1] * col_shifts[1]
        for k in range(2, KSIZE):
            term = wbd_ref[t0 + k] * col_shifts[k]
            if k % 2 == 0:
                tmp0 = tmp0 + term
            else:
                tmp1 = tmp1 + term
        tmp = tmp0 + tmp1
        if oy != 0:
            tmp = pltpu.roll(tmp, shift=(-oy * W) % HW, axis=1)
            rmask = jnp.logical_and(row + oy >= 0, row + oy < H)
            tmp = jnp.where(rmask, tmp, 0.0)
        if (oy + PAD) % 2 == 0:
            acc0 = acc0 + tmp
        else:
            acc1 = acc1 + tmp
    acc = acc0 + acc1

    # ---- InstanceNorm2d(affine): per-channel over HW (two-pass) ----
    mu2 = jnp.sum(acc, axis=1, keepdims=True) * inv_hw
    zc = acc - mu2
    var2 = jnp.sum(zc * zc, axis=1, keepdims=True) * inv_hw
    z = zc * lax.rsqrt(var2 + EPS)
    z = z * g2_ref[...] + b2_ref[...]

    # ---- final LN over (F, HW), no affine (two-pass) ----
    n3 = F_ * HW
    mu3 = jnp.sum(z) / n3
    zc3 = z - mu3
    var3 = jnp.sum(zc3 * zc3) / n3
    z = zc3 * lax.rsqrt(var3 + EPS)

    out_ref[0, 0:F_, :] = z.astype(out_ref.dtype)


def init_block_forward(x, wp, g1, b1, wd, g2, b2):
    N, C, H, W = x.shape
    F_ = wp.shape[0]
    HW = H * W
    assert HW % 128 == 0, "flattened spatial dim must be a multiple of 128"

    # Lane-dense layout: flatten spatial to HW for the whole kernel; reshape
    # back to NCHW outside the pallas_call (layout plumbing only).
    x2 = x.reshape(N, C, HW)
    g1 = g1.reshape(F_, 1).astype(jnp.float32)
    b1 = b1.reshape(F_, 1).astype(jnp.float32)
    g2 = g2.reshape(F_, 1).astype(jnp.float32)
    b2 = b2.reshape(F_, 1).astype(jnp.float32)

    # Depthwise weights pre-broadcast across the lane dim: (K*K, F, HW),
    # ~1 MiB at HW=256; constant index_map -> DMA'd once, read per tap.
    wbd = jnp.broadcast_to(
        wd.reshape(F_, KSIZE * KSIZE).T.reshape(KSIZE * KSIZE, F_, 1),
        (KSIZE * KSIZE, F_, HW)).astype(jnp.float32)

    # Precomputed pixel row/col indices (keeps integer div/mod off the VPU).
    pos = jnp.arange(HW, dtype=jnp.int32)
    rc = jnp.stack([pos // W, pos % W], axis=0)           # (2, HW) int32

    kernel = functools.partial(_init_block_kernel, H=H, W=W)

    out = pl.pallas_call(
        kernel,
        out_shape=jax.ShapeDtypeStruct((N, F_ + C, HW), x.dtype),
        grid=(N,),
        in_specs=[
            pl.BlockSpec((1, C, HW), lambda b: (b, 0, 0)),
            pl.BlockSpec((F_, C), lambda b: (0, 0)),
            pl.BlockSpec((F_, 1), lambda b: (0, 0)),
            pl.BlockSpec((F_, 1), lambda b: (0, 0)),
            pl.BlockSpec((KSIZE * KSIZE, F_, HW), lambda b: (0, 0, 0)),
            pl.BlockSpec((F_, 1), lambda b: (0, 0)),
            pl.BlockSpec((F_, 1), lambda b: (0, 0)),
            pl.BlockSpec((2, HW), lambda b: (0, 0)),
        ],
        out_specs=pl.BlockSpec((1, F_ + C, HW), lambda b: (b, 0, 0)),
        compiler_params=pltpu.CompilerParams(
            dimension_semantics=("parallel",),
            vmem_limit_bytes=32 * 1024 * 1024),
    )(x2, wp, g1, b1, wbd, g2, b2, rc)

    return out.reshape(N, F_ + C, H, W)


def init_block_reference(x, wp, g1, b1, wd, g2, b2):
    """Pure-JAX reference of the PyTorch forward (exact-f32 for validation)."""
    def ln(v, axes):
        mu = jnp.mean(v, axis=axes, keepdims=True)
        var = jnp.mean((v - mu) ** 2, axis=axes, keepdims=True)
        return (v - mu) * lax.rsqrt(var + EPS)

    F_ = wp.shape[0]
    x1 = ln(x, (1, 2, 3))
    y = jnp.einsum("fc,nchw->nfhw", wp, x1, precision=lax.Precision.HIGHEST)
    y = ln(y, (2, 3)) * g1.reshape(1, -1, 1, 1) + b1.reshape(1, -1, 1, 1)
    y = jax.nn.softmax(y, axis=1)
    y = lax.conv_general_dilated(
        y, wd.reshape(F_, 1, KSIZE, KSIZE), (1, 1), "SAME",
        feature_group_count=F_,
        dimension_numbers=("NCHW", "OIHW", "NCHW"),
        precision=lax.Precision.HIGHEST)
    y = ln(y, (2, 3)) * g2.reshape(1, -1, 1, 1) + b2.reshape(1, -1, 1, 1)
    y = ln(y, (1, 2, 3))
    return jnp.concatenate([y, x1], axis=1)


if __name__ == "__main__":
    # Small shapes: batch=2, n_channels=4, fup=8, spatial=16x16  (HW = 256)
    N, C, H, W = 2, 4, 16, 16
    FUP = 8

    key = jax.random.PRNGKey(0)
    kx, kwp, kg1, kb1, kwd, kg2, kb2 = jax.random.split(key, 7)

    x = jax.random.normal(kx, (N, C, H, W), jnp.float32)
    wp = 0.3 * jax.random.normal(kwp, (FUP, C), jnp.float32)              # Conv2d(C->FUP,1)
    g1 = 1.0 + 0.1 * jax.random.normal(kg1, (FUP,), jnp.float32)          # InstanceNorm gamma
    b1 = 0.1 * jax.random.normal(kb1, (FUP,), jnp.float32)                # InstanceNorm beta
    wd = 0.1 * jax.random.normal(kwd, (FUP, KSIZE, KSIZE), jnp.float32)   # depthwise 11x11
    g2 = 1.0 + 0.1 * jax.random.normal(kg2, (FUP,), jnp.float32)
    b2 = 0.1 * jax.random.normal(kb2, (FUP,), jnp.float32)

    out = jax.block_until_ready(init_block_forward(x, wp, g1, b1, wd, g2, b2))
    ref = jax.block_until_ready(init_block_reference(x, wp, g1, b1, wd, g2, b2))

    assert out.shape == (N, FUP + C, H, W), out.shape
    err = float(jnp.max(jnp.abs(out - ref)))
    assert jnp.allclose(out, ref, atol=2e-3, rtol=2e-3), err

    print("KERNEL_OK")
</pallas_src>

<mosaic_0001>
module attributes {stable_mosaic.version = 11 : i64} {
  func.func @_init_block_kernel(%arg0: i32, %arg1: memref<1x4x256xf32, #tpu.memory_space<vmem>>, %arg2: memref<8x4xf32, #tpu.memory_space<vmem>>, %arg3: memref<8x1xf32, #tpu.memory_space<vmem>>, %arg4: memref<8x1xf32, #tpu.memory_space<vmem>>, %arg5: memref<121x8x256xf32, #tpu.memory_space<vmem>>, %arg6: memref<8x1xf32, #tpu.memory_space<vmem>>, %arg7: memref<8x1xf32, #tpu.memory_space<vmem>>, %arg8: memref<2x256xi32, #tpu.memory_space<vmem>>, %arg9: memref<1x12x256xf32, #tpu.memory_space<vmem>>) attributes {dimension_semantics = [#tpu.dimension_semantics<parallel>], iteration_bounds = array<i64: 2>, scalar_prefetch = 0 : i64, scratch_operands = 0 : i64, tpu.core_type = #tpu.core_type<tc>, window_params = [{transform_indices = @transform_0, window_bounds = array<i64: 1, 4, 256>}, {pipeline_mode = #tpu.pipeline_mode<synchronous>, transform_indices = @transform_1, window_bounds = array<i64: 8, 4>}, {pipeline_mode = #tpu.pipeline_mode<synchronous>, transform_indices = @transform_2, window_bounds = array<i64: 8, 1>}, {pipeline_mode = #tpu.pipeline_mode<synchronous>, transform_indices = @transform_3, window_bounds = array<i64: 8, 1>}, {pipeline_mode = #tpu.pipeline_mode<synchronous>, transform_indices = @transform_4, window_bounds = array<i64: 121, 8, 256>}, {pipeline_mode = #tpu.pipeline_mode<synchronous>, transform_indices = @transform_5, window_bounds = array<i64: 8, 1>}, {pipeline_mode = #tpu.pipeline_mode<synchronous>, transform_indices = @transform_6, window_bounds = array<i64: 8, 1>}, {pipeline_mode = #tpu.pipeline_mode<synchronous>, transform_indices = @transform_7, window_bounds = array<i64: 2, 256>}, {transform_indices = @transform_8, window_bounds = array<i64: 1, 12, 256>}]} {
    %c0 = arith.constant 0 : index
    %c0_0 = arith.constant 0 : index
    %c0_1 = arith.constant 0 : index
    %0 = vector.load %arg1[%c0, %c0_0, %c0_1] : memref<1x4x256xf32, #tpu.memory_space<vmem>>, vector<1x4x256xf32>
    %1 = vector.shape_cast %0 : vector<1x4x256xf32> to vector<4x256xf32>
    %2 = vector.shape_cast %1 : vector<4x256xf32> to vector<1x4x256xf32>
    %cst = arith.constant dense<0.000000e+00> : vector<1xf32>
    %3 = vector.multi_reduction <add>, %2, %cst [1, 2] : vector<1x4x256xf32> to vector<1xf32>
    %4 = vector.shape_cast %3 : vector<1xf32> to vector<1x1x1xf32>
    %5 = vector.extract %4[0, 0, 0] : f32 from vector<1x1x1xf32>
    %cst_2 = arith.constant 1.024000e+03 : f32
    %6 = arith.divf %5, %cst_2 : f32
    %7 = vector.broadcast %6 : f32 to vector<4x256xf32>
    %8 = arith.subf %1, %7 : vector<4x256xf32>
    %9 = arith.mulf %8, %8 : vector<4x256xf32>
    %10 = vector.shape_cast %9 : vector<4x256xf32> to vector<1x4x256xf32>
    %cst_3 = arith.constant dense<0.000000e+00> : vector<1xf32>
    %11 = vector.multi_reduction <add>, %10, %cst_3 [1, 2] : vector<1x4x256xf32> to vector<1xf32>
    %12 = vector.shape_cast %11 : vector<1xf32> to vector<1x1x1xf32>
    %13 = vector.extract %12[0, 0, 0] : f32 from vector<1x1x1xf32>
    %cst_4 = arith.constant 1.024000e+03 : f32
    %14 = arith.divf %13, %cst_4 : f32
    %cst_5 = arith.constant 9.99999974E-6 : f32
    %15 = arith.addf %14, %cst_5 : f32
    %16 = math.rsqrt %15 : f32
    %17 = vector.broadcast %16 : f32 to vector<4x256xf32>
    %18 = arith.mulf %8, %17 : vector<4x256xf32>
    %c0_6 = arith.constant 0 : index
    %c8 = arith.constant 8 : index
    %c0_7 = arith.constant 0 : index
    %19 = vector.load %arg9[%c0_6, %c8, %c0_7] : memref<1x12x256xf32, #tpu.memory_space<vmem>>, vector<1x4x256xf32>
    %20 = vector.shape_cast %19 : vector<1x4x256xf32> to vector<4x256xf32>
    %21 = vector.shape_cast %18 : vector<4x256xf32> to vector<1x4x256xf32>
    tpu.vector_store %arg9[%c0_6, %c8, %c0_7], %21 {strides = array<i32>} : memref<1x12x256xf32, #tpu.memory_space<vmem>>, vector<1x4x256xf32>,
    %c0_8 = arith.constant 0 : index
    %c0_9 = arith.constant 0 : index
    %22 = vector.load %arg2[%c0_8, %c0_9] : memref<8x4xf32, #tpu.memory_space<vmem>>, vector<8x4xf32>
    %23 = vector.extract_strided_slice %22 {offsets = [0, 0], sizes = [8, 1], strides = [1, 1]} : vector<8x4xf32> to vector<8x1xf32>
    %24 = vector.extract_strided_slice %18 {offsets = [0, 0], sizes = [1, 256], strides = [1, 1]} : vector<4x256xf32> to vector<1x256xf32>
    %25 = vector.broadcast %23 : vector<8x1xf32> to vector<8x256xf32>
    %26 = vector.broadcast %24 : vector<1x256xf32> to vector<8x256xf32>
    %27 = arith.mulf %25, %26 : vector<8x256xf32>
    %28 = vector.extract_strided_slice %22 {offsets = [0, 1], sizes = [8, 1], strides = [1, 1]} : vector<8x4xf32> to vector<8x1xf32>
    %29 = vector.extract_strided_slice %18 {offsets = [1, 0], sizes = [1, 256], strides = [1, 1]} : vector<4x256xf32> to vector<1x256xf32>
    %30 = vector.broadcast %28 : vector<8x1xf32> to vector<8x256xf32>
    %31 = vector.broadcast %29 : vector<1x256xf32> to vector<8x256xf32>
    %32 = arith.mulf %30, %31 : vector<8x256xf32>
    %33 = arith.addf %27, %32 : vector<8x256xf32>
    %34 = vector.extract_strided_slice %22 {offsets = [0, 2], sizes = [8, 1], strides = [1, 1]} : vector<8x4xf32> to vector<8x1xf32>
    %35 = vector.extract_strided_slice %18 {offsets = [2, 0], sizes = [1, 256], strides = [1, 1]} : vector<4x256xf32> to vector<1x256xf32>
    %36 = vector.broadcast %34 : vector<8x1xf32> to vector<8x256xf32>
    %37 = vector.broadcast %35 : vector<1x256xf32> to vector<8x256xf32>
    %38 = arith.mulf %36, %37 : vector<8x256xf32>
    %39 = arith.addf %33, %38 : vector<8x256xf32>
    %40 = vector.extract_strided_slice %22 {offsets = [0, 3], sizes = [8, 1], strides = [1, 1]} : vector<8x4xf32> to vector<8x1xf32>
    %41 = vector.extract_strided_slice %18 {offsets = [3, 0], sizes = [1, 256], strides = [1, 1]} : vector<4x256xf32> to vector<1x256xf32>
    %42 = vector.broadcast %40 : vector<8x1xf32> to vector<8x256xf32>
    %43 = vector.broadcast %41 : vector<1x256xf32> to vector<8x256xf32>
    %44 = arith.mulf %42, %43 : vector<8x256xf32>
    %45 = arith.addf %39, %44 : vector<8x256xf32>
    %cst_10 = arith.constant dense<0.000000e+00> : vector<8xf32>
    %46 = vector.multi_reduction <add>, %45, %cst_10 [1] : vector<8x256xf32> to vector<8xf32>
    %47 = vector.shape_cast %46 : vector<8xf32> to vector<8x1xf32>
    %cst_11 = arith.constant 3.906250e-03 : f32
    %48 = vector.broadcast %cst_11 : f32 to vector<8x1xf32>
    %49 = arith.mulf %47, %48 : vector<8x1xf32>
    %50 = vector.broadcast %49 : vector<8x1xf32> to vector<8x256xf32>
    %51 = arith.subf %45, %50 : vector<8x256xf32>
    %52 = arith.mulf %51, %51 : vector<8x256xf32>
    %cst_12 = arith.constant dense<0.000000e+00> : vector<8xf32>
    %53 = vector.multi_reduction <add>, %52, %cst_12 [1] : vector<8x256xf32> to vector<8xf32>
    %54 = vector.shape_cast %53 : vector<8xf32> to vector<8x1xf32>
    %cst_13 = arith.constant 3.906250e-03 : f32
    %55 = vector.broadcast %cst_13 : f32 to vector<8x1xf32>
    %56 = arith.mulf %54, %55 : vector<8x1xf32>
    %cst_14 = arith.constant 9.99999974E-6 : f32
    %57 = vector.broadcast %cst_14 : f32 to vector<8x1xf32>
    %58 = arith.addf %56, %57 : vector<8x1xf32>
    %59 = math.rsqrt %58 : vector<8x1xf32>
    %60 = vector.broadcast %59 : vector<8x1xf32> to vector<8x256xf32>
    %61 = arith.mulf %51, %60 : vector<8x256xf32>
    %c0_15 = arith.constant 0 : index
    %c0_16 = arith.constant 0 : index
    %62 = vector.load %arg3[%c0_15, %c0_16] : memref<8x1xf32, #tpu.memory_space<vmem>>, vector<8x1xf32>
    %63 = vector.broadcast %62 : vector<8x1xf32> to vector<8x256xf32>
    %64 = arith.mulf %61, %63 : vector<8x256xf32>
    %c0_17 = arith.constant 0 : index
    %c0_18 = arith.constant 0 : index
    %65 = vector.load %arg4[%c0_17, %c0_18] : memref<8x1xf32, #tpu.memory_space<vmem>>, vector<8x1xf32>
    %66 = vector.broadcast %65 : vector<8x1xf32> to vector<8x256xf32>
    %67 = arith.addf %64, %66 : vector<8x256xf32>
    %cst_19 = arith.constant dense<0xFF800000> : vector<256xf32>
    %68 = vector.multi_reduction <maximumf>, %67, %cst_19 [0] : vector<8x256xf32> to vector<256xf32>
    %69 = vector.shape_cast %68 : vector<256xf32> to vector<1x256xf32>
    %70 = vector.broadcast %69 : vector<1x256xf32> to vector<8x256xf32>
    %71 = arith.subf %67, %70 : vector<8x256xf32>
    %72 = math.exp %71 : vector<8x256xf32>
    %cst_20 = arith.constant dense<0.000000e+00> : vector<256xf32>
    %73 = vector.multi_reduction <add>, %72, %cst_20 [0] : vector<8x256xf32> to vector<256xf32>
    %74 = vector.shape_cast %73 : vector<256xf32> to vector<1x256xf32>
    %75 = vector.broadcast %74 : vector<1x256xf32> to vector<8x256xf32>
    %76 = arith.divf %72, %75 : vector<8x256xf32>
    %c0_21 = arith.constant 0 : index
    %c0_22 = arith.constant 0 : index
    %77 = vector.load %arg8[%c0_21, %c0_22] : memref<2x256xi32, #tpu.memory_space<vmem>>, vector<1x256xi32>
    %c1 = arith.constant 1 : index
    %c0_23 = arith.constant 0 : index
    %78 = vector.load %arg8[%c1, %c0_23] : memref<2x256xi32, #tpu.memory_space<vmem>>, vector<1x256xi32>
    %c5_i32 = arith.constant 5 : i32
    %79 = tpu.dynamic_rotate %76 by %c5_i32 dim 1 : vector<8x256xf32>, i32 -> vector<8x256xf32>
    %c-5_i32 = arith.constant -5 : i32
    %80 = vector.broadcast %c-5_i32 : i32 to vector<1x256xi32>
    %81 = arith.addi %78, %80 : vector<1x256xi32>
    %c0_i32 = arith.constant 0 : i32
    %82 = vector.broadcast %c0_i32 : i32 to vector<1x256xi32>
    %83 = arith.cmpi sge, %81, %82 : vector<1x256xi32>
    %c-5_i32_24 = arith.constant -5 : i32
    %84 = vector.broadcast %c-5_i32_24 : i32 to vector<1x256xi32>
    %85 = arith.addi %78, %84 : vector<1x256xi32>
    %c16_i32 = arith.constant 16 : i32
    %86 = vector.broadcast %c16_i32 : i32 to vector<1x256xi32>
    %87 = arith.cmpi slt, %85, %86 : vector<1x256xi32>
    %88 = arith.andi %83, %87 : vector<1x256xi1>
    %cst_25 = arith.constant 0.000000e+00 : f32
    %89 = vector.shape_cast %88 : vector<1x256xi1> to vector<1x256xi1>
    %90 = vector.broadcast %89 : vector<1x256xi1> to vector<8x256xi1>
    %91 = vector.broadcast %cst_25 : f32 to vector<8x256xf32>
    %92 = arith.select %90, %79, %91 : vector<8x256xi1>, vector<8x256xf32>
    %c4_i32 = arith.constant 4 : i32
    %93 = tpu.dynamic_rotate %76 by %c4_i32 dim 1 : vector<8x256xf32>, i32 -> vector<8x256xf32>
    %c-4_i32 = arith.constant -4 : i32
    %94 = vector.broadcast %c-4_i32 : i32 to vector<1x256xi32>
    %95 = arith.addi %78, %94 : vector<1x256xi32>
    %c0_i32_26 = arith.constant 0 : i32
    %96 = vector.broadcast %c0_i32_26 : i32 to vector<1x256xi32>
    %97 = arith.cmpi sge, %95, %96 : vector<1x256xi32>
    %c-4_i32_27 = arith.constant -4 : i32
    %98 = vector.broadcast %c-4_i32_27 : i32 to vector<1x256xi32>
    %99 = arith.addi %78, %98 : vector<1x256xi32>
    %c16_i32_28 = arith.constant 16 : i32
    %100 = vector.broadcast %c16_i32_28 : i32 to vector<1x256xi32>
    %101 = arith.cmpi slt, %99, %100 : vector<1x256xi32>
    %102 = arith.andi %97, %101 : vector<1x256xi1>
    %cst_29 = arith.constant 0.000000e+00 : f32
    %103 = vector.shape_cast %102 : vector<1x256xi1> to vector<1x256xi1>
    %104 = vector.broadcast %103 : vector<1x256xi1> to vector<8x256xi1>
    %105 = vector.broadcast %cst_29 : f32 to vector<8x256xf32>
    %106 = arith.select %104, %93, %105 : vector<8x256xi1>, vector<8x256xf32>
    %c3_i32 = arith.constant 3 : i32
    %107 = tpu.dynamic_rotate %76 by %c3_i32 dim 1 : vector<8x256xf32>, i32 -> vector<8x256xf32>
    %c-3_i32 = arith.constant -3 : i32
    %108 = vector.broadcast %c-3_i32 : i32 to vector<1x256xi32>
    %109 = arith.addi %78, %108 : vector<1x256xi32>
    %c0_i32_30 = arith.constant 0 : i32
    %110 = vector.broadcast %c0_i32_30 : i32 to vector<1x256xi32>
    %111 = arith.cmpi sge, %109, %110 : vector<1x256xi32>
    %c-3_i32_31 = arith.constant -3 : i32
    %112 = vector.broadcast %c-3_i32_31 : i32 to vector<1x256xi32>
    %113 = arith.addi %78, %112 : vector<1x256xi32>
    %c16_i32_32 = arith.constant 16 : i32
    %114 = vector.broadcast %c16_i32_32 : i32 to vector<1x256xi32>
    %115 = arith.cmpi slt, %113, %114 : vector<1x256xi32>
    %116 = arith.andi %111, %115 : vector<1x256xi1>
    %cst_33 = arith.constant 0.000000e+00 : f32
    %117 = vector.shape_cast %116 : vector<1x256xi1> to vector<1x256xi1>
    %118 = vector.broadcast %117 : vector<1x256xi1> to vector<8x256xi1>
    %119 = vector.broadcast %cst_33 : f32 to vector<8x256xf32>
    %120 = arith.select %118, %107, %119 : vector<8x256xi1>, vector<8x256xf32>
    %c2_i32 = arith.constant 2 : i32
    %121 = tpu.dynamic_rotate %76 by %c2_i32 dim 1 : vector<8x256xf32>, i32 -> vector<8x256xf32>
    %c-2_i32 = arith.constant -2 : i32
    %122 = vector.broadcast %c-2_i32 : i32 to vector<1x256xi32>
    %123 = arith.addi %78, %122 : vector<1x256xi32>
    %c0_i32_34 = arith.constant 0 : i32
    %124 = vector.broadcast %c0_i32_34 : i32 to vector<1x256xi32>
    %125 = arith.cmpi sge, %123, %124 : vector<1x256xi32>
    %c-2_i32_35 = arith.constant -2 : i32
    %126 = vector.broadcast %c-2_i32_35 : i32 to vector<1x256xi32>
    %127 = arith.addi %78, %126 : vector<1x256xi32>
    %c16_i32_36 = arith.constant 16 : i32
    %128 = vector.broadcast %c16_i32_36 : i32 to vector<1x256xi32>
    %129 = arith.cmpi slt, %127, %128 : vector<1x256xi32>
    %130 = arith.andi %125, %129 : vector<1x256xi1>
    %cst_37 = arith.constant 0.000000e+00 : f32
    %131 = vector.shape_cast %130 : vector<1x256xi1> to vector<1x256xi1>
    %132 = vector.broadcast %131 : vector<1x256xi1> to vector<8x256xi1>
    %133 = vector.broadcast %cst_37 : f32 to vector<8x256xf32>
    %134 = arith.select %132, %121, %133 : vector<8x256xi1>, vector<8x256xf32>
    %c1_i32 = arith.constant 1 : i32
    %135 = tpu.dynamic_rotate %76 by %c1_i32 dim 1 : vector<8x256xf32>, i32 -> vector<8x256xf32>
    %c-1_i32 = arith.constant -1 : i32
    %136 = vector.broadcast %c-1_i32 : i32 to vector<1x256xi32>
    %137 = arith.addi %78, %136 : vector<1x256xi32>
    %c0_i32_38 = arith.constant 0 : i32
    %138 = vector.broadcast %c0_i32_38 : i32 to vector<1x256xi32>
    %139 = arith.cmpi sge, %137, %138 : vector<1x256xi32>
    %c-1_i32_39 = arith.constant -1 : i32
    %140 = vector.broadcast %c-1_i32_39 : i32 to vector<1x256xi32>
    %141 = arith.addi %78, %140 : vector<1x256xi32>
    %c16_i32_40 = arith.constant 16 : i32
    %142 = vector.broadcast %c16_i32_40 : i32 to vector<1x256xi32>
    %143 = arith.cmpi slt, %141, %142 : vector<1x256xi32>
    %144 = arith.andi %139, %143 : vector<1x256xi1>
    %cst_41 = arith.constant 0.000000e+00 : f32
    %145 = vector.shape_cast %144 : vector<1x256xi1> to vector<1x256xi1>
    %146 = vector.broadcast %145 : vector<1x256xi1> to vector<8x256xi1>
    %147 = vector.broadcast %cst_41 : f32 to vector<8x256xf32>
    %148 = arith.select %146, %135, %147 : vector<8x256xi1>, vector<8x256xf32>
    %c255_i32 = arith.constant 255 : i32
    %149 = tpu.dynamic_rotate %76 by %c255_i32 dim 1 : vector<8x256xf32>, i32 -> vector<8x256xf32>
    %c1_i32_42 = arith.constant 1 : i32
    %150 = vector.broadcast %c1_i32_42 : i32 to vector<1x256xi32>
    %151 = arith.addi %78, %150 : vector<1x256xi32>
    %c0_i32_43 = arith.constant 0 : i32
    %152 = vector.broadcast %c0_i32_43 : i32 to vector<1x256xi32>
    %153 = arith.cmpi sge, %151, %152 : vector<1x256xi32>
    %c1_i32_44 = arith.constant 1 : i32
    %154 = vector.broadcast %c1_i32_44 : i32 to vector<1x256xi32>
    %155 = arith.addi %78, %154 : vector<1x256xi32>
    %c16_i32_45 = arith.constant 16 : i32
    %156 = vector.broadcast %c16_i32_45 : i32 to vector<1x256xi32>
    %157 = arith.cmpi slt, %155, %156 : vector<1x256xi32>
    %158 = arith.andi %153, %157 : vector<1x256xi1>
    %cst_46 = arith.constant 0.000000e+00 : f32
    %159 = vector.shape_cast %158 : vector<1x256xi1> to vector<1x256xi1>
    %160 = vector.broadcast %159 : vector<1x256xi1> to vector<8x256xi1>
    %161 = vector.broadcast %cst_46 : f32 to vector<8x256xf32>
    %162 = arith.select %160, %149, %161 : vector<8x256xi1>, vector<8x256xf32>
    %c254_i32 = arith.constant 254 : i32
    %163 = tpu.dynamic_rotate %76 by %c254_i32 dim 1 : vector<8x256xf32>, i32 -> vector<8x256xf32>
    %c2_i32_47 = arith.constant 2 : i32
    %164 = vector.broadcast %c2_i32_47 : i32 to vector<1x256xi32>
    %165 = arith.addi %78, %164 : vector<1x256xi32>
    %c0_i32_48 = arith.constant 0 : i32
    %166 = vector.broadcast %c0_i32_48 : i32 to vector<1x256xi32>
    %167 = arith.cmpi sge, %165, %166 : vector<1x256xi32>
    %c2_i32_49 = arith.constant 2 : i32
    %168 = vector.broadcast %c2_i32_49 : i32 to vector<1x256xi32>
    %169 = arith.addi %78, %168 : vector<1x256xi32>
    %c16_i32_50 = arith.constant 16 : i32
    %170 = vector.broadcast %c16_i32_50 : i32 to vector<1x256xi32>
    %171 = arith.cmpi slt, %169, %170 : vector<1x256xi32>
    %172 = arith.andi %167, %171 : vector<1x256xi1>
    %cst_51 = arith.constant 0.000000e+00 : f32
    %173 = vector.shape_cast %172 : vector<1x256xi1> to vector<1x256xi1>
    %174 = vector.broadcast %173 : vector<1x256xi1> to vector<8x256xi1>
    %175 = vector.broadcast %cst_51 : f32 to vector<8x256xf32>
    %176 = arith.select %174, %163, %175 : vector<8x256xi1>, vector<8x256xf32>
    %c253_i32 = arith.constant 253 : i32
    %177 = tpu.dynamic_rotate %76 by %c253_i32 dim 1 : vector<8x256xf32>, i32 -> vector<8x256xf32>
    %c3_i32_52 = arith.constant 3 : i32
    %178 = vector.broadcast %c3_i32_52 : i32 to vector<1x256xi32>
    %179 = arith.addi %78, %178 : vector<1x256xi32>
    %c0_i32_53 = arith.constant 0 : i32
    %180 = vector.broadcast %c0_i32_53 : i32 to vector<1x256xi32>
    %181 = arith.cmpi sge, %179, %180 : vector<1x256xi32>
    %c3_i32_54 = arith.constant 3 : i32
    %182 = vector.broadcast %c3_i32_54 : i32 to vector<1x256xi32>
    %183 = arith.addi %78, %182 : vector<1x256xi32>
    %c16_i32_55 = arith.constant 16 : i32
    %184 = vector.broadcast %c16_i32_55 : i32 to vector<1x256xi32>
    %185 = arith.cmpi slt, %183, %184 : vector<1x256xi32>
    %186 = arith.andi %181, %185 : vector<1x256xi1>
    %cst_56 = arith.constant 0.000000e+00 : f32
    %187 = vector.shape_cast %186 : vector<1x256xi1> to vector<1x256xi1>
    %188 = vector.broadcast %187 : vector<1x256xi1> to vector<8x256xi1>
    %189 = vector.broadcast %cst_56 : f32 to vector<8x256xf32>
    %190 = arith.select %188, %177, %189 : vector<8x256xi1>, vector<8x256xf32>
    %c252_i32 = arith.constant 252 : i32
    %191 = tpu.dynamic_rotate %76 by %c252_i32 dim 1 : vector<8x256xf32>, i32 -> vector<8x256xf32>
    %c4_i32_57 = arith.constant 4 : i32
    %192 = vector.broadcast %c4_i32_57 : i32 to vector<1x256xi32>
    %193 = arith.addi %78, %192 : vector<1x256xi32>
    %c0_i32_58 = arith.constant 0 : i32
    %194 = vector.broadcast %c0_i32_58 : i32 to vector<1x256xi32>
    %195 = arith.cmpi sge, %193, %194 : vector<1x256xi32>
    %c4_i32_59 = arith.constant 4 : i32
    %196 = vector.broadcast %c4_i32_59 : i32 to vector<1x256xi32>
    %197 = arith.addi %78, %196 : vector<1x256xi32>
    %c16_i32_60 = arith.constant 16 : i32
    %198 = vector.broadcast %c16_i32_60 : i32 to vector<1x256xi32>
    %199 = arith.cmpi slt, %197, %198 : vector<1x256xi32>
    %200 = arith.andi %195, %199 : vector<1x256xi1>
    %cst_61 = arith.constant 0.000000e+00 : f32
    %201 = vector.shape_cast %200 : vector<1x256xi1> to vector<1x256xi1>
    %202 = vector.broadcast %201 : vector<1x256xi1> to vector<8x256xi1>
    %203 = vector.broadcast %cst_61 : f32 to vector<8x256xf32>
    %204 = arith.select %202, %191, %203 : vector<8x256xi1>, vector<8x256xf32>
    %c251_i32 = arith.constant 251 : i32
    %205 = tpu.dynamic_rotate %76 by %c251_i32 dim 1 : vector<8x256xf32>, i32 -> vector<8x256xf32>
    %c5_i32_62 = arith.constant 5 : i32
    %206 = vector.broadcast %c5_i32_62 : i32 to vector<1x256xi32>
    %207 = arith.addi %78, %206 : vector<1x256xi32>
    %c0_i32_63 = arith.constant 0 : i32
    %208 = vector.broadcast %c0_i32_63 : i32 to vector<1x256xi32>
    %209 = arith.cmpi sge, %207, %208 : vector<1x256xi32>
    %c5_i32_64 = arith.constant 5 : i32
    %210 = vector.broadcast %c5_i32_64 : i32 to vector<1x256xi32>
    %211 = arith.addi %78, %210 : vector<1x256xi32>
    %c16_i32_65 = arith.constant 16 : i32
    %212 = vector.broadcast %c16_i32_65 : i32 to vector<1x256xi32>
    %213 = arith.cmpi slt, %211, %212 : vector<1x256xi32>
    %214 = arith.andi %209, %213 : vector<1x256xi1>
    %cst_66 = arith.constant 0.000000e+00 : f32
    %215 = vector.shape_cast %214 : vector<1x256xi1> to vector<1x256xi1>
    %216 = vector.broadcast %215 : vector<1x256xi1> to vector<8x256xi1>
    %217 = vector.broadcast %cst_66 : f32 to vector<8x256xf32>
    %218 = arith.select %216, %205, %217 : vector<8x256xi1>, vector<8x256xf32>
    %cst_67 = arith.constant 0.000000e+00 : f32
    %219 = vector.broadcast %cst_67 : f32 to vector<8x256xf32>
    %cst_68 = arith.constant 0.000000e+00 : f32
    %220 = vector.broadcast %cst_68 : f32 to vector<8x256xf32>
    %c0_69 = arith.constant 0 : index
    %c0_70 = arith.constant 0 : index
    %c0_71 = arith.constant 0 : index
    %221 = vector.load %arg5[%c0_69, %c0_70, %c0_71] : memref<121x8x256xf32, #tpu.memory_space<vmem>>, vector<1x8x256xf32>
    %222 = vector.shape_cast %221 : vector<1x8x256xf32> to vector<8x256xf32>
    %223 = arith.mulf %222, %92 : vector<8x256xf32>
    %c1_72 = arith.constant 1 : index
    %c0_73 = arith.constant 0 : index
    %c0_74 = arith.constant 0 : index
    %224 = vector.load %arg5[%c1_72, %c0_73, %c0_74] : memref<121x8x256xf32, #tpu.memory_space<vmem>>, vector<1x8x256xf32>
    %225 = vector.shape_cast %224 : vector<1x8x256xf32> to vector<8x256xf32>
    %226 = arith.mulf %225, %106 : vector<8x256xf32>
    %c2 = arith.constant 2 : index
    %c0_75 = arith.constant 0 : index
    %c0_76 = arith.constant 0 : index
    %227 = vector.load %arg5[%c2, %c0_75, %c0_76] : memref<121x8x256xf32, #tpu.memory_space<vmem>>, vector<1x8x256xf32>
    %228 = vector.shape_cast %227 : vector<1x8x256xf32> to vector<8x256xf32>
    %229 = arith.mulf %228, %120 : vector<8x256xf32>
    %230 = arith.addf %223, %229 : vector<8x256xf32>
    %c3 = arith.constant 3 : index
    %c0_77 = arith.constant 0 : index
    %c0_78 = arith.constant 0 : index
    %231 = vector.load %arg5[%c3, %c0_77, %c0_78] : memref<121x8x256xf32, #tpu.memory_space<vmem>>, vector<1x8x256xf32>
    %232 = vector.shape_cast %231 : vector<1x8x256xf32> to vector<8x256xf32>
    %233 = arith.mulf %232, %134 : vector<8x256xf32>
    %234 = arith.addf %226, %233 : vector<8x256xf32>
    %c4 = arith.constant 4 : index
    %c0_79 = arith.constant 0 : index
    %c0_80 = arith.constant 0 : index
    %235 = vector.load %arg5[%c4, %c0_79, %c0_80] : memref<121x8x256xf32, #tpu.memory_space<vmem>>, vector<1x8x256xf32>
    %236 = vector.shape_cast %235 : vector<1x8x256xf32> to vector<8x256xf32>
    %237 = arith.mulf %236, %148 : vector<8x256xf32>
    %238 = arith.addf %230, %237 : vector<8x256xf32>
    %c5 = arith.constant 5 : index
    %c0_81 = arith.constant 0 : index
    %c0_82 = arith.constant 0 : index
    %239 = vector.load %arg5[%c5, %c0_81, %c0_82] : memref<121x8x256xf32, #tpu.memory_space<vmem>>, vector<1x8x256xf32>
    %240 = vector.shape_cast %239 : vector<1x8x256xf32> to vector<8x256xf32>
    %241 = arith.mulf %240, %76 : vector<8x256xf32>
    %242 = arith.addf %234, %241 : vector<8x256xf32>
    %c6 = arith.constant 6 : index
    %c0_83 = arith.constant 0 : index
    %c0_84 = arith.constant 0 : index
    %243 = vector.load %arg5[%c6, %c0_83, %c0_84] : memref<121x8x256xf32, #tpu.memory_space<vmem>>, vector<1x8x256xf32>
    %244 = vector.shape_cast %243 : vector<1x8x256xf32> to vector<8x256xf32>
    %245 = arith.mulf %244, %162 : vector<8x256xf32>
    %246 = arith.addf %238, %245 : vector<8x256xf32>
    %c7 = arith.constant 7 : index
    %c0_85 = arith.constant 0 : index
    %c0_86 = arith.constant 0 : index
    %247 = vector.load %arg5[%c7, %c0_85, %c0_86] : memref<121x8x256xf32, #tpu.memory_space<vmem>>, vector<1x8x256xf32>
    %248 = vector.shape_cast %247 : vector<1x8x256xf32> to vector<8x256xf32>
    %249 = arith.mulf %248, %176 : vector<8x256xf32>
    %250 = arith.addf %242, %249 : vector<8x256xf32>
    %c8_87 = arith.constant 8 : index
    %c0_88 = arith.constant 0 : index
    %c0_89 = arith.constant 0 : index
    %251 = vector.load %arg5[%c8_87, %c0_88, %c0_89] : memref<121x8x256xf32, #tpu.memory_space<vmem>>, vector<1x8x256xf32>
    %252 = vector.shape_cast %251 : vector<1x8x256xf32> to vector<8x256xf32>
    %253 = arith.mulf %252, %190 : vector<8x256xf32>
    %254 = arith.addf %246, %253 : vector<8x256xf32>
    %c9 = arith.constant 9 : index
    %c0_90 = arith.constant 0 : index
    %c0_91 = arith.constant 0 : index
    %255 = vector.load %arg5[%c9, %c0_90, %c0_91] : memref<121x8x256xf32, #tpu.memory_space<vmem>>, vector<1x8x256xf32>
    %256 = vector.shape_cast %255 : vector<1x8x256xf32> to vector<8x256xf32>
    %257 = arith.mulf %256, %204 : vector<8x256xf32>
    %258 = arith.addf %250, %257 : vector<8x256xf32>
    %c10 = arith.constant 10 : index
    %c0_92 = arith.constant 0 : index
    %c0_93 = arith.constant 0 : index
    %259 = vector.load %arg5[%c10, %c0_92, %c0_93] : memref<121x8x256xf32, #tpu.memory_space<vmem>>, vector<1x8x256xf32>
    %260 = vector.shape_cast %259 : vector<1x8x256xf32> to vector<8x256xf32>
    %261 = arith.mulf %260, %218 : vector<8x256xf32>
    %262 = arith.addf %254, %261 : vector<8x256xf32>
    %263 = arith.addf %262, %258 : vector<8x256xf32>
    %c80_i32 = arith.constant 80 : i32
    %264 = tpu.dynamic_rotate %263 by %c80_i32 dim 1 : vector<8x256xf32>, i32 -> vector<8x256xf32>
    %c-5_i32_94 = arith.constant -5 : i32
    %265 = vector.broadcast %c-5_i32_94 : i32 to vector<1x256xi32>
    %266 = arith.addi %77, %265 : vector<1x256xi32>
    %c0_i32_95 = arith.constant 0 : i32
    %267 = vector.broadcast %c0_i32_95 : i32 to vector<1x256xi32>
    %268 = arith.cmpi sge, %266, %267 : vector<1x256xi32>
    %c-5_i32_96 = arith.constant -5 : i32
    %269 = vector.broadcast %c-5_i32_96 : i32 to vector<1x256xi32>
    %270 = arith.addi %77, %269 : vector<1x256xi32>
    %c16_i32_97 = arith.constant 16 : i32
    %271 = vector.broadcast %c16_i32_97 : i32 to vector<1x256xi32>
    %272 = arith.cmpi slt, %270, %271 : vector<1x256xi32>
    %273 = arith.andi %268, %272 : vector<1x256xi1>
    %cst_98 = arith.constant 0.000000e+00 : f32
    %274 = vector.shape_cast %273 : vector<1x256xi1> to vector<1x256xi1>
    %275 = vector.broadcast %274 : vector<1x256xi1> to vector<8x256xi1>
    %276 = vector.broadcast %cst_98 : f32 to vector<8x256xf32>
    %277 = arith.select %275, %264, %276 : vector<8x256xi1>, vector<8x256xf32>
    %278 = arith.addf %219, %277 : vector<8x256xf32>
    %c11 = arith.constant 11 : index
    %c0_99 = arith.constant 0 : index
    %c0_100 = arith.constant 0 : index
    %279 = vector.load %arg5[%c11, %c0_99, %c0_100] : memref<121x8x256xf32, #tpu.memory_space<vmem>>, vector<1x8x256xf32>
    %280 = vector.shape_cast %279 : vector<1x8x256xf32> to vector<8x256xf32>
    %281 = arith.mulf %280, %92 : vector<8x256xf32>
    %c12 = arith.constant 12 : index
    %c0_101 = arith.constant 0 : index
    %c0_102 = arith.constant 0 : index
    %282 = vector.load %arg5[%c12, %c0_101, %c0_102] : memref<121x8x256xf32, #tpu.memory_space<vmem>>, vector<1x8x256xf32>
    %283 = vector.shape_cast %282 : vector<1x8x256xf32> to vector<8x256xf32>
    %284 = arith.mulf %283, %106 : vector<8x256xf32>
    %c13 = arith.constant 13 : index
    %c0_103 = arith.constant 0 : index
    %c0_104 = arith.constant 0 : index
    %285 = vector.load %arg5[%c13, %c0_103, %c0_104] : memref<121x8x256xf32, #tpu.memory_space<vmem>>, vector<1x8x256xf32>
    %286 = vector.shape_cast %285 : vector<1x8x256xf32> to vector<8x256xf32>
    %287 = arith.mulf %286, %120 : vector<8x256xf32>
    %288 = arith.addf %281, %287 : vector<8x256xf32>
    %c14 = arith.constant 14 : index
    %c0_105 = arith.constant 0 : index
    %c0_106 = arith.constant 0 : index
    %289 = vector.load %arg5[%c14, %c0_105, %c0_106] : memref<121x8x256xf32, #tpu.memory_space<vmem>>, vector<1x8x256xf32>
    %290 = vector.shape_cast %289 : vector<1x8x256xf32> to vector<8x256xf32>
    %291 = arith.mulf %290, %134 : vector<8x256xf32>
    %292 = arith.addf %284, %291 : vector<8x256xf32>
    %c15 = arith.constant 15 : index
    %c0_107 = arith.constant 0 : index
    %c0_108 = arith.constant 0 : index
    %293 = vector.load %arg5[%c15, %c0_107, %c0_108] : memref<121x8x256xf32, #tpu.memory_space<vmem>>, vector<1x8x256xf32>
    %294 = vector.shape_cast %293 : vector<1x8x256xf32> to vector<8x256xf32>
    %295 = arith.mulf %294, %148 : vector<8x256xf32>
    %296 = arith.addf %288, %295 : vector<8x256xf32>
    %c16 = arith.constant 16 : index
    %c0_109 = arith.constant 0 : index
    %c0_110 = arith.constant 0 : index
    %297 = vector.load %arg5[%c16, %c0_109, %c0_110] : memref<121x8x256xf32, #tpu.memory_space<vmem>>, vector<1x8x256xf32>
    %298 = vector.shape_cast %297 : vector<1x8x256xf32> to vector<8x256xf32>
    %299 = arith.mulf %298, %76 : vector<8x256xf32>
    %300 = arith.addf %292, %299 : vector<8x256xf32>
    %c17 = arith.constant 17 : index
    %c0_111 = arith.constant 0 : index
    %c0_112 = arith.constant 0 : index
    %301 = vector.load %arg5[%c17, %c0_111, %c0_112] : memref<121x8x256xf32, #tpu.memory_space<vmem>>, vector<1x8x256xf32>
    %302 = vector.shape_cast %301 : vector<1x8x256xf32> to vector<8x256xf32>
    %303 = arith.mulf %302, %162 : vector<8x256xf32>
    %304 = arith.addf %296, %303 : vector<8x256xf32>
    %c18 = arith.constant 18 : index
    %c0_113 = arith.constant 0 : index
    %c0_114 = arith.constant 0 : index
    %305 = vector.load %arg5[%c18, %c0_113, %c0_114] : memref<121x8x256xf32, #tpu.memory_space<vmem>>, vector<1x8x256xf32>
    %306 = vector.shape_cast %305 : vector<1x8x256xf32> to vector<8x256xf32>
    %307 = arith.mulf %306, %176 : vector<8x256xf32>
    %308 = arith.addf %300, %307 : vector<8x256xf32>
    %c19 = arith.constant 19 : index
    %c0_115 = arith.constant 0 : index
    %c0_116 = arith.constant 0 : index
    %309 = vector.load %arg5[%c19, %c0_115, %c0_116] : memref<121x8x256xf32, #tpu.memory_space<vmem>>, vector<1x8x256xf32>
    %310 = vector.shape_cast %309 : vector<1x8x256xf32> to vector<8x256xf32>
    %311 = arith.mulf %310, %190 : vector<8x256xf32>
    %312 = arith.addf %304, %311 : vector<8x256xf32>
    %c20 = arith.constant 20 : index
    %c0_117 = arith.constant 0 : index
    %c0_118 = arith.constant 0 : index
    %313 = vector.load %arg5[%c20, %c0_117, %c0_118] : memref<121x8x256xf32, #tpu.memory_space<vmem>>, vector<1x8x256xf32>
    %314 = vector.shape_cast %313 : vector<1x8x256xf32> to vector<8x256xf32>
    %315 = arith.mulf %314, %204 : vector<8x256xf32>
    %316 = arith.addf %308, %315 : vector<8x256xf32>
    %c21 = arith.constant 21 : index
    %c0_119 = arith.constant 0 : index
    %c0_120 = arith.constant 0 : index
    %317 = vector.load %arg5[%c21, %c0_119, %c0_120] : memref<121x8x256xf32, #tpu.memory_space<vmem>>, vector<1x8x256xf32>
    %318 = vector.shape_cast %317 : vector<1x8x256xf32> to vector<8x256xf32>
    %319 = arith.mulf %318, %218 : vector<8x256xf32>
    %320 = arith.addf %312, %319 : vector<8x256xf32>
    %321 = arith.addf %320, %316 : vector<8x256xf32>
    %c64_i32 = arith.constant 64 : i32
    %322 = tpu.dynamic_rotate %321 by %c64_i32 dim 1 : vector<8x256xf32>, i32 -> vector<8x256xf32>
    %c-4_i32_121 = arith.constant -4 : i32
    %323 = vector.broadcast %c-4_i32_121 : i32 to vector<1x256xi32>
    %324 = arith.addi %77, %323 : vector<1x256xi32>
    %c0_i32_122 = arith.constant 0 : i32
    %325 = vector.broadcast %c0_i32_122 : i32 to vector<1x256xi32>
    %326 = arith.cmpi sge, %324, %325 : vector<1x256xi32>
    %c-4_i32_123 = arith.constant -4 : i32
    %327 = vector.broadcast %c-4_i32_123 : i32 to vector<1x256xi32>
    %328 = arith.addi %77, %327 : vector<1x256xi32>
    %c16_i32_124 = arith.constant 16 : i32
    %329 = vector.broadcast %c16_i32_124 : i32 to vector<1x256xi32>
    %330 = arith.cmpi slt, %328, %329 : vector<1x256xi32>
    %331 = arith.andi %326, %330 : vector<1x256xi1>
    %cst_125 = arith.constant 0.000000e+00 : f32
    %332 = vector.shape_cast %331 : vector<1x256xi1> to vector<1x256xi1>
    %333 = vector.broadcast %332 : vector<1x256xi1> to vector<8x256xi1>
    %334 = vector.broadcast %cst_125 : f32 to vector<8x256xf32>
    %335 = arith.select %333, %322, %334 : vector<8x256xi1>, vector<8x256xf32>
    %336 = arith.addf %220, %335 : vector<8x256xf32>
    %c22 = arith.constant 22 : index
    %c0_126 = arith.constant 0 : index
    %c0_127 = arith.constant 0 : index
    %337 = vector.load %arg5[%c22, %c0_126, %c0_127] : memref<121x8x256xf32, #tpu.memory_space<vmem>>, vector<1x8x256xf32>
    %338 = vector.shape_cast %337 : vector<1x8x256xf32> to vector<8x256xf32>
    %339 = arith.mulf %338, %92 : vector<8x256xf32>
    %c23 = arith.constant 23 : index
    %c0_128 = arith.constant 0 : index
    %c0_129 = arith.constant 0 : index
    %340 = vector.load %arg5[%c23, %c0_128, %c0_129] : memref<121x8x256xf32, #tpu.memory_space<vmem>>, vector<1x8x256xf32>
    %341 = vector.shape_cast %340 : vector<1x8x256xf32> to vector<8x256xf32>
    %342 = arith.mulf %341, %106 : vector<8x256xf32>
    %c24 = arith.constant 24 : index
    %c0_130 = arith.constant 0 : index
    %c0_131 = arith.constant 0 : index
    %343 = vector.load %arg5[%c24, %c0_130, %c0_131] : memref<121x8x256xf32, #tpu.memory_space<vmem>>, vector<1x8x256xf32>
    %344 = vector.shape_cast %343 : vector<1x8x256xf32> to vector<8x256xf32>
    %345 = arith.mulf %344, %120 : vector<8x256xf32>
    %346 = arith.addf %339, %345 : vector<8x256xf32>
    %c25 = arith.constant 25 : index
    %c0_132 = arith.constant 0 : index
    %c0_133 = arith.constant 0 : index
    %347 = vector.load %arg5[%c25, %c0_132, %c0_133] : memref<121x8x256xf32, #tpu.memory_space<vmem>>, vector<1x8x256xf32>
    %348 = vector.shape_cast %347 : vector<1x8x256xf32> to vector<8x256xf32>
    %349 = arith.mulf %348, %134 : vector<8x256xf32>
    %350 = arith.addf %342, %349 : vector<8x256xf32>
    %c26 = arith.constant 26 : index
    %c0_134 = arith.constant 0 : index
    %c0_135 = arith.constant 0 : index
    %351 = vector.load %arg5[%c26, %c0_134, %c0_135] : memref<121x8x256xf32, #tpu.memory_space<vmem>>, vector<1x8x256xf32>
    %352 = vector.shape_cast %351 : vector<1x8x256xf32> to vector<8x256xf32>
    %353 = arith.mulf %352, %148 : vector<8x256xf32>
    %354 = arith.addf %346, %353 : vector<8x256xf32>
    %c27 = arith.constant 27 : index
    %c0_136 = arith.constant 0 : index
    %c0_137 = arith.constant 0 : index
    %355 = vector.load %arg5[%c27, %c0_136, %c0_137] : memref<121x8x256xf32, #tpu.memory_space<vmem>>, vector<1x8x256xf32>
    %356 = vector.shape_cast %355 : vector<1x8x256xf32> to vector<8x256xf32>
    %357 = arith.mulf %356, %76 : vector<8x256xf32>
    %358 = arith.addf %350, %357 : vector<8x256xf32>
    %c28 = arith.constant 28 : index
    %c0_138 = arith.constant 0 : index
    %c0_139 = arith.constant 0 : index
    %359 = vector.load %arg5[%c28, %c0_138, %c0_139] : memref<121x8x256xf32, #tpu.memory_space<vmem>>, vector<1x8x256xf32>
    %360 = vector.shape_cast %359 : vector<1x8x256xf32> to vector<8x256xf32>
    %361 = arith.mulf %360, %162 : vector<8x256xf32>
    %362 = arith.addf %354, %361 : vector<8x256xf32>
    %c29 = arith.constant 29 : index
    %c0_140 = arith.constant 0 : index
    %c0_141 = arith.constant 0 : index
    %363 = vector.load %arg5[%c29, %c0_140, %c0_141] : memref<121x8x256xf32, #tpu.memory_space<vmem>>, vector<1x8x256xf32>
    %364 = vector.shape_cast %363 : vector<1x8x256xf32> to vector<8x256xf32>
    %365 = arith.mulf %364, %176 : vector<8x256xf32>
    %366 = arith.addf %358, %365 : vector<8x256xf32>
    %c30 = arith.constant 30 : index
    %c0_142 = arith.constant 0 : index
    %c0_143 = arith.constant 0 : index
    %367 = vector.load %arg5[%c30, %c0_142, %c0_143] : memref<121x8x256xf32, #tpu.memory_space<vmem>>, vector<1x8x256xf32>
    %368 = vector.shape_cast %367 : vector<1x8x256xf32> to vector<8x256xf32>
    %369 = arith.mulf %368, %190 : vector<8x256xf32>
    %370 = arith.addf %362, %369 : vector<8x256xf32>
    %c31 = arith.constant 31 : index
    %c0_144 = arith.constant 0 : index
    %c0_145 = arith.constant 0 : index
    %371 = vector.load %arg5[%c31, %c0_144, %c0_145] : memref<121x8x256xf32, #tpu.memory_space<vmem>>, vector<1x8x256xf32>
    %372 = vector.shape_cast %371 : vector<1x8x256xf32> to vector<8x256xf32>
    %373 = arith.mulf %372, %204 : vector<8x256xf32>
    %374 = arith.addf %366, %373 : vector<8x256xf32>
    %c32 = arith.constant 32 : index
    %c0_146 = arith.constant 0 : index
    %c0_147 = arith.constant 0 : index
    %375 = vector.load %arg5[%c32, %c0_146, %c0_147] : memref<121x8x256xf32, #tpu.memory_space<vmem>>, vector<1x8x256xf32>
    %376 = vector.shape_cast %375 : vector<1x8x256xf32> to vector<8x256xf32>
    %377 = arith.mulf %376, %218 : vector<8x256xf32>
    %378 = arith.addf %370, %377 : vector<8x256xf32>
    %379 = arith.addf %378, %374 : vector<8x256xf32>
    %c48_i32 = arith.constant 48 : i32
    %380 = tpu.dynamic_rotate %379 by %c48_i32 dim 1 : vector<8x256xf32>, i32 -> vector<8x256xf32>
    %c-3_i32_148 = arith.constant -3 : i32
    %381 = vector.broadcast %c-3_i32_148 : i32 to vector<1x256xi32>
    %382 = arith.addi %77, %381 : vector<1x256xi32>
    %c0_i32_149 = arith.constant 0 : i32
    %383 = vector.broadcast %c0_i32_149 : i32 to vector<1x256xi32>
    %384 = arith.cmpi sge, %382, %383 : vector<1x256xi32>
    %c-3_i32_150 = arith.constant -3 : i32
    %385 = vector.broadcast %c-3_i32_150 : i32 to vector<1x256xi32>
    %386 = arith.addi %77, %385 : vector<1x256xi32>
    %c16_i32_151 = arith.constant 16 : i32
    %387 = vector.broadcast %c16_i32_151 : i32 to vector<1x256xi32>
    %388 = arith.cmpi slt, %386, %387 : vector<1x256xi32>
    %389 = arith.andi %384, %388 : vector<1x256xi1>
    %cst_152 = arith.constant 0.000000e+00 : f32
    %390 = vector.shape_cast %389 : vector<1x256xi1> to vector<1x256xi1>
    %391 = vector.broadcast %390 : vector<1x256xi1> to vector<8x256xi1>
    %392 = vector.broadcast %cst_152 : f32 to vector<8x256xf32>
    %393 = arith.select %391, %380, %392 : vector<8x256xi1>, vector<8x256xf32>
    %394 = arith.addf %278, %393 : vector<8x256xf32>
    %c33 = arith.constant 33 : index
    %c0_153 = arith.constant 0 : index
    %c0_154 = arith.constant 0 : index
    %395 = vector.load %arg5[%c33, %c0_153, %c0_154] : memref<121x8x256xf32, #tpu.memory_space<vmem>>, vector<1x8x256xf32>
    %396 = vector.shape_cast %395 : vector<1x8x256xf32> to vector<8x256xf32>
    %397 = arith.mulf %396, %92 : vector<8x256xf32>
    %c34 = arith.constant 34 : index
    %c0_155 = arith.constant 0 : index
    %c0_156 = arith.constant 0 : index
    %398 = vector.load %arg5[%c34, %c0_155, %c0_156] : memref<121x8x256xf32, #tpu.memory_space<vmem>>, vector<1x8x256xf32>
    %399 = vector.shape_cast %398 : vector<1x8x256xf32> to vector<8x256xf32>
    %400 = arith.mulf %399, %106 : vector<8x256xf32>
    %c35 = arith.constant 35 : index
    %c0_157 = arith.constant 0 : index
    %c0_158 = arith.constant 0 : index
    %401 = vector.load %arg5[%c35, %c0_157, %c0_158] : memref<121x8x256xf32, #tpu.memory_space<vmem>>, vector<1x8x256xf32>
    %402 = vector.shape_cast %401 : vector<1x8x256xf32> to vector<8x256xf32>
    %403 = arith.mulf %402, %120 : vector<8x256xf32>
    %404 = arith.addf %397, %403 : vector<8x256xf32>
    %c36 = arith.constant 36 : index
    %c0_159 = arith.constant 0 : index
    %c0_160 = arith.constant 0 : index
    %405 = vector.load %arg5[%c36, %c0_159, %c0_160] : memref<121x8x256xf32, #tpu.memory_space<vmem>>, vector<1x8x256xf32>
    %406 = vector.shape_cast %405 : vector<1x8x256xf32> to vector<8x256xf32>
    %407 = arith.mulf %406, %134 : vector<8x256xf32>
    %408 = arith.addf %400, %407 : vector<8x256xf32>
    %c37 = arith.constant 37 : index
    %c0_161 = arith.constant 0 : index
    %c0_162 = arith.constant 0 : index
    %409 = vector.load %arg5[%c37, %c0_161, %c0_162] : memref<121x8x256xf32, #tpu.memory_space<vmem>>, vector<1x8x256xf32>
    %410 = vector.shape_cast %409 : vector<1x8x256xf32> to vector<8x256xf32>
    %411 = arith.mulf %410, %148 : vector<8x256xf32>
    %412 = arith.addf %404, %411 : vector<8x256xf32>
    %c38 = arith.constant 38 : index
    %c0_163 = arith.constant 0 : index
    %c0_164 = arith.constant 0 : index
    %413 = vector.load %arg5[%c38, %c0_163, %c0_164] : memref<121x8x256xf32, #tpu.memory_space<vmem>>, vector<1x8x256xf32>
    %414 = vector.shape_cast %413 : vector<1x8x256xf32> to vector<8x256xf32>
    %415 = arith.mulf %414, %76 : vector<8x256xf32>
    %416 = arith.addf %408, %415 : vector<8x256xf32>
    %c39 = arith.constant 39 : index
    %c0_165 = arith.constant 0 : index
    %c0_166 = arith.constant 0 : index
    %417 = vector.load %arg5[%c39, %c0_165, %c0_166] : memref<121x8x256xf32, #tpu.memory_space<vmem>>, vector<1x8x256xf32>
    %418 = vector.shape_cast %417 : vector<1x8x256xf32> to vector<8x256xf32>
    %419 = arith.mulf %418, %162 : vector<8x256xf32>
    %420 = arith.addf %412, %419 : vector<8x256xf32>
    %c40 = arith.constant 40 : index
    %c0_167 = arith.constant 0 : index
    %c0_168 = arith.constant 0 : index
    %421 = vector.load %arg5[%c40, %c0_167, %c0_168] : memref<121x8x256xf32, #tpu.memory_space<vmem>>, vector<1x8x256xf32>
    %422 = vector.shape_cast %421 : vector<1x8x256xf32> to vector<8x256xf32>
    %423 = arith.mulf %422, %176 : vector<8x256xf32>
    %424 = arith.addf %416, %423 : vector<8x256xf32>
    %c41 = arith.constant 41 : index
    %c0_169 = arith.constant 0 : index
    %c0_170 = arith.constant 0 : index
    %425 = vector.load %arg5[%c41, %c0_169, %c0_170] : memref<121x8x256xf32, #tpu.memory_space<vmem>>, vector<1x8x256xf32>
    %426 = vector.shape_cast %425 : vector<1x8x256xf32> to vector<8x256xf32>
    %427 = arith.mulf %426, %190 : vector<8x256xf32>
    %428 = arith.addf %420, %427 : vector<8x256xf32>
    %c42 = arith.constant 42 : index
    %c0_171 = arith.constant 0 : index
    %c0_172 = arith.constant 0 : index
    %429 = vector.load %arg5[%c42, %c0_171, %c0_172] : memref<121x8x256xf32, #tpu.memory_space<vmem>>, vector<1x8x256xf32>
    %430 = vector.shape_cast %429 : vector<1x8x256xf32> to vector<8x256xf32>
    %431 = arith.mulf %430, %204 : vector<8x256xf32>
    %432 = arith.addf %424, %431 : vector<8x256xf32>
    %c43 = arith.constant 43 : index
    %c0_173 = arith.constant 0 : index
    %c0_174 = arith.constant 0 : index
    %433 = vector.load %arg5[%c43, %c0_173, %c0_174] : memref<121x8x256xf32, #tpu.memory_space<vmem>>, vector<1x8x256xf32>
    %434 = vector.shape_cast %433 : vector<1x8x256xf32> to vector<8x256xf32>
    %435 = arith.mulf %434, %218 : vector<8x256xf32>
    %436 = arith.addf %428, %435 : vector<8x256xf32>
    %437 = arith.addf %436, %432 : vector<8x256xf32>
    %c32_i32 = arith.constant 32 : i32
    %438 = tpu.dynamic_rotate %437 by %c32_i32 dim 1 : vector<8x256xf32>, i32 -> vector<8x256xf32>
    %c-2_i32_175 = arith.constant -2 : i32
    %439 = vector.broadcast %c-2_i32_175 : i32 to vector<1x256xi32>
    %440 = arith.addi %77, %439 : vector<1x256xi32>
    %c0_i32_176 = arith.constant 0 : i32
    %441 = vector.broadcast %c0_i32_176 : i32 to vector<1x256xi32>
    %442 = arith.cmpi sge, %440, %441 : vector<1x256xi32>
    %c-2_i32_177 = arith.constant -2 : i32
    %443 = vector.broadcast %c-2_i32_177 : i32 to vector<1x256xi32>
    %444 = arith.addi %77, %443 : vector<1x256xi32>
    %c16_i32_178 = arith.constant 16 : i32
    %445 = vector.broadcast %c16_i32_178 : i32 to vector<1x256xi32>
    %446 = arith.cmpi slt, %444, %445 : vector<1x256xi32>
    %447 = arith.andi %442, %446 : vector<1x256xi1>
    %cst_179 = arith.constant 0.000000e+00 : f32
    %448 = vector.shape_cast %447 : vector<1x256xi1> to vector<1x256xi1>
    %449 = vector.broadcast %448 : vector<1x256xi1> to vector<8x256xi1>
    %450 = vector.broadcast %cst_179 : f32 to vector<8x256xf32>
    %451 = arith.select %449, %438, %450 : vector<8x256xi1>, vector<8x256xf32>
    %452 = arith.addf %336, %451 : vector<8x256xf32>
    %c44 = arith.constant 44 : index
    %c0_180 = arith.constant 0 : index
    %c0_181 = arith.constant 0 : index
    %453 = vector.load %arg5[%c44, %c0_180, %c0_181] : memref<121x8x256xf32, #tpu.memory_space<vmem>>, vector<1x8x256xf32>
    %454 = vector.shape_cast %453 : vector<1x8x256xf32> to vector<8x256xf32>
    %455 = arith.mulf %454, %92 : vector<8x256xf32>
    %c45 = arith.constant 45 : index
    %c0_182 = arith.constant 0 : index
    %c0_183 = arith.constant 0 : index
    %456 = vector.load %arg5[%c45, %c0_182, %c0_183] : memref<121x8x256xf32, #tpu.memory_space<vmem>>, vector<1x8x256xf32>
    %457 = vector.shape_cast %456 : vector<1x8x256xf32> to vector<8x256xf32>
    %458 = arith.mulf %457, %106 : vector<8x256xf32>
    %c46 = arith.constant 46 : index
    %c0_184 = arith.constant 0 : index
    %c0_185 = arith.constant 0 : index
    %459 = vector.load %arg5[%c46, %c0_184, %c0_185] : memref<121x8x256xf32, #tpu.memory_space<vmem>>, vector<1x8x256xf32>
    %460 = vector.shape_cast %459 : vector<1x8x256xf32> to vector<8x256xf32>
    %461 = arith.mulf %460, %120 : vector<8x256xf32>
    %462 = arith.addf %455, %461 : vector<8x256xf32>
    %c47 = arith.constant 47 : index
    %c0_186 = arith.constant 0 : index
    %c0_187 = arith.constant 0 : index
    %463 = vector.load %arg5[%c47, %c0_186, %c0_187] : memref<121x8x256xf32, #tpu.memory_space<vmem>>, vector<1x8x256xf32>
    %464 = vector.shape_cast %463 : vector<1x8x256xf32> to vector<8x256xf32>
    %465 = arith.mulf %464, %134 : vector<8x256xf32>
    %466 = arith.addf %458, %465 : vector<8x256xf32>
    %c48 = arith.constant 48 : index
    %c0_188 = arith.constant 0 : index
    %c0_189 = arith.constant 0 : index
    %467 = vector.load %arg5[%c48, %c0_188, %c0_189] : memref<121x8x256xf32, #tpu.memory_space<vmem>>, vector<1x8x256xf32>
    %468 = vector.shape_cast %467 : vector<1x8x256xf32> to vector<8x256xf32>
    %469 = arith.mulf %468, %148 : vector<8x256xf32>
    %470 = arith.addf %462, %469 : vector<8x256xf32>
    %c49 = arith.constant 49 : index
    %c0_190 = arith.constant 0 : index
    %c0_191 = arith.constant 0 : index
    %471 = vector.load %arg5[%c49, %c0_190, %c0_191] : memref<121x8x256xf32, #tpu.memory_space<vmem>>, vector<1x8x256xf32>
    %472 = vector.shape_cast %471 : vector<1x8x256xf32> to vector<8x256xf32>
    %473 = arith.mulf %472, %76 : vector<8x256xf32>
    %474 = arith.addf %466, %473 : vector<8x256xf32>
    %c50 = arith.constant 50 : index
    %c0_192 = arith.constant 0 : index
    %c0_193 = arith.constant 0 : index
    %475 = vector.load %arg5[%c50, %c0_192, %c0_193] : memref<121x8x256xf32, #tpu.memory_space<vmem>>, vector<1x8x256xf32>
    %476 = vector.shape_cast %475 : vector<1x8x256xf32> to vector<8x256xf32>
    %477 = arith.mulf %476, %162 : vector<8x256xf32>
    %478 = arith.addf %470, %477 : vector<8x256xf32>
    %c51 = arith.constant 51 : index
    %c0_194 = arith.constant 0 : index
    %c0_195 = arith.constant 0 : index
    %479 = vector.load %arg5[%c51, %c0_194, %c0_195] : memref<121x8x256xf32, #tpu.memory_space<vmem>>, vector<1x8x256xf32>
    %480 = vector.shape_cast %479 : vector<1x8x256xf32> to vector<8x256xf32>
    %481 = arith.mulf %480, %176 : vector<8x256xf32>
    %482 = arith.addf %474, %481 : vector<8x256xf32>
    %c52 = arith.constant 52 : index
    %c0_196 = arith.constant 0 : index
    %c0_197 = arith.constant 0 : index
    %483 = vector.load %arg5[%c52, %c0_196, %c0_197] : memref<121x8x256xf32, #tpu.memory_space<vmem>>, vector<1x8x256xf32>
    %484 = vector.shape_cast %483 : vector<1x8x256xf32> to vector<8x256xf32>
    %485 = arith.mulf %484, %190 : vector<8x256xf32>
    %486 = arith.addf %478, %485 : vector<8x256xf32>
    %c53 = arith.constant 53 : index
    %c0_198 = arith.constant 0 : index
    %c0_199 = arith.constant 0 : index
    %487 = vector.load %arg5[%c53, %c0_198, %c0_199] : memref<121x8x256xf32, #tpu.memory_space<vmem>>, vector<1x8x256xf32>
    %488 = vector.shape_cast %487 : vector<1x8x256xf32> to vector<8x256xf32>
    %489 = arith.mulf %488, %204 : vector<8x256xf32>
    %490 = arith.addf %482, %489 : vector<8x256xf32>
    %c54 = arith.constant 54 : index
    %c0_200 = arith.constant 0 : index
    %c0_201 = arith.constant 0 : index
    %491 = vector.load %arg5[%c54, %c0_200, %c0_201] : memref<121x8x256xf32, #tpu.memory_space<vmem>>, vector<1x8x256xf32>
    %492 = vector.shape_cast %491 : vector<1x8x256xf32> to vector<8x256xf32>
    %493 = arith.mulf %492, %218 : vector<8x256xf32>
    %494 = arith.addf %486, %493 : vector<8x256xf32>
    %495 = arith.addf %494, %490 : vector<8x256xf32>
    %c16_i32_202 = arith.constant 16 : i32
    %496 = tpu.dynamic_rotate %495 by %c16_i32_202 dim 1 : vector<8x256xf32>, i32 -> vector<8x256xf32>
    %c-1_i32_203 = arith.constant -1 : i32
    %497 = vector.broadcast %c-1_i32_203 : i32 to vector<1x256xi32>
    %498 = arith.addi %77, %497 : vector<1x256xi32>
    %c0_i32_204 = arith.constant 0 : i32
    %499 = vector.broadcast %c0_i32_204 : i32 to vector<1x256xi32>
    %500 = arith.cmpi sge, %498, %499 : vector<1x256xi32>
    %c-1_i32_205 = arith.constant -1 : i32
    %501 = vector.broadcast %c-1_i32_205 : i32 to vector<1x256xi32>
    %502 = arith.addi %77, %501 : vector<1x256xi32>
    %c16_i32_206 = arith.constant 16 : i32
    %503 = vector.broadcast %c16_i32_206 : i32 to vector<1x256xi32>
    %504 = arith.cmpi slt, %502, %503 : vector<1x256xi32>
    %505 = arith.andi %500, %504 : vector<1x256xi1>
    %cst_207 = arith.constant 0.000000e+00 : f32
    %506 = vector.shape_cast %505 : vector<1x256xi1> to vector<1x256xi1>
    %507 = vector.broadcast %506 : vector<1x256xi1> to vector<8x256xi1>
    %508 = vector.broadcast %cst_207 : f32 to vector<8x256xf32>
    %509 = arith.select %507, %496, %508 : vector<8x256xi1>, vector<8x256xf32>
    %510 = arith.addf %394, %509 : vector<8x256xf32>
    %c55 = arith.constant 55 : index
    %c0_208 = arith.constant 0 : index
    %c0_209 = arith.constant 0 : index
    %511 = vector.load %arg5[%c55, %c0_208, %c0_209] : memref<121x8x256xf32, #tpu.memory_space<vmem>>, vector<1x8x256xf32>
    %512 = vector.shape_cast %511 : vector<1x8x256xf32> to vector<8x256xf32>
    %513 = arith.mulf %512, %92 : vector<8x256xf32>
    %c56 = arith.constant 56 : index
    %c0_210 = arith.constant 0 : index
    %c0_211 = arith.constant 0 : index
    %514 = vector.load %arg5[%c56, %c0_210, %c0_211] : memref<121x8x256xf32, #tpu.memory_space<vmem>>, vector<1x8x256xf32>
    %515 = vector.shape_cast %514 : vector<1x8x256xf32> to vector<8x256xf32>
    %516 = arith.mulf %515, %106 : vector<8x256xf32>
    %c57 = arith.constant 57 : index
    %c0_212 = arith.constant 0 : index
    %c0_213 = arith.constant 0 : index
    %517 = vector.load %arg5[%c57, %c0_212, %c0_213] : memref<121x8x256xf32, #tpu.memory_space<vmem>>, vector<1x8x256xf32>
    %518 = vector.shape_cast %517 : vector<1x8x256xf32> to vector<8x256xf32>
    %519 = arith.mulf %518, %120 : vector<8x256xf32>
    %520 = arith.addf %513, %519 : vector<8x256xf32>
    %c58 = arith.constant 58 : index
    %c0_214 = arith.constant 0 : index
    %c0_215 = arith.constant 0 : index
    %521 = vector.load %arg5[%c58, %c0_214, %c0_215] : memref<121x8x256xf32, #tpu.memory_space<vmem>>, vector<1x8x256xf32>
    %522 = vector.shape_cast %521 : vector<1x8x256xf32> to vector<8x256xf32>
    %523 = arith.mulf %522, %134 : vector<8x256xf32>
    %524 = arith.addf %516, %523 : vector<8x256xf32>
    %c59 = arith.constant 59 : index
    %c0_216 = arith.constant 0 : index
    %c0_217 = arith.constant 0 : index
    %525 = vector.load %arg5[%c59, %c0_216, %c0_217] : memref<121x8x256xf32, #tpu.memory_space<vmem>>, vector<1x8x256xf32>
    %526 = vector.shape_cast %525 : vector<1x8x256xf32> to vector<8x256xf32>
    %527 = arith.mulf %526, %148 : vector<8x256xf32>
    %528 = arith.addf %520, %527 : vector<8x256xf32>
    %c60 = arith.constant 60 : index
    %c0_218 = arith.constant 0 : index
    %c0_219 = arith.constant 0 : index
    %529 = vector.load %arg5[%c60, %c0_218, %c0_219] : memref<121x8x256xf32, #tpu.memory_space<vmem>>, vector<1x8x256xf32>
    %530 = vector.shape_cast %529 : vector<1x8x256xf32> to vector<8x256xf32>
    %531 = arith.mulf %530, %76 : vector<8x256xf32>
    %532 = arith.addf %524, %531 : vector<8x256xf32>
    %c61 = arith.constant 61 : index
    %c0_220 = arith.constant 0 : index
    %c0_221 = arith.constant 0 : index
    %533 = vector.load %arg5[%c61, %c0_220, %c0_221] : memref<121x8x256xf32, #tpu.memory_space<vmem>>, vector<1x8x256xf32>
    %534 = vector.shape_cast %533 : vector<1x8x256xf32> to vector<8x256xf32>
    %535 = arith.mulf %534, %162 : vector<8x256xf32>
    %536 = arith.addf %528, %535 : vector<8x256xf32>
    %c62 = arith.constant 62 : index
    %c0_222 = arith.constant 0 : index
    %c0_223 = arith.constant 0 : index
    %537 = vector.load %arg5[%c62, %c0_222, %c0_223] : memref<121x8x256xf32, #tpu.memory_space<vmem>>, vector<1x8x256xf32>
    %538 = vector.shape_cast %537 : vector<1x8x256xf32> to vector<8x256xf32>
    %539 = arith.mulf %538, %176 : vector<8x256xf32>
    %540 = arith.addf %532, %539 : vector<8x256xf32>
    %c63 = arith.constant 63 : index
    %c0_224 = arith.constant 0 : index
    %c0_225 = arith.constant 0 : index
    %541 = vector.load %arg5[%c63, %c0_224, %c0_225] : memref<121x8x256xf32, #tpu.memory_space<vmem>>, vector<1x8x256xf32>
    %542 = vector.shape_cast %541 : vector<1x8x256xf32> to vector<8x256xf32>
    %543 = arith.mulf %542, %190 : vector<8x256xf32>
    %544 = arith.addf %536, %543 : vector<8x256xf32>
    %c64 = arith.constant 64 : index
    %c0_226 = arith.constant 0 : index
    %c0_227 = arith.constant 0 : index
    %545 = vector.load %arg5[%c64, %c0_226, %c0_227] : memref<121x8x256xf32, #tpu.memory_space<vmem>>, vector<1x8x256xf32>
    %546 = vector.shape_cast %545 : vector<1x8x256xf32> to vector<8x256xf32>
    %547 = arith.mulf %546, %204 : vector<8x256xf32>
    %548 = arith.addf %540, %547 : vector<8x256xf32>
    %c65 = arith.constant 65 : index
    %c0_228 = arith.constant 0 : index
    %c0_229 = arith.constant 0 : index
    %549 = vector.load %arg5[%c65, %c0_228, %c0_229] : memref<121x8x256xf32, #tpu.memory_space<vmem>>, vector<1x8x256xf32>
    %550 = vector.shape_cast %549 : vector<1x8x256xf32> to vector<8x256xf32>
    %551 = arith.mulf %550, %218 : vector<8x256xf32>
    %552 = arith.addf %544, %551 : vector<8x256xf32>
    %553 = arith.addf %552, %548 : vector<8x256xf32>
    %554 = arith.addf %452, %553 : vector<8x256xf32>
    %c66 = arith.constant 66 : index
    %c0_230 = arith.constant 0 : index
    %c0_231 = arith.constant 0 : index
    %555 = vector.load %arg5[%c66, %c0_230, %c0_231] : memref<121x8x256xf32, #tpu.memory_space<vmem>>, vector<1x8x256xf32>
    %556 = vector.shape_cast %555 : vector<1x8x256xf32> to vector<8x256xf32>
    %557 = arith.mulf %556, %92 : vector<8x256xf32>
    %c67 = arith.constant 67 : index
    %c0_232 = arith.constant 0 : index
    %c0_233 = arith.constant 0 : index
    %558 = vector.load %arg5[%c67, %c0_232, %c0_233] : memref<121x8x256xf32, #tpu.memory_space<vmem>>, vector<1x8x256xf32>
    %559 = vector.shape_cast %558 : vector<1x8x256xf32> to vector<8x256xf32>
    %560 = arith.mulf %559, %106 : vector<8x256xf32>
    %c68 = arith.constant 68 : index
    %c0_234 = arith.constant 0 : index
    %c0_235 = arith.constant 0 : index
    %561 = vector.load %arg5[%c68, %c0_234, %c0_235] : memref<121x8x256xf32, #tpu.memory_space<vmem>>, vector<1x8x256xf32>
    %562 = vector.shape_cast %561 : vector<1x8x256xf32> to vector<8x256xf32>
    %563 = arith.mulf %562, %120 : vector<8x256xf32>
    %564 = arith.addf %557, %563 : vector<8x256xf32>
    %c69 = arith.constant 69 : index
    %c0_236 = arith.constant 0 : index
    %c0_237 = arith.constant 0 : index
    %565 = vector.load %arg5[%c69, %c0_236, %c0_237] : memref<121x8x256xf32, #tpu.memory_space<vmem>>, vector<1x8x256xf32>
    %566 = vector.shape_cast %565 : vector<1x8x256xf32> to vector<8x256xf32>
    %567 = arith.mulf %566, %134 : vector<8x256xf32>
    %568 = arith.addf %560, %567 : vector<8x256xf32>
    %c70 = arith.constant 70 : index
    %c0_238 = arith.constant 0 : index
    %c0_239 = arith.constant 0 : index
    %569 = vector.load %arg5[%c70, %c0_238, %c0_239] : memref<121x8x256xf32, #tpu.memory_space<vmem>>, vector<1x8x256xf32>
    %570 = vector.shape_cast %569 : vector<1x8x256xf32> to vector<8x256xf32>
    %571 = arith.mulf %570, %148 : vector<8x256xf32>
    %572 = arith.addf %564, %571 : vector<8x256xf32>
    %c71 = arith.constant 71 : index
    %c0_240 = arith.constant 0 : index
    %c0_241 = arith.constant 0 : index
    %573 = vector.load %arg5[%c71, %c0_240, %c0_241] : memref<121x8x256xf32, #tpu.memory_space<vmem>>, vector<1x8x256xf32>
    %574 = vector.shape_cast %573 : vector<1x8x256xf32> to vector<8x256xf32>
    %575 = arith.mulf %574, %76 : vector<8x256xf32>
    %576 = arith.addf %568, %575 : vector<8x256xf32>
    %c72 = arith.constant 72 : index
    %c0_242 = arith.constant 0 : index
    %c0_243 = arith.constant 0 : index
    %577 = vector.load %arg5[%c72, %c0_242, %c0_243] : memref<121x8x256xf32, #tpu.memory_space<vmem>>, vector<1x8x256xf32>
    %578 = vector.shape_cast %577 : vector<1x8x256xf32> to vector<8x256xf32>
    %579 = arith.mulf %578, %162 : vector<8x256xf32>
    %580 = arith.addf %572, %579 : vector<8x256xf32>
    %c73 = arith.constant 73 : index
    %c0_244 = arith.constant 0 : index
    %c0_245 = arith.constant 0 : index
    %581 = vector.load %arg5[%c73, %c0_244, %c0_245] : memref<121x8x256xf32, #tpu.memory_space<vmem>>, vector<1x8x256xf32>
    %582 = vector.shape_cast %581 : vector<1x8x256xf32> to vector<8x256xf32>
    %583 = arith.mulf %582, %176 : vector<8x256xf32>
    %584 = arith.addf %576, %583 : vector<8x256xf32>
    %c74 = arith.constant 74 : index
    %c0_246 = arith.constant 0 : index
    %c0_247 = arith.constant 0 : index
    %585 = vector.load %arg5[%c74, %c0_246, %c0_247] : memref<121x8x256xf32, #tpu.memory_space<vmem>>, vector<1x8x256xf32>
    %586 = vector.shape_cast %585 : vector<1x8x256xf32> to vector<8x256xf32>
    %587 = arith.mulf %586, %190 : vector<8x256xf32>
    %588 = arith.addf %580, %587 : vector<8x256xf32>
    %c75 = arith.constant 75 : index
    %c0_248 = arith.constant 0 : index
    %c0_249 = arith.constant 0 : index
    %589 = vector.load %arg5[%c75, %c0_248, %c0_249] : memref<121x8x256xf32, #tpu.memory_space<vmem>>, vector<1x8x256xf32>
    %590 = vector.shape_cast %589 : vector<1x8x256xf32> to vector<8x256xf32>
    %591 = arith.mulf %590, %204 : vector<8x256xf32>
    %592 = arith.addf %584, %591 : vector<8x256xf32>
    %c76 = arith.constant 76 : index
    %c0_250 = arith.constant 0 : index
    %c0_251 = arith.constant 0 : index
    %593 = vector.load %arg5[%c76, %c0_250, %c0_251] : memref<121x8x256xf32, #tpu.memory_space<vmem>>, vector<1x8x256xf32>
    %594 = vector.shape_cast %593 : vector<1x8x256xf32> to vector<8x256xf32>
    %595 = arith.mulf %594, %218 : vector<8x256xf32>
    %596 = arith.addf %588, %595 : vector<8x256xf32>
    %597 = arith.addf %596, %592 : vector<8x256xf32>
    %c240_i32 = arith.constant 240 : i32
    %598 = tpu.dynamic_rotate %597 by %c240_i32 dim 1 : vector<8x256xf32>, i32 -> vector<8x256xf32>
    %c1_i32_252 = arith.constant 1 : i32
    %599 = vector.broadcast %c1_i32_252 : i32 to vector<1x256xi32>
    %600 = arith.addi %77, %599 : vector<1x256xi32>
    %c0_i32_253 = arith.constant 0 : i32
    %601 = vector.broadcast %c0_i32_253 : i32 to vector<1x256xi32>
    %602 = arith.cmpi sge, %600, %601 : vector<1x256xi32>
    %c1_i32_254 = arith.constant 1 : i32
    %603 = vector.broadcast %c1_i32_254 : i32 to vector<1x256xi32>
    %604 = arith.addi %77, %603 : vector<1x256xi32>
    %c16_i32_255 = arith.constant 16 : i32
    %605 = vector.broadcast %c16_i32_255 : i32 to vector<1x256xi32>
    %606 = arith.cmpi slt, %604, %605 : vector<1x256xi32>
    %607 = arith.andi %602, %606 : vector<1x256xi1>
    %cst_256 = arith.constant 0.000000e+00 : f32
    %608 = vector.shape_cast %607 : vector<1x256xi1> to vector<1x256xi1>
    %609 = vector.broadcast %608 : vector<1x256xi1> to vector<8x256xi1>
    %610 = vector.broadcast %cst_256 : f32 to vector<8x256xf32>
    %611 = arith.select %609, %598, %610 : vector<8x256xi1>, vector<8x256xf32>
    %612 = arith.addf %510, %611 : vector<8x256xf32>
    %c77 = arith.constant 77 : index
    %c0_257 = arith.constant 0 : index
    %c0_258 = arith.constant 0 : index
    %613 = vector.load %arg5[%c77, %c0_257, %c0_258] : memref<121x8x256xf32, #tpu.memory_space<vmem>>, vector<1x8x256xf32>
    %614 = vector.shape_cast %613 : vector<1x8x256xf32> to vector<8x256xf32>
    %615 = arith.mulf %614, %92 : vector<8x256xf32>
    %c78 = arith.constant 78 : index
    %c0_259 = arith.constant 0 : index
    %c0_260 = arith.constant 0 : index
    %616 = vector.load %arg5[%c78, %c0_259, %c0_260] : memref<121x8x256xf32, #tpu.memory_space<vmem>>, vector<1x8x256xf32>
    %617 = vector.shape_cast %616 : vector<1x8x256xf32> to vector<8x256xf32>
    %618 = arith.mulf %617, %106 : vector<8x256xf32>
    %c79 = arith.constant 79 : index
    %c0_261 = arith.constant 0 : index
    %c0_262 = arith.constant 0 : index
    %619 = vector.load %arg5[%c79, %c0_261, %c0_262] : memref<121x8x256xf32, #tpu.memory_space<vmem>>, vector<1x8x256xf32>
    %620 = vector.shape_cast %619 : vector<1x8x256xf32> to vector<8x256xf32>
    %621 = arith.mulf %620, %120 : vector<8x256xf32>
    %622 = arith.addf %615, %621 : vector<8x256xf32>
    %c80 = arith.constant 80 : index
    %c0_263 = arith.constant 0 : index
    %c0_264 = arith.constant 0 : index
    %623 = vector.load %arg5[%c80, %c0_263, %c0_264] : memref<121x8x256xf32, #tpu.memory_space<vmem>>, vector<1x8x256xf32>
    %624 = vector.shape_cast %623 : vector<1x8x256xf32> to vector<8x256xf32>
    %625 = arith.mulf %624, %134 : vector<8x256xf32>
    %626 = arith.addf %618, %625 : vector<8x256xf32>
    %c81 = arith.constant 81 : index
    %c0_265 = arith.constant 0 : index
    %c0_266 = arith.constant 0 : index
    %627 = vector.load %arg5[%c81, %c0_265, %c0_266] : memref<121x8x256xf32, #tpu.memory_space<vmem>>, vector<1x8x256xf32>
    %628 = vector.shape_cast %627 : vector<1x8x256xf32> to vector<8x256xf32>
    %629 = arith.mulf %628, %148 : vector<8x256xf32>
    %630 = arith.addf %622, %629 : vector<8x256xf32>
    %c82 = arith.constant 82 : index
    %c0_267 = arith.constant 0 : index
    %c0_268 = arith.constant 0 : index
    %631 = vector.load %arg5[%c82, %c0_267, %c0_268] : memref<121x8x256xf32, #tpu.memory_space<vmem>>, vector<1x8x256xf32>
    %632 = vector.shape_cast %631 : vector<1x8x256xf32> to vector<8x256xf32>
    %633 = arith.mulf %632, %76 : vector<8x256xf32>
    %634 = arith.addf %626, %633 : vector<8x256xf32>
    %c83 = arith.constant 83 : index
    %c0_269 = arith.constant 0 : index
    %c0_270 = arith.constant 0 : index
    %635 = vector.load %arg5[%c83, %c0_269, %c0_270] : memref<121x8x256xf32, #tpu.memory_space<vmem>>, vector<1x8x256xf32>
    %636 = vector.shape_cast %635 : vector<1x8x256xf32> to vector<8x256xf32>
    %637 = arith.mulf %636, %162 : vector<8x256xf32>
    %638 = arith.addf %630, %637 : vector<8x256xf32>
    %c84 = arith.constant 84 : index
    %c0_271 = arith.constant 0 : index
    %c0_272 = arith.constant 0 : index
    %639 = vector.load %arg5[%c84, %c0_271, %c0_272] : memref<121x8x256xf32, #tpu.memory_space<vmem>>, vector<1x8x256xf32>
    %640 = vector.shape_cast %639 : vector<1x8x256xf32> to vector<8x256xf32>
    %641 = arith.mulf %640, %176 : vector<8x256xf32>
    %642 = arith.addf %634, %641 : vector<8x256xf32>
    %c85 = arith.constant 85 : index
    %c0_273 = arith.constant 0 : index
    %c0_274 = arith.constant 0 : index
    %643 = vector.load %arg5[%c85, %c0_273, %c0_274] : memref<121x8x256xf32, #tpu.memory_space<vmem>>, vector<1x8x256xf32>
    %644 = vector.shape_cast %643 : vector<1x8x256xf32> to vector<8x256xf32>
    %645 = arith.mulf %644, %190 : vector<8x256xf32>
    %646 = arith.addf %638, %645 : vector<8x256xf32>
    %c86 = arith.constant 86 : index
    %c0_275 = arith.constant 0 : index
    %c0_276 = arith.constant 0 : index
    %647 = vector.load %arg5[%c86, %c0_275, %c0_276] : memref<121x8x256xf32, #tpu.memory_space<vmem>>, vector<1x8x256xf32>
    %648 = vector.shape_cast %647 : vector<1x8x256xf32> to vector<8x256xf32>
    %649 = arith.mulf %648, %204 : vector<8x256xf32>
    %650 = arith.addf %642, %649 : vector<8x256xf32>
    %c87 = arith.constant 87 : index
    %c0_277 = arith.constant 0 : index
    %c0_278 = arith.constant 0 : index
    %651 = vector.load %arg5[%c87, %c0_277, %c0_278] : memref<121x8x256xf32, #tpu.memory_space<vmem>>, vector<1x8x256xf32>
    %652 = vector.shape_cast %651 : vector<1x8x256xf32> to vector<8x256xf32>
    %653 = arith.mulf %652, %218 : vector<8x256xf32>
    %654 = arith.addf %646, %653 : vector<8x256xf32>
    %655 = arith.addf %654, %650 : vector<8x256xf32>
    %c224_i32 = arith.constant 224 : i32
    %656 = tpu.dynamic_rotate %655 by %c224_i32 dim 1 : vector<8x256xf32>, i32 -> vector<8x256xf32>
    %c2_i32_279 = arith.constant 2 : i32
    %657 = vector.broadcast %c2_i32_279 : i32 to vector<1x256xi32>
    %658 = arith.addi %77, %657 : vector<1x256xi32>
    %c0_i32_280 = arith.constant 0 : i32
    %659 = vector.broadcast %c0_i32_280 : i32 to vector<1x256xi32>
    %660 = arith.cmpi sge, %658, %659 : vector<1x256xi32>
    %c2_i32_281 = arith.constant 2 : i32
    %661 = vector.broadcast %c2_i32_281 : i32 to vector<1x256xi32>
    %662 = arith.addi %77, %661 : vector<1x256xi32>
    %c16_i32_282 = arith.constant 16 : i32
    %663 = vector.broadcast %c16_i32_282 : i32 to vector<1x256xi32>
    %664 = arith.cmpi slt, %662, %663 : vector<1x256xi32>
    %665 = arith.andi %660, %664 : vector<1x256xi1>
    %cst_283 = arith.constant 0.000000e+00 : f32
    %666 = vector.shape_cast %665 : vector<1x256xi1> to vector<1x256xi1>
    %667 = vector.broadcast %666 : vector<1x256xi1> to vector<8x256xi1>
    %668 = vector.broadcast %cst_283 : f32 to vector<8x256xf32>
    %669 = arith.select %667, %656, %668 : vector<8x256xi1>, vector<8x256xf32>
    %670 = arith.addf %554, %669 : vector<8x256xf32>
    %c88 = arith.constant 88 : index
    %c0_284 = arith.constant 0 : index
    %c0_285 = arith.constant 0 : index
    %671 = vector.load %arg5[%c88, %c0_284, %c0_285] : memref<121x8x256xf32, #tpu.memory_space<vmem>>, vector<1x8x256xf32>
    %672 = vector.shape_cast %671 : vector<1x8x256xf32> to vector<8x256xf32>
    %673 = arith.mulf %672, %92 : vector<8x256xf32>
    %c89 = arith.constant 89 : index
    %c0_286 = arith.constant 0 : index
    %c0_287 = arith.constant 0 : index
    %674 = vector.load %arg5[%c89, %c0_286, %c0_287] : memref<121x8x256xf32, #tpu.memory_space<vmem>>, vector<1x8x256xf32>
    %675 = vector.shape_cast %674 : vector<1x8x256xf32> to vector<8x256xf32>
    %676 = arith.mulf %675, %106 : vector<8x256xf32>
    %c90 = arith.constant 90 : index
    %c0_288 = arith.constant 0 : index
    %c0_289 = arith.constant 0 : index
    %677 = vector.load %arg5[%c90, %c0_288, %c0_289] : memref<121x8x256xf32, #tpu.memory_space<vmem>>, vector<1x8x256xf32>
    %678 = vector.shape_cast %677 : vector<1x8x256xf32> to vector<8x256xf32>
    %679 = arith.mulf %678, %120 : vector<8x256xf32>
    %680 = arith.addf %673, %679 : vector<8x256xf32>
    %c91 = arith.constant 91 : index
    %c0_290 = arith.constant 0 : index
    %c0_291 = arith.constant 0 : index
    %681 = vector.load %arg5[%c91, %c0_290, %c0_291] : memref<121x8x256xf32, #tpu.memory_space<vmem>>, vector<1x8x256xf32>
    %682 = vector.shape_cast %681 : vector<1x8x256xf32> to vector<8x256xf32>
    %683 = arith.mulf %682, %134 : vector<8x256xf32>
    %684 = arith.addf %676, %683 : vector<8x256xf32>
    %c92 = arith.constant 92 : index
    %c0_292 = arith.constant 0 : index
    %c0_293 = arith.constant 0 : index
    %685 = vector.load %arg5[%c92, %c0_292, %c0_293] : memref<121x8x256xf32, #tpu.memory_space<vmem>>, vector<1x8x256xf32>
    %686 = vector.shape_cast %685 : vector<1x8x256xf32> to vector<8x256xf32>
    %687 = arith.mulf %686, %148 : vector<8x256xf32>
    %688 = arith.addf %680, %687 : vector<8x256xf32>
    %c93 = arith.constant 93 : index
    %c0_294 = arith.constant 0 : index
    %c0_295 = arith.constant 0 : index
    %689 = vector.load %arg5[%c93, %c0_294, %c0_295] : memref<121x8x256xf32, #tpu.memory_space<vmem>>, vector<1x8x256xf32>
    %690 = vector.shape_cast %689 : vector<1x8x256xf32> to vector<8x256xf32>
    %691 = arith.mulf %690, %76 : vector<8x256xf32>
    %692 = arith.addf %684, %691 : vector<8x256xf32>
    %c94 = arith.constant 94 : index
    %c0_296 = arith.constant 0 : index
    %c0_297 = arith.constant 0 : index
    %693 = vector.load %arg5[%c94, %c0_296, %c0_297] : memref<121x8x256xf32, #tpu.memory_space<vmem>>, vector<1x8x256xf32>
    %694 = vector.shape_cast %693 : vector<1x8x256xf32> to vector<8x256xf32>
    %695 = arith.mulf %694, %162 : vector<8x256xf32>
    %696 = arith.addf %688, %695 : vector<8x256xf32>
    %c95 = arith.constant 95 : index
    %c0_298 = arith.constant 0 : index
    %c0_299 = arith.constant 0 : index
    %697 = vector.load %arg5[%c95, %c0_298, %c0_299] : memref<121x8x256xf32, #tpu.memory_space<vmem>>, vector<1x8x256xf32>
    %698 = vector.shape_cast %697 : vector<1x8x256xf32> to vector<8x256xf32>
    %699 = arith.mulf %698, %176 : vector<8x256xf32>
    %700 = arith.addf %692, %699 : vector<8x256xf32>
    %c96 = arith.constant 96 : index
    %c0_300 = arith.constant 0 : index
    %c0_301 = arith.constant 0 : index
    %701 = vector.load %arg5[%c96, %c0_300, %c0_301] : memref<121x8x256xf32, #tpu.memory_space<vmem>>, vector<1x8x256xf32>
    %702 = vector.shape_cast %701 : vector<1x8x256xf32> to vector<8x256xf32>
    %703 = arith.mulf %702, %190 : vector<8x256xf32>
    %704 = arith.addf %696, %703 : vector<8x256xf32>
    %c97 = arith.constant 97 : index
    %c0_302 = arith.constant 0 : index
    %c0_303 = arith.constant 0 : index
    %705 = vector.load %arg5[%c97, %c0_302, %c0_303] : memref<121x8x256xf32, #tpu.memory_space<vmem>>, vector<1x8x256xf32>
    %706 = vector.shape_cast %705 : vector<1x8x256xf32> to vector<8x256xf32>
    %707 = arith.mulf %706, %204 : vector<8x256xf32>
    %708 = arith.addf %700, %707 : vector<8x256xf32>
    %c98 = arith.constant 98 : index
    %c0_304 = arith.constant 0 : index
    %c0_305 = arith.constant 0 : index
    %709 = vector.load %arg5[%c98, %c0_304, %c0_305] : memref<121x8x256xf32, #tpu.memory_space<vmem>>, vector<1x8x256xf32>
    %710 = vector.shape_cast %709 : vector<1x8x256xf32> to vector<8x256xf32>
    %711 = arith.mulf %710, %218 : vector<8x256xf32>
    %712 = arith.addf %704, %711 : vector<8x256xf32>
    %713 = arith.addf %712, %708 : vector<8x256xf32>
    %c208_i32 = arith.constant 208 : i32
    %714 = tpu.dynamic_rotate %713 by %c208_i32 dim 1 : vector<8x256xf32>, i32 -> vector<8x256xf32>
    %c3_i32_306 = arith.constant 3 : i32
    %715 = vector.broadcast %c3_i32_306 : i32 to vector<1x256xi32>
    %716 = arith.addi %77, %715 : vector<1x256xi32>
    %c0_i32_307 = arith.constant 0 : i32
    %717 = vector.broadcast %c0_i32_307 : i32 to vector<1x256xi32>
    %718 = arith.cmpi sge, %716, %717 : vector<1x256xi32>
    %c3_i32_308 = arith.constant 3 : i32
    %719 = vector.broadcast %c3_i32_308 : i32 to vector<1x256xi32>
    %720 = arith.addi %77, %719 : vector<1x256xi32>
    %c16_i32_309 = arith.constant 16 : i32
    %721 = vector.broadcast %c16_i32_309 : i32 to vector<1x256xi32>
    %722 = arith.cmpi slt, %720, %721 : vector<1x256xi32>
    %723 = arith.andi %718, %722 : vector<1x256xi1>
    %cst_310 = arith.constant 0.000000e+00 : f32
    %724 = vector.shape_cast %723 : vector<1x256xi1> to vector<1x256xi1>
    %725 = vector.broadcast %724 : vector<1x256xi1> to vector<8x256xi1>
    %726 = vector.broadcast %cst_310 : f32 to vector<8x256xf32>
    %727 = arith.select %725, %714, %726 : vector<8x256xi1>, vector<8x256xf32>
    %728 = arith.addf %612, %727 : vector<8x256xf32>
    %c99 = arith.constant 99 : index
    %c0_311 = arith.constant 0 : index
    %c0_312 = arith.constant 0 : index
    %729 = vector.load %arg5[%c99, %c0_311, %c0_312] : memref<121x8x256xf32, #tpu.memory_space<vmem>>, vector<1x8x256xf32>
    %730 = vector.shape_cast %729 : vector<1x8x256xf32> to vector<8x256xf32>
    %731 = arith.mulf %730, %92 : vector<8x256xf32>
    %c100 = arith.constant 100 : index
    %c0_313 = arith.constant 0 : index
    %c0_314 = arith.constant 0 : index
    %732 = vector.load %arg5[%c100, %c0_313, %c0_314] : memref<121x8x256xf32, #tpu.memory_space<vmem>>, vector<1x8x256xf32>
    %733 = vector.shape_cast %732 : vector<1x8x256xf32> to vector<8x256xf32>
    %734 = arith.mulf %733, %106 : vector<8x256xf32>
    %c101 = arith.constant 101 : index
    %c0_315 = arith.constant 0 : index
    %c0_316 = arith.constant 0 : index
    %735 = vector.load %arg5[%c101, %c0_315, %c0_316] : memref<121x8x256xf32, #tpu.memory_space<vmem>>, vector<1x8x256xf32>
    %736 = vector.shape_cast %735 : vector<1x8x256xf32> to vector<8x256xf32>
    %737 = arith.mulf %736, %120 : vector<8x256xf32>
    %738 = arith.addf %731, %737 : vector<8x256xf32>
    %c102 = arith.constant 102 : index
    %c0_317 = arith.constant 0 : index
    %c0_318 = arith.constant 0 : index
    %739 = vector.load %arg5[%c102, %c0_317, %c0_318] : memref<121x8x256xf32, #tpu.memory_space<vmem>>, vector<1x8x256xf32>
    %740 = vector.shape_cast %739 : vector<1x8x256xf32> to vector<8x256xf32>
    %741 = arith.mulf %740, %134 : vector<8x256xf32>
    %742 = arith.addf %734, %741 : vector<8x256xf32>
    %c103 = arith.constant 103 : index
    %c0_319 = arith.constant 0 : index
    %c0_320 = arith.constant 0 : index
    %743 = vector.load %arg5[%c103, %c0_319, %c0_320] : memref<121x8x256xf32, #tpu.memory_space<vmem>>, vector<1x8x256xf32>
    %744 = vector.shape_cast %743 : vector<1x8x256xf32> to vector<8x256xf32>
    %745 = arith.mulf %744, %148 : vector<8x256xf32>
    %746 = arith.addf %738, %745 : vector<8x256xf32>
    %c104 = arith.constant 104 : index
    %c0_321 = arith.constant 0 : index
    %c0_322 = arith.constant 0 : index
    %747 = vector.load %arg5[%c104, %c0_321, %c0_322] : memref<121x8x256xf32, #tpu.memory_space<vmem>>, vector<1x8x256xf32>
    %748 = vector.shape_cast %747 : vector<1x8x256xf32> to vector<8x256xf32>
    %749 = arith.mulf %748, %76 : vector<8x256xf32>
    %750 = arith.addf %742, %749 : vector<8x256xf32>
    %c105 = arith.constant 105 : index
    %c0_323 = arith.constant 0 : index
    %c0_324 = arith.constant 0 : index
    %751 = vector.load %arg5[%c105, %c0_323, %c0_324] : memref<121x8x256xf32, #tpu.memory_space<vmem>>, vector<1x8x256xf32>
    %752 = vector.shape_cast %751 : vector<1x8x256xf32> to vector<8x256xf32>
    %753 = arith.mulf %752, %162 : vector<8x256xf32>
    %754 = arith.addf %746, %753 : vector<8x256xf32>
    %c106 = arith.constant 106 : index
    %c0_325 = arith.constant 0 : index
    %c0_326 = arith.constant 0 : index
    %755 = vector.load %arg5[%c106, %c0_325, %c0_326] : memref<121x8x256xf32, #tpu.memory_space<vmem>>, vector<1x8x256xf32>
    %756 = vector.shape_cast %755 : vector<1x8x256xf32> to vector<8x256xf32>
    %757 = arith.mulf %756, %176 : vector<8x256xf32>
    %758 = arith.addf %750, %757 : vector<8x256xf32>
    %c107 = arith.constant 107 : index
    %c0_327 = arith.constant 0 : index
    %c0_328 = arith.constant 0 : index
    %759 = vector.load %arg5[%c107, %c0_327, %c0_328] : memref<121x8x256xf32, #tpu.memory_space<vmem>>, vector<1x8x256xf32>
    %760 = vector.shape_cast %759 : vector<1x8x256xf32> to vector<8x256xf32>
    %761 = arith.mulf %760, %190 : vector<8x256xf32>
    %762 = arith.addf %754, %761 : vector<8x256xf32>
    %c108 = arith.constant 108 : index
    %c0_329 = arith.constant 0 : index
    %c0_330 = arith.constant 0 : index
    %763 = vector.load %arg5[%c108, %c0_329, %c0_330] : memref<121x8x256xf32, #tpu.memory_space<vmem>>, vector<1x8x256xf32>
    %764 = vector.shape_cast %763 : vector<1x8x256xf32> to vector<8x256xf32>
    %765 = arith.mulf %764, %204 : vector<8x256xf32>
    %766 = arith.addf %758, %765 : vector<8x256xf32>
    %c109 = arith.constant 109 : index
    %c0_331 = arith.constant 0 : index
    %c0_332 = arith.constant 0 : index
    %767 = vector.load %arg5[%c109, %c0_331, %c0_332] : memref<121x8x256xf32, #tpu.memory_space<vmem>>, vector<1x8x256xf32>
    %768 = vector.shape_cast %767 : vector<1x8x256xf32> to vector<8x256xf32>
    %769 = arith.mulf %768, %218 : vector<8x256xf32>
    %770 = arith.addf %762, %769 : vector<8x256xf32>
    %771 = arith.addf %770, %766 : vector<8x256xf32>
    %c192_i32 = arith.constant 192 : i32
    %772 = tpu.dynamic_rotate %771 by %c192_i32 dim 1 : vector<8x256xf32>, i32 -> vector<8x256xf32>
    %c4_i32_333 = arith.constant 4 : i32
    %773 = vector.broadcast %c4_i32_333 : i32 to vector<1x256xi32>
    %774 = arith.addi %77, %773 : vector<1x256xi32>
    %c0_i32_334 = arith.constant 0 : i32
    %775 = vector.broadcast %c0_i32_334 : i32 to vector<1x256xi32>
    %776 = arith.cmpi sge, %774, %775 : vector<1x256xi32>
    %c4_i32_335 = arith.constant 4 : i32
    %777 = vector.broadcast %c4_i32_335 : i32 to vector<1x256xi32>
    %778 = arith.addi %77, %777 : vector<1x256xi32>
    %c16_i32_336 = arith.constant 16 : i32
    %779 = vector.broadcast %c16_i32_336 : i32 to vector<1x256xi32>
    %780 = arith.cmpi slt, %778, %779 : vector<1x256xi32>
    %781 = arith.andi %776, %780 : vector<1x256xi1>
    %cst_337 = arith.constant 0.000000e+00 : f32
    %782 = vector.shape_cast %781 : vector<1x256xi1> to vector<1x256xi1>
    %783 = vector.broadcast %782 : vector<1x256xi1> to vector<8x256xi1>
    %784 = vector.broadcast %cst_337 : f32 to vector<8x256xf32>
    %785 = arith.select %783, %772, %784 : vector<8x256xi1>, vector<8x256xf32>
    %786 = arith.addf %670, %785 : vector<8x256xf32>
    %c110 = arith.constant 110 : index
    %c0_338 = arith.constant 0 : index
    %c0_339 = arith.constant 0 : index
    %787 = vector.load %arg5[%c110, %c0_338, %c0_339] : memref<121x8x256xf32, #tpu.memory_space<vmem>>, vector<1x8x256xf32>
    %788 = vector.shape_cast %787 : vector<1x8x256xf32> to vector<8x256xf32>
    %789 = arith.mulf %788, %92 : vector<8x256xf32>
    %c111 = arith.constant 111 : index
    %c0_340 = arith.constant 0 : index
    %c0_341 = arith.constant 0 : index
    %790 = vector.load %arg5[%c111, %c0_340, %c0_341] : memref<121x8x256xf32, #tpu.memory_space<vmem>>, vector<1x8x256xf32>
    %791 = vector.shape_cast %790 : vector<1x8x256xf32> to vector<8x256xf32>
    %792 = arith.mulf %791, %106 : vector<8x256xf32>
    %c112 = arith.constant 112 : index
    %c0_342 = arith.constant 0 : index
    %c0_343 = arith.constant 0 : index
    %793 = vector.load %arg5[%c112, %c0_342, %c0_343] : memref<121x8x256xf32, #tpu.memory_space<vmem>>, vector<1x8x256xf32>
    %794 = vector.shape_cast %793 : vector<1x8x256xf32> to vector<8x256xf32>
    %795 = arith.mulf %794, %120 : vector<8x256xf32>
    %796 = arith.addf %789, %795 : vector<8x256xf32>
    %c113 = arith.constant 113 : index
    %c0_344 = arith.constant 0 : index
    %c0_345 = arith.constant 0 : index
    %797 = vector.load %arg5[%c113, %c0_344, %c0_345] : memref<121x8x256xf32, #tpu.memory_space<vmem>>, vector<1x8x256xf32>
    %798 = vector.shape_cast %797 : vector<1x8x256xf32> to vector<8x256xf32>
    %799 = arith.mulf %798, %134 : vector<8x256xf32>
    %800 = arith.addf %792, %799 : vector<8x256xf32>
    %c114 = arith.constant 114 : index
    %c0_346 = arith.constant 0 : index
    %c0_347 = arith.constant 0 : index
    %801 = vector.load %arg5[%c114, %c0_346, %c0_347] : memref<121x8x256xf32, #tpu.memory_space<vmem>>, vector<1x8x256xf32>
    %802 = vector.shape_cast %801 : vector<1x8x256xf32> to vector<8x256xf32>
    %803 = arith.mulf %802, %148 : vector<8x256xf32>
    %804 = arith.addf %796, %803 : vector<8x256xf32>
    %c115 = arith.constant 115 : index
    %c0_348 = arith.constant 0 : index
    %c0_349 = arith.constant 0 : index
    %805 = vector.load %arg5[%c115, %c0_348, %c0_349] : memref<121x8x256xf32, #tpu.memory_space<vmem>>, vector<1x8x256xf32>
    %806 = vector.shape_cast %805 : vector<1x8x256xf32> to vector<8x256xf32>
    %807 = arith.mulf %806, %76 : vector<8x256xf32>
    %808 = arith.addf %800, %807 : vector<8x256xf32>
    %c116 = arith.constant 116 : index
    %c0_350 = arith.constant 0 : index
    %c0_351 = arith.constant 0 : index
    %809 = vector.load %arg5[%c116, %c0_350, %c0_351] : memref<121x8x256xf32, #tpu.memory_space<vmem>>, vector<1x8x256xf32>
    %810 = vector.shape_cast %809 : vector<1x8x256xf32> to vector<8x256xf32>
    %811 = arith.mulf %810, %162 : vector<8x256xf32>
    %812 = arith.addf %804, %811 : vector<8x256xf32>
    %c117 = arith.constant 117 : index
    %c0_352 = arith.constant 0 : index
    %c0_353 = arith.constant 0 : index
    %813 = vector.load %arg5[%c117, %c0_352, %c0_353] : memref<121x8x256xf32, #tpu.memory_space<vmem>>, vector<1x8x256xf32>
    %814 = vector.shape_cast %813 : vector<1x8x256xf32> to vector<8x256xf32>
    %815 = arith.mulf %814, %176 : vector<8x256xf32>
    %816 = arith.addf %808, %815 : vector<8x256xf32>
    %c118 = arith.constant 118 : index
    %c0_354 = arith.constant 0 : index
    %c0_355 = arith.constant 0 : index
    %817 = vector.load %arg5[%c118, %c0_354, %c0_355] : memref<121x8x256xf32, #tpu.memory_space<vmem>>, vector<1x8x256xf32>
    %818 = vector.shape_cast %817 : vector<1x8x256xf32> to vector<8x256xf32>
    %819 = arith.mulf %818, %190 : vector<8x256xf32>
    %820 = arith.addf %812, %819 : vector<8x256xf32>
    %c119 = arith.constant 119 : index
    %c0_356 = arith.constant 0 : index
    %c0_357 = arith.constant 0 : index
    %821 = vector.load %arg5[%c119, %c0_356, %c0_357] : memref<121x8x256xf32, #tpu.memory_space<vmem>>, vector<1x8x256xf32>
    %822 = vector.shape_cast %821 : vector<1x8x256xf32> to vector<8x256xf32>
    %823 = arith.mulf %822, %204 : vector<8x256xf32>
    %824 = arith.addf %816, %823 : vector<8x256xf32>
    %c120 = arith.constant 120 : index
    %c0_358 = arith.constant 0 : index
    %c0_359 = arith.constant 0 : index
    %825 = vector.load %arg5[%c120, %c0_358, %c0_359] : memref<121x8x256xf32, #tpu.memory_space<vmem>>, vector<1x8x256xf32>
    %826 = vector.shape_cast %825 : vector<1x8x256xf32> to vector<8x256xf32>
    %827 = arith.mulf %826, %218 : vector<8x256xf32>
    %828 = arith.addf %820, %827 : vector<8x256xf32>
    %829 = arith.addf %828, %824 : vector<8x256xf32>
    %c176_i32 = arith.constant 176 : i32
    %830 = tpu.dynamic_rotate %829 by %c176_i32 dim 1 : vector<8x256xf32>, i32 -> vector<8x256xf32>
    %c5_i32_360 = arith.constant 5 : i32
    %831 = vector.broadcast %c5_i32_360 : i32 to vector<1x256xi32>
    %832 = arith.addi %77, %831 : vector<1x256xi32>
    %c0_i32_361 = arith.constant 0 : i32
    %833 = vector.broadcast %c0_i32_361 : i32 to vector<1x256xi32>
    %834 = arith.cmpi sge, %832, %833 : vector<1x256xi32>
    %c5_i32_362 = arith.constant 5 : i32
    %835 = vector.broadcast %c5_i32_362 : i32 to vector<1x256xi32>
    %836 = arith.addi %77, %835 : vector<1x256xi32>
    %c16_i32_363 = arith.constant 16 : i32
    %837 = vector.broadcast %c16_i32_363 : i32 to vector<1x256xi32>
    %838 = arith.cmpi slt, %836, %837 : vector<1x256xi32>
    %839 = arith.andi %834, %838 : vector<1x256xi1>
    %cst_364 = arith.constant 0.000000e+00 : f32
    %840 = vector.shape_cast %839 : vector<1x256xi1> to vector<1x256xi1>
    %841 = vector.broadcast %840 : vector<1x256xi1> to vector<8x256xi1>
    %842 = vector.broadcast %cst_364 : f32 to vector<8x256xf32>
    %843 = arith.select %841, %830, %842 : vector<8x256xi1>, vector<8x256xf32>
    %844 = arith.addf %728, %843 : vector<8x256xf32>
    %845 = arith.addf %844, %786 : vector<8x256xf32>
    %cst_365 = arith.constant dense<0.000000e+00> : vector<8xf32>
    %846 = vector.multi_reduction <add>, %845, %cst_365 [1] : vector<8x256xf32> to vector<8xf32>
    %847 = vector.shape_cast %846 : vector<8xf32> to vector<8x1xf32>
    %cst_366 = arith.constant 3.906250e-03 : f32
    %848 = vector.broadcast %cst_366 : f32 to vector<8x1xf32>
    %849 = arith.mulf %847, %848 : vector<8x1xf32>
    %850 = vector.broadcast %849 : vector<8x1xf32> to vector<8x256xf32>
    %851 = arith.subf %845, %850 : vector<8x256xf32>
    %852 = arith.mulf %851, %851 : vector<8x256xf32>
    %cst_367 = arith.constant dense<0.000000e+00> : vector<8xf32>
    %853 = vector.multi_reduction <add>, %852, %cst_367 [1] : vector<8x256xf32> to vector<8xf32>
    %854 = vector.shape_cast %853 : vector<8xf32> to vector<8x1xf32>
    %cst_368 = arith.constant 3.906250e-03 : f32
    %855 = vector.broadcast %cst_368 : f32 to vector<8x1xf32>
    %856 = arith.mulf %854, %855 : vector<8x1xf32>
    %cst_369 = arith.constant 9.99999974E-6 : f32
    %857 = vector.broadcast %cst_369 : f32 to vector<8x1xf32>
    %858 = arith.addf %856, %857 : vector<8x1xf32>
    %859 = math.rsqrt %858 : vector<8x1xf32>
    %860 = vector.broadcast %859 : vector<8x1xf32> to vector<8x256xf32>
    %861 = arith.mulf %851, %860 : vector<8x256xf32>
    %c0_370 = arith.constant 0 : index
    %c0_371 = arith.constant 0 : index
    %862 = vector.load %arg6[%c0_370, %c0_371] : memref<8x1xf32, #tpu.memory_space<vmem>>, vector<8x1xf32>
    %863 = vector.broadcast %862 : vector<8x1xf32> to vector<8x256xf32>
    %864 = arith.mulf %861, %863 : vector<8x256xf32>
    %c0_372 = arith.constant 0 : index
    %c0_373 = arith.constant 0 : index
    %865 = vector.load %arg7[%c0_372, %c0_373] : memref<8x1xf32, #tpu.memory_space<vmem>>, vector<8x1xf32>
    %866 = vector.broadcast %865 : vector<8x1xf32> to vector<8x256xf32>
    %867 = arith.addf %864, %866 : vector<8x256xf32>
    %868 = vector.shape_cast %867 : vector<8x256xf32> to vector<1x8x256xf32>
    %cst_374 = arith.constant dense<0.000000e+00> : vector<1xf32>
    %869 = vector.multi_reduction <add>, %868, %cst_374 [1, 2] : vector<1x8x256xf32> to vector<1xf32>
    %870 = vector.shape_cast %869 : vector<1xf32> to vector<1x1x1xf32>
    %871 = vector.extract %870[0, 0, 0] : f32 from vector<1x1x1xf32>
    %cst_375 = arith.constant 2.048000e+03 : f32
    %872 = arith.divf %871, %cst_375 : f32
    %873 = vector.broadcast %872 : f32 to vector<8x256xf32>
    %874 = arith.subf %867, %873 : vector<8x256xf32>
    %875 = arith.mulf %874, %874 : vector<8x256xf32>
    %876 = vector.shape_cast %875 : vector<8x256xf32> to vector<1x8x256xf32>
    %cst_376 = arith.constant dense<0.000000e+00> : vector<1xf32>
    %877 = vector.multi_reduction <add>, %876, %cst_376 [1, 2] : vector<1x8x256xf32> to vector<1xf32>
    %878 = vector.shape_cast %877 : vector<1xf32> to vector<1x1x1xf32>
    %879 = vector.extract %878[0, 0, 0] : f32 from vector<1x1x1xf32>
    %cst_377 = arith.constant 2.048000e+03 : f32
    %880 = arith.divf %879, %cst_377 : f32
    %cst_378 = arith.constant 9.99999974E-6 : f32
    %881 = arith.addf %880, %cst_378 : f32
    %882 = math.rsqrt %881 : f32
    %883 = vector.broadcast %882 : f32 to vector<8x256xf32>
    %884 = arith.mulf %874, %883 : vector<8x256xf32>
    %c0_379 = arith.constant 0 : index
    %c0_380 = arith.constant 0 : index
    %c0_381 = arith.constant 0 : index
    %885 = vector.load %arg9[%c0_379, %c0_380, %c0_381] : memref<1x12x256xf32, #tpu.memory_space<vmem>>, vector<1x8x256xf32>
    %886 = vector.shape_cast %885 : vector<1x8x256xf32> to vector<8x256xf32>
    %887 = vector.shape_cast %884 : vector<8x256xf32> to vector<1x8x256xf32>
    tpu.vector_store %arg9[%c0_379, %c0_380, %c0_381], %887 {strides = array<i32>} : memref<1x12x256xf32, #tpu.memory_space<vmem>>, vector<1x8x256xf32>,
    return
  }
  func.func @transform_0(%arg0: i32) -> (i32, i32, i32) {
    %c0_i32 = arith.constant 0 : i32
    %c0_i32_0 = arith.constant 0 : i32
    %c0_i32_1 = arith.constant 0 : i32
    return %arg0, %c0_i32, %c0_i32_0 : i32, i32, i32
  }
  func.func @transform_1(%arg0: i32) -> (i32, i32) {
    %c0_i32 = arith.constant 0 : i32
    %c0_i32_0 = arith.constant 0 : i32
    %c0_i32_1 = arith.constant 0 : i32
    return %c0_i32, %c0_i32_0 : i32, i32
  }
  func.func @transform_2(%arg0: i32) -> (i32, i32) {
    %c0_i32 = arith.constant 0 : i32
    %c0_i32_0 = arith.constant 0 : i32
    %c0_i32_1 = arith.constant 0 : i32
    return %c0_i32, %c0_i32_0 : i32, i32
  }
  func.func @transform_3(%arg0: i32) -> (i32, i32) {
    %c0_i32 = arith.constant 0 : i32
    %c0_i32_0 = arith.constant 0 : i32
    %c0_i32_1 = arith.constant 0 : i32
    return %c0_i32, %c0_i32_0 : i32, i32
  }
  func.func @transform_4(%arg0: i32) -> (i32, i32, i32) {
    %c0_i32 = arith.constant 0 : i32
    %c0_i32_0 = arith.constant 0 : i32
    %c0_i32_1 = arith.constant 0 : i32
    %c0_i32_2 = arith.constant 0 : i32
    return %c0_i32, %c0_i32_0, %c0_i32_1 : i32, i32, i32
  }
  func.func @transform_5(%arg0: i32) -> (i32, i32) {
    %c0_i32 = arith.constant 0 : i32
    %c0_i32_0 = arith.constant 0 : i32
    %c0_i32_1 = arith.constant 0 : i32
    return %c0_i32, %c0_i32_0 : i32, i32
  }
  func.func @transform_6(%arg0: i32) -> (i32, i32) {
    %c0_i32 = arith.constant 0 : i32
    %c0_i32_0 = arith.constant 0 : i32
    %c0_i32_1 = arith.constant 0 : i32
    return %c0_i32, %c0_i32_0 : i32, i32
  }
  func.func @transform_7(%arg0: i32) -> (i32, i32) {
    %c0_i32 = arith.constant 0 : i32
    %c0_i32_0 = arith.constant 0 : i32
    %c0_i32_1 = arith.constant 0 : i32
    return %c0_i32, %c0_i32_0 : i32, i32
  }
  func.func @transform_8(%arg0: i32) -> (i32, i32, i32) {
    %c0_i32 = arith.constant 0 : i32
    %c0_i32_0 = arith.constant 0 : i32
    %c0_i32_1 = arith.constant 0 : i32
    return %arg0, %c0_i32, %c0_i32_0 : i32, i32, i32
  }
}

</mosaic_0001>

<bundles_post_ra>
// kernel: tpu_custom_call.1
= control target key start
LH: loop header
LB: loop body
LE: loop exit
PB: predicated region body
PF: predicated region fallthrough
CT: control target
= control target key end

     0   :  { %13 = vsyncpa [#allocation3], 0  ;;  %s2212_s27 = smov 0   ;;  %s3425_s0 = inlined_call_operand.vmem [shape: f32[2,4,256], index: 0, kind: input, shape index: {}]   ;;  %s3426_s1 = inlined_call_operand.vmem [shape: f32[8,4], index: 1, kind: input, shape index: {}]   ;;  %s3427_s2 = inlined_call_operand.vmem [shape: f32[8,1], index: 2, kind: input, shape index: {}]   ;;  %s3428_s3 = inlined_call_operand.vmem [shape: f32[8,1], index: 3, kind: input, shape index: {}]   ;;  %s3429_s4 = inlined_call_operand.hbm [shape: f32[121,8,256], index: 4, kind: input, shape index: {}]   ;;  %s3430_s5 = inlined_call_operand.vmem [shape: f32[8,1], index: 5, kind: input, shape index: {}]   ;;  %s3431_s6 = inlined_call_operand.vmem [shape: f32[8,1], index: 6, kind: input, shape index: {}]   ;;  %s3432_s7 = inlined_call_operand.vmem [shape: s32[2,256], index: 7, kind: input, shape index: {}]   ;;  %s3433_s8 = inlined_call_operand.vmem [shape: f32[2,12,256], index: 8, kind: output, shape index: {}]  }
   0x1 LB: > { %s2012_s28 = sadd.s32 4294967295, %s2141_s27   ;;  %p2014_p0 = scmp.ge.s32.totalorder %s2141_s27, 1  ;;  %s2141_s27 = sphi %s2212_s27, %s19_s27  }
   0x2   : > { %p223_p1 = scmp.lt.s32.totalorder %s2141_s27, 3  ;;  %s2143_s29 = smov [#allocation2]  }
   0x3   : > { %s244_s30 = sshll.u32 %s2143_s29, 4  ;;  %p2048_p3 = scmp.eq.s32.totalorder %s2012_s28, 0  ;;  %s245_s30 = int_to_ptr.vmem [resolvable:$true] %s244_s30 }
   0x4   : > { %p2220_p2 = pnand %p2014_p0, %p223_p1  ;;  %s2116_s10 = scalar_lea.vmem %s245_s30, 30976 }
   0x5   : > { %p2117_p7 = scmp.ne.s32.totalorder %s245_s30, %s2116_s10  ;;  %p2124_p10 = scmp.lt.s32.totalorder %s245_s30, %s245_s30 }
   0x6   : > { %p2044_p4 = pneg %p2220_p2  ;;  %p2125_p11 = scmp.lt.s32.totalorder %s2116_s10, %s2116_s10 }
   0x8   : > { %p2045_p5 = pnand %p2048_p3, %p2044_p4  ;;  %p2126_p12 = por %p2125_p11, %p2124_p10 }
   0xa   : > { %p2107_p6 = pneg %p2045_p5 }
   0xc   : > { %p2119_p8 = pnand %p2117_p7, %p2107_p6 }
   0xe   : > { %p2120_p9 = pneg %p2119_p8 }
  0x10   : > { %p2127_p13 = pnand %p2126_p12, %p2120_p9 }
  0x12   : > { %2130 = shalt.err (!%p2127_p13)
}
  0x13   : > { %s2144_s11 = smov 256   ;;  %s2145_s12 = smov 16  }
  0x14   : > { %2047 = dma.hbm_to_vmem [thread:$0]  (!%p2045_p5), %s3429_s4, 30976, %s245_s30, [#allocation3], %s2144_s11, %s2144_s11, %s2145_s12  }
  0x15   : > { %277 = sbr.rel (%p2220_p2) target bundleno = 2061 (0x80d), region = 52 }
  0x1a   : > { %2136 = dma.done.wait (%p2048_p3), [#allocation3], 30976  }
  0x1b   : > { %2138 = vsyncadd (%p2048_p3), [#allocation3], 4294936320  ;;  %p311_p0 = scmp.lt.s32.totalorder %s2012_s28, 1  ;;  %vm325_vm0 = vcmask 1043456   ;;  %v3434_v19 = vmov 0   ;;  %v373_v20 = vld [vmem:[%s3426_s1] sm:$0xff]  ;;  %v379_v33 = vlaneseq }
  0x1c   : > { %2082 = vset.pattern.permute.xlu1 %v3434_v19  ;;  %v2147_v21 = vmov 1   ;;  %v2148_v22 = vmov 2   ;;  %v2149_v23 = vmov 3   ;;  %s2150_s14 = smov 5   ;;  %s2152_s16 = smov 4  }
  0x1d   : > { %s3641_s28 = smov (!%p311_p0, %s2012_s28), 1  ;;  %376 = vperm.xlu1 %2082, %v373_v20   ;;  %2084 = vset.pattern.permute.xlu0 %v2148_v22  ;;  %v380_v34 = vshrl.u32 %v379_v33, 7  ;;  %s2153_s17 = smov 2  }
  0x1e   : > { %s2026_s15 = sshll.u32 %s3641_s28, 3  ;;  %s2027_s26 = sshll.u32 %s3641_s28, 5 }
  0x1f   : > { %s315_s18 = scalar_lea.vmem %s3425_s0, %s2026_s15  ;;  %v2252_v36 = vsub.s32 0, %v380_v34  ;;  %v385_v37 = vsub.s32 4, %v380_v34  ;;  %v2254_v38 = vsub.s32 1, %v380_v34  ;;  %v409_v39 = vsub.s32 5, %v380_v34  ;;  %s2259_s10 = scalar_lea.vmem %s3433_s8, %s2027_s26 }
  0x20   : > { %v321_v0 = vld [vmem:[%s315_s18] sm:$0xff]  ;;  %v457_v41 = vsub.s32 3, %v380_v34  ;;  %v461_v42 = vsub.s32 7, %v380_v34  ;;  %v431_v43 = vsub.s32 2, %v380_v34  ;;  %v435_v45 = vsub.s32 6, %v380_v34  ;;  %s2151_s15 = smov 3  }
  0x21   : > { %v323_v1 = vcombine.high %v321_v0, %v321_v0  ;;  %v326_v2 = vsel %vm325_vm0, %v321_v0, 0.0  ;;  %2083 = vset.pattern.permute.xlu1 %v2147_v21  ;;  %s2154_s18 = smov 1   ;;  %s2157_s21 = smov 125  }
  0x22   : > { %400 = vperm.xlu1 %2083, %v373_v20   ;;  %s2158_s22 = smov 124   ;;  %s2160_s26 = smov 80  }
  0x23   : > { %v327_v3 = vsel %vm325_vm0, %v323_v1, 0.0  ;;  %s2162_s30 = smov 64   ;;  %s2163_s9 = smov 32  }
  0x24   : > { %v328_v4 = vadd.f32 %v327_v3, %v326_v2  ;;  %s2164_s28 = smov 16   ;;  %s2165_s11 = smov 112  }
  0x25   : > { %s2166_s12 = smov 96  }
  0x26   : > { %329 = vadd.xlane.f32.xlu0 %v328_v4  ;;  %2085 = vset.pattern.permute.xlu1 %v2149_v23 }
  0x27   : > { %452 = vperm.xlu1 %2085, %v373_v20  }
  0x2b   : > { %2087 = vset.pattern.permute.xlu1 %v3434_v19 }
  0x98   : > { %v377_v35 = vpop.permute.xlu1 %376 }
  0x9d   : > { %v401_v46 = vpop.permute.xlu1 %400 }
  0xa2   : > { %v453_v4 = vpop.permute.xlu1 %452 }
  0xaf   : > { %v330_v5 = vpop.xlane.xlu0 %329 }
  0xb0   : > { %v331_v6 = vrot.slane %v330_v5, 4 }
  0xb2   : > { %v332_v7 = vadd.f32 %v331_v6, %v330_v5 }
  0xb4   : > { %v333_v8 = vrot.slane %v332_v7, 2 }
  0xb6   : > { %v334_v9 = vadd.f32 %v333_v8, %v332_v7 }
  0xb8   : > { %v335_v10 = vrot.slane %v334_v9, 1 }
  0xba   : > { %v336_v11 = vadd.f32 %v335_v10, %v334_v9 }
  0xbc   : > { %2028 = vpush %v336_v11 }
  0xed   : > { %s2029_s19 = spop %2028 }
  0xee   : > { %s340_s20 = smul.f32 0.0009765625, %s2029_s19  ;;  %s2155_s19 = smov 127  }
  0xf0   : > { %v341_v12 = vstv %s340_s20  ;;  %s2156_s20 = smov 126  }
  0xf1   : > { %v342_v13 = vsub.f32 %v321_v0, %v341_v12 }
  0xf3   : > { %v343_v14 = vmul.f32 %v342_v13, %v342_v13 }
  0xf5   : > { %v345_v15 = vcombine.high %v343_v14, %v343_v14  ;;  %v347_v16 = vsel %vm325_vm0, %v343_v14, 0.0 }
  0xf7   : > { %v348_v17 = vsel %vm325_vm0, %v345_v15, 0.0 }
  0xf8   : > { %v349_v18 = vadd.f32 %v348_v17, %v347_v16  ;;  %v493_v17 = vld [vmem:[%s3427_s2] sm:$0xff] }
  0xfa   : > { %350 = vadd.xlane.f32.xlu0 %v349_v18 }
 0x110   : > { %426 = vperm.xlu0 %2084, %v373_v20  }
 0x114   : > { %2086 = vset.pattern.permute.xlu0 %v3434_v19 }
 0x115   : > { %496 = vperm.xlu0 %2086, %v493_v17  }
 0x183   : > { %v351_v24 = vpop.xlane.xlu0 %350 }
 0x184   : > { %v352_v25 = vrot.slane %v351_v24, 4 }
 0x186   : > { %v353_v26 = vadd.f32 %v352_v25, %v351_v24 }
 0x188   : > { %v354_v27 = vrot.slane %v353_v26, 2 }
 0x18a   : > { %v355_v28 = vadd.f32 %v354_v27, %v353_v26  ;;  %v501_v26 = vld [vmem:[%s3428_s3] sm:$0xff] }
 0x18b   : > { %v427_v62 = vpop.permute.xlu0 %426 }
 0x18c   : > { %v356_v29 = vrot.slane %v355_v28, 1 }
 0x18e   : > { %v357_v30 = vadd.f32 %v356_v29, %v355_v28 }
 0x190   : > { %2030 = vpush %v357_v30 }
 0x1c1   : > { %s2031_s23 = spop %2030 }
 0x1c2   : > { %s361_s24 = smul.f32 0.0009765625, %s2031_s23  ;;  %s2159_s23 = smov 123  }
 0x1c4   : > { %s362_s25 = sadd.f32 1e-05, %s361_s24 }
 0x1c6   : > { %v363_v31 = vstv %s362_s25 }
 0x1c7   : > { %2089 = vrsqrt.f32 %v363_v31  ;;  %v497_v31 = vpop.permute.xlu0 %496 }
 0x1d4   : > { %v2090_v32 = vpop.eup %2089 }
 0x1d5   : > { %2032 = vpush %v2090_v32 }
 0x206   : > { %s2033_s29 = spop %2032 }
 0x207   : > { %v366_v40 = vstv %s2033_s29  ;;  %s2161_s29 = smov 48  }
 0x208   : > { %v367_v44 = vmul.f32 %v366_v40, %v342_v13 }
 0x20a   : > { %v369_v47 = vcombine.high %v367_v44, %v367_v44  ;;  %371 = vst [vmem:[%s2259_s10 + $0x10] sm:$0xf] %v367_v44  ;;  %v382_v48 = vrot.slane %v367_v44, %v2252_v36  ;;  %v386_v49 = vrot.slane %v367_v44, %v385_v37  ;;  %v406_v50 = vrot.slane %v367_v44, %v2254_v38 }
 0x20b   : > { %v410_v51 = vrot.slane %v367_v44, %v409_v39  ;;  %v458_v52 = vrot.slane %v367_v44, %v457_v41  ;;  %v462_v53 = vrot.slane %v367_v44, %v461_v42  ;;  %v432_v54 = vrot.slane %v367_v44, %v431_v43 }
 0x20c   : > { %372 = vst [vmem:[%s2259_s10 + $0x18] sm:$0xf] %v369_v47  ;;  %v392_v55 = vrot.slane %v382_v48, %v2252_v36  ;;  %v396_v56 = vrot.slane %v386_v49, %v2252_v36  ;;  %v416_v57 = vrot.slane %v406_v50, %v2254_v38  ;;  %v436_v58 = vrot.slane %v367_v44, %v435_v45 }
 0x20d   : > { %v420_v59 = vrot.slane %v410_v51, %v2254_v38  ;;  %v468_v60 = vrot.slane %v458_v52, %v457_v41  ;;  %v442_v61 = vrot.slane %v432_v54, %v431_v43  ;;  %v472_v5 = vrot.slane %v462_v53, %v457_v41 }
 0x20e   : > { %v397_v63 = vmul.f32 %v392_v55, %v377_v35  ;;  %v398_v0 = vmul.f32 %v396_v56, %v377_v35  ;;  %v421_v1 = vmul.f32 %v416_v57, %v401_v46  ;;  %v446_v2 = vrot.slane %v436_v58, %v431_v43 }
 0x20f   : > { %v422_v3 = vmul.f32 %v420_v59, %v401_v46  ;;  %v447_v7 = vmul.f32 %v442_v61, %v427_v62  ;;  %v473_v10 = vmul.f32 %v468_v60, %v453_v4  ;;  %v474_v12 = vmul.f32 %v472_v5, %v453_v4 }
 0x210   : > { %v423_v6 = vadd.f32 %v421_v1, %v397_v63  ;;  %v448_v9 = vmul.f32 %v446_v2, %v427_v62 }
 0x211   : > { %v424_v8 = vadd.f32 %v422_v3, %v398_v0 }
 0x212   : > { %v449_v11 = vadd.f32 %v447_v7, %v423_v6 }
 0x213   : > { %v450_v13 = vadd.f32 %v448_v9, %v424_v8 }
 0x214   : > { %v475_v14 = vadd.f32 %v473_v10, %v449_v11 }
 0x215   : > { %v476_v15 = vadd.f32 %v474_v12, %v450_v13  ;;  %v2023_v12 = vld [vmem:[%s3432_s7 + $0x1] ss:$2 sm:$0x3] }
 0x216   : > { %v555_v13 = vadd.s32 4294967291, %v2023_v12 }
 0x217   : > { %v477_v16 = vadd.f32 %v476_v15, %v475_v14 }
 0x218   : > { %vm556_vm1 = vcmp.ge.s32.totalorder %v555_v13, 0  ;;  %vm557_vm2 = vcmp.lt.s32.totalorder %v555_v13, 16 }
 0x219   : > { %478 = vadd.xlane.f32.xlu1 %v477_v16  ;;  %vm558_vm5 = vmand %vm556_vm1, %vm557_vm2  ;;  %v627_v16 = vadd.s32 4294967294, %v2023_v12 }
 0x21a   : > { %v559_v17 = vsel %vm558_vm5, 1, %v3434_v19 }
 0x21b   : > { %vm628_vm10 = vcmp.ge.s32.totalorder %v627_v16, 0  ;;  %vm629_vm11 = vcmp.lt.s32.totalorder %v627_v16, 16 }
 0x21c   : > { %vm2312_vm12 = vmand %vm628_vm10, %vm629_vm11 }
 0x2a2   : > { %v479_v18 = vpop.xlane.xlu1 %478 }
 0x2a3   : > { %v480_v20 = vmul.f32 0.00390625, %v479_v18  ;;  %v651_v18 = vadd.s32 4294967295, %v2023_v12 }
 0x2a5   : > { %v481_v21 = vsub.f32 %v475_v14, %v480_v20  ;;  %v482_v22 = vsub.f32 %v476_v15, %v480_v20  ;;  %v603_v14 = vadd.s32 4294967293, %v2023_v12  ;;  %v579_v15 = vadd.s32 4294967292, %v2023_v12 }
 0x2a6   : > { %vm652_vm13 = vcmp.ge.s32.totalorder %v651_v18, 0  ;;  %vm653_vm14 = vcmp.lt.s32.totalorder %v651_v18, 16 }
 0x2a7   : > { %v483_v23 = vmul.f32 %v481_v21, %v481_v21  ;;  %v484_v24 = vmul.f32 %v482_v22, %v482_v22  ;;  %vm604_vm3 = vcmp.ge.s32.totalorder %v603_v14, 0  ;;  %vm605_vm4 = vcmp.lt.s32.totalorder %v603_v14, 16  ;;  %vm2330_vm2 = vmand %vm652_vm13, %vm653_vm14  ;;  %v1603_v14 = vld [vmem:[#allocation2 + $0x5d0] sm:$0xff] }
 0x2a8   : > { %vm580_vm6 = vcmp.ge.s32.totalorder %v579_v15, 0  ;;  %vm581_vm7 = vcmp.lt.s32.totalorder %v579_v15, 16  ;;  %vm606_vm8 = vmand %vm604_vm3, %vm605_vm4  ;;  %v1704_v15 = vld [vmem:[#allocation2 + $0x688] sm:$0xff] }
 0x2a9   : > { %v485_v25 = vadd.f32 %v484_v24, %v483_v23  ;;  %vm582_vm9 = vmand %vm580_vm6, %vm581_vm7  ;;  %v607_v20 = vsel %vm606_vm8, 1, %v3434_v19  ;;  %v563_v23 = vrot.slane %v559_v17, %v2252_v36 }
 0x2aa   : > { %v2309_v24 = vsel %vm582_vm9, 1, %v3434_v19 }
 0x2ab   : > { %486 = vadd.xlane.f32.xlu1 %v485_v25  ;;  %v699_v25 = vadd.s32 2, %v2023_v12  ;;  %vm2334_vm5 = vcmp.eq.s32.totalorder %v563_v23, 1 }
 0x2ad   : > { %vm700_vm3 = vcmp.ge.s32.totalorder %v699_v25, 0  ;;  %vm701_vm4 = vcmp.lt.s32.totalorder %v699_v25, 16  ;;  %v1703_v25 = vld [vmem:[#allocation2 + $0x680] sm:$0xff] }
 0x2bc   : > { %504 = vperm.xlu1 %2087, %v501_v26   ;;  %v567_v26 = vrot.slane %v559_v17, %v2254_v38 }
 0x2be   : > { %vm2338_vm6 = vcmp.eq.s32.totalorder %v567_v26, 1 }
 0x334   : > { %v487_v27 = vpop.xlane.xlu1 %486 }
 0x335   : > { %v488_v28 = vmul.f32 0.00390625, %v487_v27 }
 0x337   : > { %v489_v29 = vadd.f32 1e-05, %v488_v28  ;;  %v723_v28 = vadd.s32 3, %v2023_v12 }
 0x338   : > { %v505_v35 = vpop.permute.xlu1 %504 }
 0x339   : > { %2091 = vrsqrt.f32 %v489_v29  ;;  %v611_v29 = vrot.slane %v607_v20, %v2252_v36  ;;  %vm724_vm7 = vcmp.ge.s32.totalorder %v723_v28, 0  ;;  %vm725_vm8 = vcmp.lt.s32.totalorder %v723_v28, 16 }
 0x346   : > { %v2092_v30 = vpop.eup %2091 }
 0x347   : > { %v491_v32 = vmul.f32 %v2092_v30, %v481_v21  ;;  %v492_v34 = vmul.f32 %v2092_v30, %v482_v22  ;;  %v675_v21 = vadd.s32 1, %v2023_v12  ;;  %v2305_v22 = vand.u32 127, %v379_v33 }
 0x348   : > { %v615_v33 = vrot.slane %v607_v20, %v2254_v38  ;;  %v747_v30 = vadd.s32 4, %v2023_v12 }
 0x349   : > { %v499_v37 = vmul.f32 %v497_v31, %v491_v32  ;;  %v500_v39 = vmul.f32 %v497_v31, %v492_v34  ;;  %v819_v31 = vld [vmem:[#allocation2 + $0x50] sm:$0xff]  ;;  %v587_v34 = vrot.slane %v2309_v24, %v2252_v36  ;;  %vm676_vm15 = vcmp.ge.s32.totalorder %v675_v21, 0 }
 0x34a   : > { %v1021_v32 = vld [vmem:[#allocation2 + $0x1b0] sm:$0xff]  ;;  %vm677_vm0 = vcmp.lt.s32.totalorder %v675_v21, 16  ;;  %vm552_vm1 = vcmp.lt.s32.totalorder %v2305_v22, 5  ;;  %vm748_vm10 = vcmp.ge.s32.totalorder %v747_v30, 0  ;;  %vm749_vm11 = vcmp.lt.s32.totalorder %v747_v30, 16 }
 0x34b   : > { %v507_v40 = vadd.f32 %v505_v35, %v499_v37  ;;  %v508_v41 = vadd.f32 %v505_v35, %v500_v39  ;;  %v771_v35 = vadd.s32 5, %v2023_v12  ;;  %v820_v37 = vld [vmem:[#allocation2 + $0x58] sm:$0xff]  ;;  %vm2350_vm9 = vmand %vm676_vm15, %vm677_vm0  ;;  %vm600_vm15 = vcmp.lt.s32.totalorder %v2305_v22, 3  ;;  %v1091_v21 = vld [vmem:[#allocation2 + $0x210] sm:$0xff] }
 0x34c   : > { %v1022_v39 = vld [vmem:[#allocation2 + $0x1b8] sm:$0xff]  ;;  %vm2378_vm0 = vmand %vm724_vm7, %vm725_vm8  ;;  %v2424_v20 = vsel %vm2350_vm9, 1, %v3434_v19  ;;  %vm576_vm8 = vcmp.lt.s32.totalorder %v2305_v22, 4  ;;  %vm2469_vm9 = vcmp.eq.s32.totalorder %v587_v34, 1 }
 0x34d   : > { %v509_v42 = vrot.slane %v507_v40, 4  ;;  %v515_v43 = vrot.slane %v508_v41, 4  ;;  %vm772_vm13 = vcmp.ge.s32.totalorder %v771_v35, 0  ;;  %vm773_vm14 = vcmp.lt.s32.totalorder %v771_v35, 16 }
 0x34e   : > { %vm2428_vm7 = vmand %vm772_vm13, %vm773_vm14  ;;  %v2443_v28 = vsel %vm2378_vm0, 1, %v3434_v19  ;;  %vm672_vm14 = vcmp.lt.s32.totalorder %v2305_v22, 127 }
 0x34f   : > { %v510_v44 = vmax.f32 %v507_v40, %v509_v42  ;;  %v516_v45 = vmax.f32 %v508_v41, %v515_v43  ;;  %v921_v43 = vld [vmem:[#allocation2 + $0x108] sm:$0xff]  ;;  %v2487_v34 = vsel %vm2428_vm7, 1, %v3434_v19  ;;  %v1000_v42 = vld [vmem:[#allocation2 + $0x180] sm:$0xff]  ;;  %vm720_vm7 = vcmp.lt.s32.totalorder %v2305_v22, 125 }
 0x351   : > { %v511_v46 = vrot.slane %v510_v44, 2  ;;  %v517_v47 = vrot.slane %v516_v45, 2 }
 0x353   : > { %v512_v48 = vmax.f32 %v510_v44, %v511_v46  ;;  %v518_v49 = vmax.f32 %v516_v45, %v517_v47  ;;  %v920_v44 = vld [vmem:[#allocation2 + $0x100] sm:$0xff] }
 0x355   : > { %v513_v50 = vrot.slane %v512_v48, 1  ;;  %v519_v51 = vrot.slane %v518_v49, 1 }
 0x357   : > { %v514_v52 = vmax.f32 %v512_v48, %v513_v50  ;;  %v520_v53 = vmax.f32 %v518_v49, %v519_v51  ;;  %v1123_v49 = vld [vmem:[#allocation2 + $0x268] sm:$0xff]  ;;  %v1122_v50 = vld [vmem:[#allocation2 + $0x260] sm:$0xff]  ;;  %v1224_v51 = vld [vmem:[#allocation2 + $0x318] sm:$0xff] }
 0x359   : > { %v521_v54 = vsub.f32 %v507_v40, %v514_v52  ;;  %v522_v55 = vsub.f32 %v508_v41, %v520_v53  ;;  %v591_v40 = vrot.slane %v2309_v24, %v2254_v38  ;;  %v2326_v41 = vsel %vm2312_vm12, 1, %v3434_v19  ;;  %vm2369_vm12 = vmand %vm700_vm3, %vm701_vm4 }
 0x35a   : > { %vm2395_vm3 = vcmp.eq.s32.totalorder %v615_v33, 1  ;;  %vm2401_vm4 = vmand %vm748_vm10, %vm749_vm11  ;;  %v2438_v27 = vsel %vm2369_vm12, 1, %v3434_v19  ;;  %vm624_vm11 = vcmp.lt.s32.totalorder %v2305_v22, 2 }
 0x35b   : > { %v523_v56 = vmul.f32 1.442695, %v521_v54  ;;  %v525_v57 = vmul.f32 1.442695, %v522_v55  ;;  %v1223_v55 = vld [vmem:[#allocation2 + $0x310] sm:$0xff]  ;;  %v2455_v30 = vsel %vm2401_vm4, 1, %v3434_v19  ;;  %v3518_v45 = vrot.slane %v2438_v27, %v2254_v38 }
 0x35c   : > { %vm2476_vm10 = vcmp.eq.s32.totalorder %v591_v40, 1 }
 0x35d   : > { %2093 = vpow2.f32 %v523_v56  ;;  %v1402_v56 = vld [vmem:[#allocation2 + $0x478] sm:$0xff]  ;;  %vm2682_vm4 = vcmp.eq.s32.totalorder %v3518_v45, 1 }
 0x35e   : > { %2095 = vpow2.f32 %v525_v57  ;;  %v635_v57 = vrot.slane %v2326_v41, %v2252_v36 }
 0x36a   : > { %v2094_v58 = vpop.eup %2093 }
 0x36b   : > { %v2096_v59 = vpop.eup %2095  ;;  %v527_v60 = vrot.slane %v2094_v58, 4 }
 0x36c   : > { %v533_v61 = vrot.slane %v2096_v59, 4 }
 0x36d   : > { %v528_v62 = vadd.f32 %v2094_v58, %v527_v60  ;;  %v1401_v60 = vld [vmem:[#allocation2 + $0x470] sm:$0xff] }
 0x36e   : > { %v534_v63 = vadd.f32 %v2096_v59, %v533_v61  ;;  %v1503_v61 = vld [vmem:[#allocation2 + $0x528] sm:$0xff] }
 0x36f   : > { %v529_v0 = vrot.slane %v528_v62, 2 }
 0x370   : > { %v535_v1 = vrot.slane %v534_v63, 2 }
 0x371   : > { %v530_v2 = vadd.f32 %v529_v0, %v528_v62  ;;  %v639_v62 = vrot.slane %v2326_v41, %v2254_v38 }
 0x372   : > { %v536_v3 = vadd.f32 %v535_v1, %v534_v63 }
 0x373   : > { %v531_v4 = vrot.slane %v530_v2, 1 }
 0x374   : > { %v537_v5 = vrot.slane %v536_v3, 1 }
 0x375   : > { %v532_v6 = vadd.f32 %v531_v4, %v530_v2  ;;  %v1604_v4 = vld [vmem:[#allocation2 + $0x5d8] sm:$0xff] }
 0x376   : > { %v538_v7 = vadd.f32 %v537_v5, %v536_v3  ;;  %v1502_v3 = vld [vmem:[#allocation2 + $0x520] sm:$0xff] }
 0x377   : > { %2097 = vrcp.f32 %v532_v6 }
 0x378   : > { %2099 = vrcp.f32 %v538_v7  ;;  %v799_v7 = vld [vmem:[#allocation2 + $0x28] sm:$0xff] }
 0x384   : > { %v2098_v8 = vpop.eup %2097 }
 0x385   : > { %v2100_v9 = vpop.eup %2099  ;;  %v2275_v10 = vmul.f32 %v2098_v8, %v2094_v58  ;;  %v2365_v58 = vsel %vm2330_vm2, 1, %v3434_v19  ;;  %vm2391_vm2 = vcmp.eq.s32.totalorder %v611_v29, 1 }
 0x386   : > { %v2277_v11 = vmul.f32 %v2100_v9, %v2096_v59  ;;  %v990_v59 = vld [vmem:[#allocation2 + $0x160] sm:$0xff]  ;;  %v3504_v5 = vrot.slane %v2365_v58, %v2254_v38 }
 0x387   : > { %3452 = vst [vmem:[#allocation5_spill] sm:$0xff] %v2275_v10  ;;  %546 = vrot.lane.b32.xlu0 %v2275_v10, %s2150_s14  ;;  %v2343_v47 = vmul.f32 %v819_v31, %v2275_v10  ;;  %v2346_v48 = vmul.f32 %v1021_v32, %v2275_v10  ;;  %v2386_v1 = vmul.f32 %v920_v44, %v2275_v10  ;;  %v789_v44 = vld [vmem:[#allocation2 + $0x8] sm:$0xff] }
 0x388   : > { %3453 = vst [vmem:[#allocation6_spill] sm:$0xff] %v2277_v11  ;;  %598 = vrot.lane.b32.xlu1 %v2277_v11, %s2151_s15  ;;  %v2355_v53 = vmul.f32 %v820_v37, %v2277_v11  ;;  %v2358_v54 = vmul.f32 %v1022_v39, %v2277_v11  ;;  %v2383_v0 = vmul.f32 %v921_v43, %v2277_v11  ;;  %v1001_v43 = vld [vmem:[#allocation2 + $0x188] sm:$0xff]  ;;  %vm2584_vm13 = vcmp.eq.s32.totalorder %v3504_v5, 1 }
 0x389   : > { %v2389_v2 = vmul.f32 %v1123_v49, %v2277_v11  ;;  %v2406_v8 = vmul.f32 %v1122_v50, %v2275_v10  ;;  %v2409_v9 = vmul.f32 %v1224_v51, %v2277_v11  ;;  %v2412_v12 = vmul.f32 %v1223_v55, %v2275_v10  ;;  %v788_v49 = vld [vmem:[#allocation2] sm:$0xff] }
 0x38a   : > { %v2415_v13 = vmul.f32 %v1402_v56, %v2277_v11  ;;  %v2433_v23 = vmul.f32 %v1401_v60, %v2275_v10  ;;  %v2446_v29 = vmul.f32 %v1503_v61, %v2277_v11  ;;  %v2449_v33 = vmul.f32 %v1502_v3, %v2275_v10  ;;  %v991_v56 = vld [vmem:[#allocation2 + $0x168] sm:$0xff]  ;;  %v890_v60 = vld [vmem:[#allocation2 + $0xb8] sm:$0xff]  ;;  %v1192_v55 = vld [vmem:[#allocation2 + $0x2c0] sm:$0xff] }
 0x38b   : > { %548 = vrot.lane.b32.xlu0 %v2277_v11, %s2150_s14  ;;  %3474 = vst [vmem:[#allocation7_spill] sm:$0xff] %v2409_v9  ;;  %3475 = vst [vmem:[#allocation8_spill] sm:$0xff] %v2412_v12  ;;  %v2458_v31 = vmul.f32 %v1604_v4, %v2277_v11  ;;  %v2461_v32 = vmul.f32 %v1603_v14, %v2275_v10  ;;  %v2464_v35 = vmul.f32 %v1704_v15, %v2277_v11  ;;  %v889_v14 = vld [vmem:[#allocation2 + $0xb0] sm:$0xff]  ;;  %v1092_v15 = vld [vmem:[#allocation2 + $0x218] sm:$0xff] }
 0x38c   : > { %574 = vrot.lane.b32.xlu1 %v2277_v11, %s2152_s16  ;;  %3476 = vst [vmem:[#allocation9_spill] sm:$0xff] %v2415_v13  ;;  %3479 = vst [vmem:[#allocation10_spill] sm:$0xff] %v2433_v23  ;;  %v2490_v50 = vmul.f32 %v1703_v25, %v2275_v10  ;;  %v1193_v4 = vld [vmem:[#allocation2 + $0x2c8] sm:$0xff]  ;;  %v1370_v51 = vld [vmem:[#allocation2 + $0x420] sm:$0xff]  ;;  %v3511_v37 = vrot.slane %v2424_v20, %v2254_v38 }
 0x38d   : > { %3480 = vst [vmem:[#allocation11_spill] sm:$0xff] %v2446_v29  ;;  %3481 = vst [vmem:[#allocation12_spill] sm:$0xff] %v2449_v33  ;;  %v995_v33 = vld [vmem:[#allocation2 + $0x170] sm:$0xff]  ;;  %v894_v23 = vld [vmem:[#allocation2 + $0xc0] sm:$0xff] }
 0x38e   : > { %3482 = vst [vmem:[#allocation13_spill] sm:$0xff] %v2458_v31  ;;  %3483 = vst [vmem:[#allocation14_spill] sm:$0xff] %v2461_v32  ;;  %v793_v32 = vld [vmem:[#allocation2 + $0x10] sm:$0xff]  ;;  %v996_v31 = vld [vmem:[#allocation2 + $0x178] sm:$0xff]  ;;  %vm2629_vm0 = vcmp.eq.s32.totalorder %v3511_v37, 1 }
 0x38f   : > { %596 = vrot.lane.b32.xlu0 %v2275_v10, %s2151_s15  ;;  %3484 = vst [vmem:[#allocation15_spill] sm:$0xff] %v2464_v35  ;;  %3489 = vst [vmem:[#allocation16_spill] sm:$0xff] %v2490_v50  ;;  %v1101_v50 = vld [vmem:[#allocation2 + $0x230] sm:$0xff]  ;;  %v907_v13 = vld [vmem:[#allocation2 + $0xe8] sm:$0xff] }
 0x390   : > { %622 = vrot.lane.b32.xlu1 %v2277_v11, %s2153_s17  ;;  %v906_v12 = vld [vmem:[#allocation2 + $0xe0] sm:$0xff] }
 0x391   : > { %v1014_v9 = vld [vmem:[#allocation2 + $0x1a0] sm:$0xff] }
 0x393   : > { %572 = vrot.lane.b32.xlu0 %v2275_v10, %s2152_s16 }
 0x394   : > { %646 = vrot.lane.b32.xlu1 %v2277_v11, %s2154_s18 }
 0x397   : > { %620 = vrot.lane.b32.xlu0 %v2275_v10, %s2153_s17 }
 0x398   : > { %670 = vrot.lane.b32.xlu1 %v2277_v11, %s2155_s19 }
 0x39b   : > { %644 = vrot.lane.b32.xlu0 %v2275_v10, %s2154_s18 }
 0x39c   : > { %694 = vrot.lane.b32.xlu1 %v2277_v11, %s2156_s20 }
 0x39f   : > { %668 = vrot.lane.b32.xlu0 %v2275_v10, %s2155_s19 }
 0x3a0   : > { %718 = vrot.lane.b32.xlu1 %v2277_v11, %s2157_s21 }
 0x3a3   : > { %692 = vrot.lane.b32.xlu0 %v2275_v10, %s2156_s20 }
 0x3a4   : > { %742 = vrot.lane.b32.xlu1 %v2277_v11, %s2158_s22 }
 0x3a7   : > { %716 = vrot.lane.b32.xlu0 %v2275_v10, %s2157_s21 }
 0x3a8   : > { %766 = vrot.lane.b32.xlu1 %v2277_v11, %s2159_s23  ;;  %v1102_v11 = vld [vmem:[#allocation2 + $0x238] sm:$0xff] }
 0x3ab   : > { %740 = vrot.lane.b32.xlu0 %v2275_v10, %s2158_s22 }
 0x3af   : > { %764 = vrot.lane.b32.xlu0 %v2275_v10, %s2159_s23  ;;  %v899_v10 = vld [vmem:[#allocation2 + $0xd0] sm:$0xff] }
 0x3f9   : > { %v547_v16 = vpop.permute.xlu0 %546 }
 0x3fa   : > { %v599_v26 = vpop.permute.xlu1 %598 }
 0x3fd   : > { %v549_v24 = vpop.permute.xlu0 %548 }
 0x3fe   : > { %v2500_v61 = vpop.permute.xlu1 %574  ;;  %v553_v63 = vsel %vm552_vm1, %v547_v16, %v549_v24  ;;  %v554_v3 = vsel %vm552_vm1, %v549_v24, %v547_v16  ;;  %vm2526_vm1 = vcmp.eq.s32.totalorder %v635_v57, 1  ;;  %v798_v24 = vld [vmem:[#allocation2 + $0x20] sm:$0xff]  ;;  %v1371_v57 = vld [vmem:[#allocation2 + $0x428] sm:$0xff] }
 0x3ff   : > { %v2512_v25 = vsel %vm2334_vm5, %v554_v3, 0.0  ;;  %v2516_v19 = vsel %vm2338_vm6, %v553_v63, 0.0  ;;  %vm2533_vm5 = vcmp.eq.s32.totalorder %v639_v62, 1  ;;  %v900_v62 = vld [vmem:[#allocation2 + $0xd8] sm:$0xff]  ;;  %vm648_vm6 = vcmp.lt.s32.totalorder %v2305_v22, 1 }
 0x400   : > { %3490 = vst [vmem:[#allocation17_spill] sm:$0xff] %v2512_v25  ;;  %3491 = vst [vmem:[#allocation18_spill] sm:$0xff] %v2516_v19  ;;  %v791_v63 = vmul.f32 %v789_v44, %v2516_v19  ;;  %v790_v3 = vmul.f32 %v788_v49, %v2512_v25  ;;  %v993_v16 = vmul.f32 %v991_v56, %v2516_v19 }
 0x401   : > { %v992_v52 = vmul.f32 %v990_v59, %v2512_v25  ;;  %v597_v40 = vpop.permute.xlu0 %596  ;;  %v892_v41 = vmul.f32 %v890_v60, %v2516_v19  ;;  %v891_v18 = vmul.f32 %v889_v14, %v2512_v25  ;;  %v2544_v17 = vmul.f32 %v1092_v15, %v2516_v19 }
 0x402   : > { %v2547_v44 = vmul.f32 %v1091_v21, %v2512_v25  ;;  %v623_v49 = vpop.permute.xlu1 %622  ;;  %v601_v56 = vsel %vm600_vm15, %v597_v40, %v599_v26  ;;  %v602_v59 = vsel %vm600_vm15, %v599_v26, %v597_v40  ;;  %v2554_v60 = vmul.f32 %v1193_v4, %v2516_v19 }
 0x403   : > { %v2557_v14 = vmul.f32 %v1192_v55, %v2512_v25  ;;  %v2561_v15 = vsel %vm2391_vm2, %v602_v59, 0.0  ;;  %v2565_v21 = vsel %vm2395_vm3, %v601_v56, 0.0  ;;  %v2569_v26 = vmul.f32 %v1371_v57, %v2516_v19  ;;  %v794_v56 = vld [vmem:[#allocation2 + $0x18] sm:$0xff] }
 0x404   : > { %3496 = vst [vmem:[#allocation19_spill] sm:$0xff] %v2554_v60  ;;  %3498 = vst [vmem:[#allocation21_spill] sm:$0xff] %v2561_v15  ;;  %v2572_v40 = vmul.f32 %v1370_v51, %v2512_v25  ;;  %v3501_v55 = vrot.slane %v2365_v58, %v2252_v36  ;;  %v801_v57 = vmul.f32 %v799_v7, %v2565_v21  ;;  %vm696_vm2 = vcmp.lt.s32.totalorder %v2305_v22, 126 }
 0x405   : > { %3497 = vst [vmem:[#allocation20_spill] sm:$0xff] %v2557_v14  ;;  %3499 = vst [vmem:[#allocation22_spill] sm:$0xff] %v2569_v26  ;;  %v800_v51 = vmul.f32 %v798_v24, %v2561_v15  ;;  %v1003_v59 = vmul.f32 %v1001_v43, %v2565_v21  ;;  %v1002_v35 = vmul.f32 %v1000_v42, %v2561_v15 }
 0x406   : > { %3500 = vst [vmem:[#allocation23_spill] sm:$0xff] %v2572_v40  ;;  %vm2577_vm12 = vcmp.eq.s32.totalorder %v3501_v55, 1  ;;  %v573_v55 = vpop.permute.xlu0 %572  ;;  %v902_v25 = vmul.f32 %v900_v62, %v2565_v21  ;;  %v901_v58 = vmul.f32 %v899_v10, %v2561_v15  ;;  %v1104_v5 = vmul.f32 %v1102_v11, %v2565_v21  ;;  %v647_v19 = vpop.permute.xlu1 %646  ;;  %v895_v62 = vld [vmem:[#allocation2 + $0xc8] sm:$0xff] }
 0x407   : > { %v1103_v29 = vmul.f32 %v1101_v50, %v2561_v15  ;;  %v577_v7 = vsel %vm576_vm8, %v573_v55, %v2500_v61  ;;  %v578_v42 = vsel %vm576_vm8, %v2500_v61, %v573_v55  ;;  %v2602_v43 = vadd.f32 %v801_v57, %v791_v63  ;;  %v1097_v61 = vld [vmem:[#allocation2 + $0x228] sm:$0xff]  ;;  %v806_v57 = vld [vmem:[#allocation2 + $0x38] sm:$0xff]  ;;  %v1096_v55 = vld [vmem:[#allocation2 + $0x220] sm:$0xff] }
 0x408   : > { %v2604_v24 = vadd.f32 %v800_v51, %v790_v3  ;;  %v2608_v10 = vsel %vm2469_vm9, %v578_v42, 0.0  ;;  %v2612_v11 = vsel %vm2476_vm10, %v577_v7, 0.0  ;;  %v2615_v50 = vadd.f32 %v1003_v59, %v993_v16  ;;  %v1008_v42 = vld [vmem:[#allocation2 + $0x198] sm:$0xff] }
 0x409   : > { %3507 = vst [vmem:[#allocation24_spill] sm:$0xff] %v2608_v10  ;;  %v2617_v40 = vadd.f32 %v1002_v35, %v992_v52  ;;  %v3508_v63 = vrot.slane %v2424_v20, %v2252_v36  ;;  %v796_v16 = vmul.f32 %v794_v56, %v2612_v11  ;;  %v795_v35 = vmul.f32 %v793_v32, %v2608_v10  ;;  %v805_v52 = vld [vmem:[#allocation2 + $0x30] sm:$0xff] }
 0x40a   : > { %v998_v51 = vmul.f32 %v996_v31, %v2612_v11  ;;  %v997_v59 = vmul.f32 %v995_v33, %v2608_v10  ;;  %v621_v7 = vpop.permute.xlu0 %620  ;;  %v2638_v20 = vmul.f32 %v895_v62, %v2612_v11  ;;  %v2640_v37 = vadd.f32 %v902_v25, %v892_v41  ;;  %v671_v32 = vpop.permute.xlu1 %670  ;;  %v1109_v41 = vld [vmem:[#allocation2 + $0x248] sm:$0xff]  ;;  %v1108_v62 = vld [vmem:[#allocation2 + $0x240] sm:$0xff] }
 0x40b   : > { %vm2622_vm15 = vcmp.eq.s32.totalorder %v3508_v63, 1  ;;  %v1007_v63 = vld [vmem:[#allocation2 + $0x190] sm:$0xff]  ;;  %v2643_v56 = vmul.f32 %v894_v23, %v2608_v10  ;;  %v2645_v26 = vadd.f32 %v901_v58, %v891_v18  ;;  %v625_v31 = vsel %vm624_vm11, %v621_v7, %v623_v49 }
 0x40c   : > { %v626_v33 = vsel %vm624_vm11, %v623_v49, %v621_v7  ;;  %v2652_v14 = vmul.f32 %v1097_v61, %v2612_v11  ;;  %v2655_v25 = vadd.f32 %v1104_v5, %v2544_v17  ;;  %v2663_v23 = vsel %vm2533_vm5, %v625_v31, 0.0  ;;  %v813_v31 = vld [vmem:[#allocation2 + $0x48] sm:$0xff] }
 0x40d   : > { %v2659_v18 = vsel %vm2526_vm1, %v626_v33, 0.0  ;;  %v2667_v49 = vmul.f32 %v1096_v55, %v2608_v10  ;;  %v2670_v58 = vadd.f32 %v1103_v29, %v2547_v44  ;;  %v3515_v17 = vrot.slane %v2438_v27, %v2252_v36  ;;  %v812_v33 = vld [vmem:[#allocation2 + $0x40] sm:$0xff]  ;;  %v1015_v10 = vld [vmem:[#allocation2 + $0x1a8] sm:$0xff] }
 0x40e   : > { %3514 = vst [vmem:[#allocation25_spill] sm:$0xff] %v2659_v18  ;;  %v808_v61 = vmul.f32 %v806_v57, %v2663_v23  ;;  %v807_v55 = vmul.f32 %v805_v52, %v2659_v18  ;;  %v1010_v29 = vmul.f32 %v1008_v42, %v2663_v23  ;;  %v1009_v44 = vmul.f32 %v1007_v63, %v2659_v18  ;;  %v645_v7 = vpop.permute.xlu0 %644  ;;  %v695_v60 = vpop.permute.xlu1 %694 }
 0x40f   : > { %vm2675_vm3 = vcmp.eq.s32.totalorder %v3515_v17, 1  ;;  %v909_v17 = vmul.f32 %v907_v13, %v2663_v23  ;;  %v908_v15 = vmul.f32 %v906_v12, %v2659_v18  ;;  %v2693_v27 = vmul.f32 %v1109_v41, %v2663_v23 }
 0x410   : > { %v2696_v45 = vmul.f32 %v1108_v62, %v2659_v18  ;;  %v649_v57 = vsel %vm648_vm6, %v645_v7, %v647_v19  ;;  %v650_v52 = vsel %vm648_vm6, %v647_v19, %v645_v7  ;;  %v810_v42 = vadd.f32 %v808_v61, %v796_v16  ;;  %v913_v18 = vld [vmem:[#allocation2 + $0xf0] sm:$0xff] }
 0x411   : > { %v809_v63 = vadd.f32 %v807_v55, %v795_v35  ;;  %v2704_v12 = vsel %vm2577_vm12, %v650_v52, 0.0  ;;  %v2708_v13 = vsel %vm2584_vm13, %v649_v57, 0.0  ;;  %v1012_v41 = vadd.f32 %v1010_v29, %v998_v51  ;;  %v827_v51 = vld [vmem:[#allocation2 + $0x68] sm:$0xff] }
 0x412   : > { %v1011_v62 = vadd.f32 %v1009_v44, %v997_v59  ;;  %v3521_v19 = vrot.slane %v2443_v28, %v2252_v36  ;;  %v3524_v4 = vrot.slane %v2443_v28, %v2254_v38  ;;  %v815_v6 = vmul.f32 %v813_v31, %v2708_v13  ;;  %v669_v29 = vpop.permute.xlu0 %668  ;;  %v826_v44 = vld [vmem:[#allocation2 + $0x60] sm:$0xff]  ;;  %v1029_v57 = vld [vmem:[#allocation2 + $0x1c8] sm:$0xff] }
 0x413   : > { %v2727_v61 = vadd.f32 %v2355_v53, %v810_v42  ;;  %v814_v59 = vmul.f32 %v812_v33, %v2704_v12  ;;  %v2731_v55 = vadd.f32 %v2343_v47, %v809_v63  ;;  %v1017_v7 = vmul.f32 %v1015_v10, %v2708_v13  ;;  %v1028_v53 = vld [vmem:[#allocation2 + $0x1c0] sm:$0xff]  ;;  %v914_v63 = vld [vmem:[#allocation2 + $0xf8] sm:$0xff] }
 0x414   : > { %vm2714_vm8 = vcmp.eq.s32.totalorder %v3521_v19, 1  ;;  %vm2721_vm9 = vcmp.eq.s32.totalorder %v3524_v4, 1  ;;  %v2735_v28 = vadd.f32 %v2358_v54, %v1012_v41  ;;  %v1016_v52 = vmul.f32 %v1014_v9, %v2704_v12  ;;  %v928_v54 = vld [vmem:[#allocation2 + $0x118] sm:$0xff] }
 0x415   : > { %v2739_v31 = vadd.f32 %v2346_v48, %v1011_v62  ;;  %v673_v33 = vsel %vm672_vm14, %v669_v29, %v671_v32  ;;  %v674_v47 = vsel %vm672_vm14, %v671_v32, %v669_v29  ;;  %v817_v42 = vadd.f32 %v815_v6, %v2602_v43  ;;  %v834_v19 = vld [vmem:[#allocation2 + $0x78] sm:$0xff]  ;;  %v719_v6 = vpop.permute.xlu1 %718  ;;  %v833_v29 = vld [vmem:[#allocation2 + $0x70] sm:$0xff] }
 0x416   : > { %v816_v10 = vadd.f32 %v814_v59, %v2604_v24  ;;  %v2749_v41 = vsel %vm2622_vm15, %v673_v33, 0.0  ;;  %v2753_v48 = vsel %vm2629_vm0, %v674_v47, 0.0  ;;  %vm744_vm10 = vcmp.lt.s32.totalorder %v2305_v22, 124  ;;  %v693_v59 = vpop.permute.xlu0 %692  ;;  %v854_v24 = vld [vmem:[#allocation2 + $0xa0] sm:$0xff] }
 0x417   : > { %v1019_v9 = vadd.f32 %v1017_v7, %v2615_v50  ;;  %v1018_v32 = vadd.f32 %v1016_v52, %v2617_v40  ;;  %v3527_v43 = vrot.slane %v2455_v30, %v2252_v36  ;;  %v3530_v3 = vrot.slane %v2455_v30, %v2254_v38  ;;  %v1036_v7 = vld [vmem:[#allocation2 + $0x1d8] sm:$0xff]  ;;  %v1035_v52 = vld [vmem:[#allocation2 + $0x1d0] sm:$0xff] }
 0x418   : > { %v829_v62 = vmul.f32 %v827_v51, %v2753_v48  ;;  %v828_v50 = vmul.f32 %v826_v44, %v2749_v41  ;;  %v1031_v40 = vmul.f32 %v1029_v57, %v2753_v48  ;;  %v1030_v4 = vmul.f32 %v1028_v53, %v2749_v41 }
 0x419   : > { %vm2761_vm11 = vcmp.eq.s32.totalorder %v3527_v43, 1  ;;  %vm2768_vm1 = vcmp.eq.s32.totalorder %v3530_v3, 1  ;;  %v911_v30 = vadd.f32 %v909_v17, %v2638_v20  ;;  %v916_v33 = vmul.f32 %v914_v63, %v2708_v13  ;;  %v935_v3 = vld [vmem:[#allocation2 + $0x128] sm:$0xff] }
 0x41a   : > { %v930_v47 = vmul.f32 %v928_v54, %v2753_v48  ;;  %v2780_v51 = vadd.f32 %v908_v15, %v2643_v56  ;;  %v697_v44 = vsel %vm696_vm2, %v693_v59, %v695_v60  ;;  %v698_v57 = vsel %vm696_vm2, %v695_v60, %v693_v59 }
 0x41b   : > { %v831_v53 = vadd.f32 %v829_v62, %v817_v42  ;;  %v830_v43 = vadd.f32 %v828_v50, %v816_v10  ;;  %v2788_v20 = vsel %vm2675_vm3, %v697_v44, 0.0  ;;  %v2792_v17 = vsel %vm2682_vm4, %v698_v57, 0.0  ;;  %v841_v10 = vld [vmem:[#allocation2 + $0x88] sm:$0xff]  ;;  %v717_v62 = vpop.permute.xlu0 %716  ;;  %v840_v50 = vld [vmem:[#allocation2 + $0x80] sm:$0xff] }
 0x41c   : > { %vm768_vm5 = vcmp.lt.s32.totalorder %v2305_v22, 123  ;;  %v1033_v15 = vadd.f32 %v1031_v40, %v1019_v9  ;;  %v1032_v56 = vadd.f32 %v1030_v4, %v1018_v32  ;;  %v3533_v63 = vrot.slane %v2487_v34, %v2252_v36  ;;  %v1043_v40 = vld [vmem:[#allocation2 + $0x1e8] sm:$0xff]  ;;  %v1042_v4 = vld [vmem:[#allocation2 + $0x1e0] sm:$0xff] }
 0x41d   : > { %v3536_v5 = vrot.slane %v2487_v34, %v2254_v38  ;;  %v836_v46 = vmul.f32 %v834_v19, %v2792_v17  ;;  %v835_v54 = vmul.f32 %v833_v29, %v2788_v20  ;;  %v1038_v9 = vmul.f32 %v1036_v7, %v2792_v17 }
 0x41e   : > { %vm2798_vm6 = vcmp.eq.s32.totalorder %v3533_v63, 1  ;;  %v1037_v32 = vmul.f32 %v1035_v52, %v2788_v20  ;;  %v918_v59 = vadd.f32 %v916_v33, %v2640_v37  ;;  %v925_v34 = vadd.f32 %v2383_v0, %v911_v30  ;;  %v942_v63 = vld [vmem:[#allocation2 + $0x138] sm:$0xff] }
 0x41f   : > { %vm2805_vm12 = vcmp.eq.s32.totalorder %v3536_v5, 1  ;;  %v937_v44 = vmul.f32 %v935_v3, %v2792_v17  ;;  %v915_v57 = vmul.f32 %v913_v18, %v2704_v12  ;;  %v721_v19 = vsel %vm720_vm7, %v717_v62, %v719_v6  ;;  %v743_v5 = vpop.permute.xlu1 %742  ;;  %v848_v33 = vld [vmem:[#allocation2 + $0x98] sm:$0xff]  ;;  %v741_v16 = vpop.permute.xlu0 %740 }
 0x420   : > { %v722_v29 = vsel %vm720_vm7, %v719_v6, %v717_v62  ;;  %v838_v7 = vadd.f32 %v836_v46, %v2727_v61  ;;  %v837_v52 = vadd.f32 %v835_v54, %v2731_v55  ;;  %v2825_v37 = vsel %vm2714_vm8, %v721_v19, 0.0  ;;  %v847_v46 = vld [vmem:[#allocation2 + $0x90] sm:$0xff]  ;;  %v1050_v54 = vld [vmem:[#allocation2 + $0x1f8] sm:$0xff] }
 0x421   : > { %v2829_v0 = vsel %vm2721_vm9, %v722_v29, 0.0  ;;  %v1040_v18 = vadd.f32 %v1038_v9, %v2735_v28  ;;  %v1039_v30 = vadd.f32 %v1037_v32, %v2739_v31  ;;  %v842_v61 = vmul.f32 %v840_v50, %v2825_v37  ;;  %v1049_v62 = vld [vmem:[#allocation2 + $0x1f0] sm:$0xff]  ;;  %v949_v50 = vld [vmem:[#allocation2 + $0x148] sm:$0xff] }
 0x422   : > { %v843_v6 = vmul.f32 %v841_v10, %v2829_v0  ;;  %v1045_v55 = vmul.f32 %v1043_v40, %v2829_v0  ;;  %v1044_v3 = vmul.f32 %v1042_v4, %v2825_v37  ;;  %v932_v35 = vadd.f32 %v930_v47, %v918_v59  ;;  %v927_v40 = vld [vmem:[#allocation2 + $0x110] sm:$0xff] }
 0x423   : > { %v939_v19 = vadd.f32 %v937_v44, %v925_v34  ;;  %v944_v29 = vmul.f32 %v942_v63, %v2829_v0  ;;  %v917_v28 = vadd.f32 %v915_v57, %v2645_v26  ;;  %v745_v31 = vsel %vm744_vm10, %v741_v16, %v743_v5  ;;  %v855_v44 = vld [vmem:[#allocation2 + $0xa8] sm:$0xff]  ;;  %v767_v63 = vpop.permute.xlu1 %766 }
 0x424   : > { %v746_v10 = vsel %vm744_vm10, %v743_v5, %v741_v16  ;;  %v845_v9 = vadd.f32 %v843_v6, %v831_v53  ;;  %v844_v32 = vadd.f32 %v842_v61, %v830_v43  ;;  %v2845_v4 = vsel %vm2761_vm11, %v745_v31, 0.0  ;;  %v765_v5 = vpop.permute.xlu0 %764  ;;  %v1057_v6 = vld [vmem:[#allocation2 + $0x208] sm:$0xff]  ;;  %v1056_v61 = vld [vmem:[#allocation2 + $0x200] sm:$0xff] }
 0x425   : > { %v2849_v47 = vsel %vm2768_vm1, %v746_v10, 0.0  ;;  %v1047_v59 = vadd.f32 %v1045_v55, %v1033_v15  ;;  %v1046_v26 = vadd.f32 %v1044_v3, %v1032_v56  ;;  %v849_v57 = vmul.f32 %v847_v46, %v2845_v4 }
 0x426   : > { %v850_v34 = vmul.f32 %v848_v33, %v2849_v47  ;;  %v1052_v53 = vmul.f32 %v1050_v54, %v2849_v47  ;;  %v1051_v43 = vmul.f32 %v1049_v62, %v2845_v4  ;;  %v946_v16 = vadd.f32 %v944_v29, %v932_v35  ;;  %v956_v54 = vld [vmem:[#allocation2 + $0x158] sm:$0xff]  ;;  %v934_v62 = vld [vmem:[#allocation2 + $0x120] sm:$0xff] }
 0x427   : > { %v951_v39 = vmul.f32 %v949_v50, %v2849_v47  ;;  %v924_v15 = vadd.f32 %v2386_v1, %v2780_v51  ;;  %v929_v56 = vmul.f32 %v927_v40, %v2749_v41  ;;  %v769_v33 = vsel %vm768_vm5, %v765_v5, %v767_v63  ;;  %v948_v40 = vld [vmem:[#allocation2 + $0x140] sm:$0xff] }
 0x428   : > { %v770_v55 = vsel %vm768_vm5, %v767_v63, %v765_v5  ;;  %v852_v3 = vadd.f32 %v850_v34, %v838_v7  ;;  %v851_v46 = vadd.f32 %v849_v57, %v837_v52  ;;  %v2865_v35 = vsel %vm2798_vm6, %v769_v33, 0.0  ;;  %v941_v52 = vld [vmem:[#allocation2 + $0x130] sm:$0xff]  ;;  %v1130_v33 = vld [vmem:[#allocation2 + $0x278] sm:$0xff] }
 0x429   : > { %v2869_v29 = vsel %vm2805_vm12, %v770_v55, 0.0  ;;  %v1054_v1 = vadd.f32 %v1052_v53, %v1040_v18  ;;  %v1053_v51 = vadd.f32 %v1051_v43, %v1039_v30  ;;  %v856_v10 = vmul.f32 %v854_v24, %v2865_v35  ;;  %v955_v53 = vld [vmem:[#allocation2 + $0x150] sm:$0xff] }
 0x42a   : > { %v857_v31 = vmul.f32 %v855_v44, %v2869_v29  ;;  %v1059_v50 = vmul.f32 %v1057_v6, %v2869_v29  ;;  %v1058_v7 = vmul.f32 %v1056_v61, %v2865_v35  ;;  %v953_v34 = vadd.f32 %v951_v39, %v939_v19  ;;  %v1116_v61 = vld [vmem:[#allocation2 + $0x258] sm:$0xff] }
 0x42b   : > { %v958_v60 = vmul.f32 %v956_v54, %v2869_v29  ;;  %v931_v57 = vadd.f32 %v929_v56, %v917_v28  ;;  %v936_v42 = vmul.f32 %v934_v62, %v2788_v20  ;;  %v858_v5 = vadd.f32 %v856_v10, %v844_v32  ;;  %v1137_v28 = vld [vmem:[#allocation2 + $0x288] sm:$0xff]  ;;  %v1144_v56 = vld [vmem:[#allocation2 + $0x298] sm:$0xff] }
 0x42c   : > { %v859_v63 = vadd.f32 %v857_v31, %v845_v9  ;;  %v1061_v18 = vadd.f32 %v1059_v50, %v1047_v59  ;;  %v1060_v30 = vadd.f32 %v1058_v7, %v1046_v26  ;;  %v943_v24 = vmul.f32 %v941_v52, %v2825_v37  ;;  %v1151_v62 = vld [vmem:[#allocation2 + $0x2a8] sm:$0xff]  ;;  %v1136_v31 = vld [vmem:[#allocation2 + $0x280] sm:$0xff] }
 0x42d   : > { %v960_v44 = vadd.f32 %v958_v60, %v946_v16  ;;  %v938_v43 = vadd.f32 %v936_v42, %v924_v15  ;;  %v950_v6 = vmul.f32 %v948_v40, %v2845_v4  ;;  %v860_v19 = vadd.f32 %v858_v5, %v851_v46  ;;  %v1158_v16 = vld [vmem:[#allocation2 + $0x2b8] sm:$0xff]  ;;  %v1143_v60 = vld [vmem:[#allocation2 + $0x290] sm:$0xff] }
 0x42e   : > { %v861_v55 = vadd.f32 %v859_v63, %v852_v3  ;;  %v1063_v39 = vadd.f32 %v1061_v18, %v1054_v1  ;;  %v1062_v54 = vadd.f32 %v1060_v30, %v1053_v51  ;;  %v945_v32 = vadd.f32 %v943_v24, %v931_v57  ;;  %v1115_v1 = vld [vmem:[#allocation2 + $0x250] sm:$0xff]  ;;  %v1150_v57 = vld [vmem:[#allocation2 + $0x2a0] sm:$0xff] }
 0x42f   : > { %v962_v9 = vadd.f32 %v960_v44, %v953_v34  ;;  %v952_v59 = vadd.f32 %v950_v6, %v938_v43  ;;  %v957_v26 = vmul.f32 %v955_v53, %v2865_v35  ;;  %862 = vrot.lane.b32.xlu0 %v860_v19, %s2160_s26  ;;  %v1113_v15 = vadd.f32 %v2693_v27, %v2652_v14  ;;  %v1129_v51 = vld [vmem:[#allocation2 + $0x270] sm:$0xff]  ;;  %v1198_v53 = vld [vmem:[#allocation2 + $0x2d8] sm:$0xff]  ;;  %v1217_v43 = vld [vmem:[#allocation2 + $0x308] sm:$0xff] }
 0x430   : > { %864 = vrot.lane.b32.xlu1 %v861_v55, %s2160_s26  ;;  %v1118_v3 = vmul.f32 %v1116_v61, %v2708_v13  ;;  %v1132_v46 = vmul.f32 %v1130_v33, %v2753_v48  ;;  %v1139_v50 = vmul.f32 %v1137_v28, %v2792_v17  ;;  %v1146_v7 = vmul.f32 %v1144_v56, %v2829_v0  ;;  %v1157_v42 = vld [vmem:[#allocation2 + $0x2b0] sm:$0xff]  ;;  %v1210_v44 = vld [vmem:[#allocation2 + $0x2f8] sm:$0xff]  ;;  %v1231_v55 = vld [vmem:[#allocation2 + $0x328] sm:$0xff] }
 0x431   : > { %v959_v10 = vadd.f32 %v957_v26, %v945_v32  ;;  %v1153_v52 = vmul.f32 %v1151_v62, %v2849_v47  ;;  %v1127_v34 = vadd.f32 %v2389_v2, %v1113_v15  ;;  %v1160_v14 = vmul.f32 %v1158_v16, %v2869_v29  ;;  %v1238_v56 = vld [vmem:[#allocation2 + $0x338] sm:$0xff]  ;;  %v1259_v16 = vld [vmem:[#allocation2 + $0x368] sm:$0xff] }
 0x432   : > { %v1120_v40 = vadd.f32 %v1118_v3, %v2655_v25  ;;  %v1112_v27 = vadd.f32 %v2696_v45, %v2667_v49  ;;  %v1117_v5 = vmul.f32 %v1115_v1, %v2704_v12  ;;  %v1131_v18 = vmul.f32 %v1129_v51, %v2749_v41  ;;  %v1203_v45 = vld [vmem:[#allocation2 + $0x2e8] sm:$0xff]  ;;  %v1252_v26 = vld [vmem:[#allocation2 + $0x358] sm:$0xff]  ;;  %v1197_v1 = vld [vmem:[#allocation2 + $0x2d0] sm:$0xff] }
 0x433   : > { %v961_v63 = vadd.f32 %v959_v10, %v952_v59  ;;  %v1138_v30 = vmul.f32 %v1136_v31, %v2788_v20  ;;  %1064 = vrot.lane.b32.xlu0 %v1062_v54, %s2161_s29  ;;  %v1141_v25 = vadd.f32 %v1139_v50, %v1127_v34  ;;  %v1145_v6 = vmul.f32 %v1143_v60, %v2825_v37  ;;  %v1245_v59 = vld [vmem:[#allocation2 + $0x348] sm:$0xff]  ;;  %v1202_v51 = vld [vmem:[#allocation2 + $0x2e0] sm:$0xff] }
 0x434   : > { %1066 = vrot.lane.b32.xlu1 %v1063_v39, %s2161_s29  ;;  %v1134_v2 = vadd.f32 %v1132_v46, %v1120_v40  ;;  %v1126_v49 = vadd.f32 %v2406_v8, %v1112_v27  ;;  %v1119_v24 = vadd.f32 %v1117_v5, %v2670_v58  ;;  %v1152_v61 = vmul.f32 %v1150_v57, %v2845_v4  ;;  %v3539_v10 = vld [vmem:[#allocation19_spill] sm:$0xff]  ;;  %v1209_v40 = vld [vmem:[#allocation2 + $0x2f0] sm:$0xff] }
 0x435   : > { %v1159_v33 = vmul.f32 %v1157_v42, %v2865_v35  ;;  %v1155_v39 = vadd.f32 %v1153_v52, %v1141_v25  ;;  %v1200_v54 = vmul.f32 %v1198_v53, %v2612_v11  ;;  %v1205_v8 = vmul.f32 %v1203_v45, %v2565_v21  ;;  %v1216_v34 = vld [vmem:[#allocation2 + $0x300] sm:$0xff]  ;;  %v1237_v42 = vld [vmem:[#allocation2 + $0x330] sm:$0xff]  ;;  %v3541_v53 = vld [vmem:[#allocation24_spill] sm:$0xff] }
 0x436   : > { %v1148_v19 = vadd.f32 %v1146_v7, %v1134_v2  ;;  %v1140_v28 = vadd.f32 %v1138_v30, %v1126_v49  ;;  %v1133_v62 = vadd.f32 %v1131_v18, %v1119_v24  ;;  %v1212_v32 = vmul.f32 %v1210_v44, %v2663_v23  ;;  %v1230_v27 = vld [vmem:[#allocation2 + $0x320] sm:$0xff]  ;;  %v1251_v49 = vld [vmem:[#allocation2 + $0x350] sm:$0xff] }
 0x437   : > { %v1219_v58 = vmul.f32 %v1217_v43, %v2708_v13  ;;  %963 = vrot.lane.b32.xlu0 %v961_v63, %s2162_s30  ;;  %v1233_v46 = vmul.f32 %v1231_v55, %v2753_v48  ;;  %v1207_v50 = vadd.f32 %v1205_v8, %v3539_v10  ;;  %v1240_v52 = vmul.f32 %v1238_v56, %v2792_v17  ;;  %v3540_v18 = vld [vmem:[#allocation7_spill] sm:$0xff]  ;;  %v3542_v45 = vld [vmem:[#allocation21_spill] sm:$0xff]  ;;  %v1381_v56 = vld [vmem:[#allocation2 + $0x448] sm:$0xff] }
 0x438   : > { %965 = vrot.lane.b32.xlu1 %v962_v9, %s2162_s30  ;;  %v1162_v15 = vadd.f32 %v1160_v14, %v1148_v19  ;;  %v1154_v3 = vadd.f32 %v1152_v61, %v1140_v28  ;;  %v1147_v31 = vadd.f32 %v1145_v6, %v1133_v62  ;;  %v1214_v7 = vadd.f32 %v1212_v32, %v1200_v54  ;;  %v1244_v25 = vld [vmem:[#allocation2 + $0x340] sm:$0xff]  ;;  %v3543_v43 = vld [vmem:[#allocation25_spill] sm:$0xff]  ;;  %v1376_v19 = vld [vmem:[#allocation2 + $0x438] sm:$0xff] }
 0x439   : > { %v1247_v9 = vmul.f32 %v1245_v59, %v2829_v0  ;;  %v1254_v57 = vmul.f32 %v1252_v26, %v2849_v47  ;;  %v1261_v14 = vmul.f32 %v1259_v16, %v2869_v29  ;;  %v1221_v5 = vadd.f32 %v1219_v58, %v1207_v50  ;;  %v1258_v55 = vld [vmem:[#allocation2 + $0x360] sm:$0xff]  ;;  %v1388_v62 = vld [vmem:[#allocation2 + $0x458] sm:$0xff]  ;;  %v3544_v8 = vld [vmem:[#allocation20_spill] sm:$0xff] }
 0x43a   : > { %v1164_v60 = vadd.f32 %v1162_v15, %v1155_v39  ;;  %v1161_v63 = vadd.f32 %v1159_v33, %v1147_v31  ;;  %v1228_v30 = vadd.f32 %v3540_v18, %v1214_v7  ;;  %v1199_v2 = vmul.f32 %v1197_v1, %v3541_v53  ;;  %v1395_v16 = vld [vmem:[#allocation2 + $0x468] sm:$0xff]  ;;  %v1416_v1 = vld [vmem:[#allocation2 + $0x498] sm:$0xff] }
 0x43b   : > { %v1204_v44 = vmul.f32 %v1202_v51, %v3542_v45  ;;  %v1211_v24 = vmul.f32 %v1209_v40, %v3543_v43  ;;  %v1218_v6 = vmul.f32 %v1216_v34, %v2704_v12  ;;  %v1232_v61 = vmul.f32 %v1230_v27, %v2749_v41  ;;  %v1409_v15 = vld [vmem:[#allocation2 + $0x488] sm:$0xff]  ;;  %v1430_v27 = vld [vmem:[#allocation2 + $0x4b8] sm:$0xff] }
 0x43c   : > { %1167 = vrot.lane.b32.xlu1 %v1164_v60, %s2163_s9  ;;  %v1163_v33 = vadd.f32 %v1161_v63, %v1154_v3  ;;  %v1235_v39 = vadd.f32 %v1233_v46, %v1221_v5  ;;  %v1242_v28 = vadd.f32 %v1240_v52, %v1228_v30  ;;  %v1239_v54 = vmul.f32 %v1237_v42, %v2788_v20  ;;  %v3545_v50 = vld [vmem:[#allocation8_spill] sm:$0xff]  ;;  %v1380_v5 = vld [vmem:[#allocation2 + $0x440] sm:$0xff] }
 0x43d   : > { %v1206_v32 = vadd.f32 %v1204_v44, %v3544_v8  ;;  %v1213_v58 = vadd.f32 %v1211_v24, %v1199_v2  ;;  %v1246_v59 = vmul.f32 %v1244_v25, %v2825_v37  ;;  %v1253_v26 = vmul.f32 %v1251_v49, %v2845_v4  ;;  %v1423_v34 = vld [vmem:[#allocation2 + $0x4a8] sm:$0xff]  ;;  %v3546_v2 = vld [vmem:[#allocation22_spill] sm:$0xff]  ;;  %v1375_v44 = vld [vmem:[#allocation2 + $0x430] sm:$0xff] }
 0x43e   : > { %1165 = vrot.lane.b32.xlu0 %v1163_v33, %s2163_s9  ;;  %v1249_v51 = vadd.f32 %v1247_v9, %v1235_v39  ;;  %v1256_v31 = vadd.f32 %v1254_v57, %v1242_v28  ;;  %v1260_v3 = vmul.f32 %v1258_v55, %v2865_v35  ;;  %v1378_v46 = vmul.f32 %v1376_v19, %v2612_v11  ;;  %v1437_v60 = vld [vmem:[#allocation2 + $0x4c8] sm:$0xff]  ;;  %v1387_v24 = vld [vmem:[#allocation2 + $0x450] sm:$0xff]  ;;  %v1408_v39 = vld [vmem:[#allocation2 + $0x480] sm:$0xff] }
 0x43f   : > { %v1220_v10 = vadd.f32 %v1218_v6, %v1206_v32  ;;  %v1227_v7 = vadd.f32 %v3545_v50, %v1213_v58  ;;  %v1383_v52 = vmul.f32 %v1381_v56, %v2565_v21  ;;  %v1390_v40 = vmul.f32 %v1388_v62, %v2663_v23  ;;  %v1394_v6 = vld [vmem:[#allocation2 + $0x460] sm:$0xff]  ;;  %v3547_v8 = vld [vmem:[#allocation9_spill] sm:$0xff]  ;;  %v1472_v50 = vld [vmem:[#allocation2 + $0x4d8] sm:$0xff] }
 0x440   : > { %v1263_v42 = vadd.f32 %v1261_v14, %v1249_v51  ;;  %v1397_v63 = vmul.f32 %v1395_v16, %v2708_v13  ;;  %v1411_v9 = vmul.f32 %v1409_v15, %v2753_v48  ;;  %v1418_v57 = vmul.f32 %v1416_v1, %v2792_v17  ;;  %v1422_v32 = vld [vmem:[#allocation2 + $0x4a0] sm:$0xff]  ;;  %v1429_v51 = vld [vmem:[#allocation2 + $0x4b0] sm:$0xff] }
 0x441   : > { %v1234_v18 = vadd.f32 %v1232_v61, %v1220_v10  ;;  %v1241_v30 = vadd.f32 %v1239_v54, %v1227_v7  ;;  %v1385_v25 = vadd.f32 %v1383_v52, %v3546_v2  ;;  %v1392_v49 = vadd.f32 %v1390_v40, %v1378_v46  ;;  %v1415_v54 = vld [vmem:[#allocation2 + $0x490] sm:$0xff]  ;;  %v1436_v10 = vld [vmem:[#allocation2 + $0x4c0] sm:$0xff] }
 0x442   : > { %v1265_v55 = vadd.f32 %v1263_v42, %v1256_v31  ;;  %v1425_v19 = vmul.f32 %v1423_v34, %v2829_v0  ;;  %v1432_v14 = vmul.f32 %v1430_v27, %v2849_v47  ;;  %v1439_v33 = vmul.f32 %v1437_v60, %v2869_v29  ;;  %v3548_v7 = vld [vmem:[#allocation23_spill] sm:$0xff]  ;;  %v1477_v60 = vld [vmem:[#allocation2 + $0x4e8] sm:$0xff]  ;;  %v1482_v42 = vld [vmem:[#allocation2 + $0x4f8] sm:$0xff] }
 0x443   : > { %v1248_v28 = vadd.f32 %v1246_v59, %v1234_v18  ;;  %v1255_v56 = vadd.f32 %v1253_v26, %v1241_v30  ;;  %v1399_v62 = vadd.f32 %v1397_v63, %v1385_v25  ;;  %v1406_v61 = vadd.f32 %v3547_v8, %v1392_v49  ;;  %v1489_v63 = vld [vmem:[#allocation2 + $0x508] sm:$0xff]  ;;  %v3549_v25 = vld [vmem:[#allocation10_spill] sm:$0xff] }
 0x444   : > { %1268 = vrot.lane.b32.xlu1 %v1265_v55, %s2164_s28  ;;  %v1377_v58 = vmul.f32 %v1375_v44, %v3541_v53  ;;  %v1382_v16 = vmul.f32 %v1380_v5, %v3542_v45  ;;  %v1389_v15 = vmul.f32 %v1387_v24, %v3543_v43  ;;  %v1396_v1 = vmul.f32 %v1394_v6, %v2704_v12  ;;  %v3550_v24 = vld [vmem:[#allocation18_spill] sm:$0xff]  ;;  %v1517_v55 = vld [vmem:[#allocation2 + $0x548] sm:$0xff] }
 0x445   : > { %v1262_v31 = vadd.f32 %v1260_v3, %v1248_v28  ;;  %v1413_v59 = vadd.f32 %v1411_v9, %v1399_v62  ;;  %v1420_v26 = vadd.f32 %v1418_v57, %v1406_v61  ;;  %v1410_v46 = vmul.f32 %v1408_v39, %v2749_v41  ;;  %v1496_v9 = vld [vmem:[#allocation2 + $0x518] sm:$0xff]  ;;  %v1531_v62 = vld [vmem:[#allocation2 + $0x568] sm:$0xff] }
 0x446   : > { %v1384_v52 = vadd.f32 %v1382_v16, %v3548_v7  ;;  %v1391_v40 = vadd.f32 %v1389_v15, %v1377_v58  ;;  %v1417_v34 = vmul.f32 %v1415_v54, %v2788_v20  ;;  %v1424_v27 = vmul.f32 %v1422_v32, %v2825_v37  ;;  %v1510_v57 = vld [vmem:[#allocation2 + $0x538] sm:$0xff]  ;;  %v1471_v16 = vld [vmem:[#allocation2 + $0x4d0] sm:$0xff] }
 0x447   : > { %v1264_v5 = vadd.f32 %v1262_v31, %v1255_v56  ;;  %v1427_v18 = vadd.f32 %v1425_v19, %v1413_v59  ;;  %v1434_v30 = vadd.f32 %v1432_v14, %v1420_v26  ;;  %v1431_v3 = vmul.f32 %v1429_v51, %v2845_v4  ;;  %v1524_v56 = vld [vmem:[#allocation2 + $0x558] sm:$0xff]  ;;  %v1476_v31 = vld [vmem:[#allocation2 + $0x4e0] sm:$0xff]  ;;  %v1481_v59 = vld [vmem:[#allocation2 + $0x4f0] sm:$0xff] }
 0x448   : > { %v1398_v2 = vadd.f32 %v1396_v1, %v1384_v52  ;;  %v1405_v49 = vadd.f32 %v3549_v25, %v1391_v40  ;;  %v1438_v44 = vmul.f32 %v1436_v10, %v2865_v35  ;;  %v1474_v6 = vmul.f32 %v1472_v50, %v3550_v24  ;;  %v1538_v58 = vld [vmem:[#allocation2 + $0x578] sm:$0xff]  ;;  %v1488_v26 = vld [vmem:[#allocation2 + $0x500] sm:$0xff]  ;;  %v1495_v52 = vld [vmem:[#allocation2 + $0x510] sm:$0xff] }
 0x449   : > { %1266 = vrot.lane.b32.xlu0 %v1264_v5, %s2164_s28  ;;  %v1441_v39 = vadd.f32 %v1439_v33, %v1427_v18  ;;  %v1479_v28 = vmul.f32 %v1477_v60, %v2612_v11  ;;  %v1484_v19 = vmul.f32 %v1482_v42, %v2565_v21  ;;  %v1491_v14 = vmul.f32 %v1489_v63, %v2663_v23  ;;  %v1509_v40 = vld [vmem:[#allocation2 + $0x530] sm:$0xff]  ;;  %v3551_v60 = vld [vmem:[#allocation11_spill] sm:$0xff] }
 0x44a   : > { %v1412_v8 = vadd.f32 %v1410_v46, %v1398_v2  ;;  %v1419_v61 = vadd.f32 %v1417_v34, %v1405_v49  ;;  %v1498_v54 = vmul.f32 %v1496_v9, %v2708_v13  ;;  %v1512_v32 = vmul.f32 %v1510_v57, %v2753_v48  ;;  %v3552_v5 = vld [vmem:[#allocation17_spill] sm:$0xff]  ;;  %v1530_v25 = vld [vmem:[#allocation2 + $0x560] sm:$0xff] }
 0x44b   : > { %v1443_v15 = vadd.f32 %v1441_v39, %v1434_v30  ;;  %v1486_v1 = vadd.f32 %v1484_v19, %v1474_v6  ;;  %v1493_v51 = vadd.f32 %v1491_v14, %v1479_v28  ;;  %v1519_v33 = vmul.f32 %v1517_v55, %v2792_v17  ;;  %v1516_v30 = vld [vmem:[#allocation2 + $0x540] sm:$0xff]  ;;  %v1523_v2 = vld [vmem:[#allocation2 + $0x550] sm:$0xff]  ;;  %v1573_v19 = vld [vmem:[#allocation2 + $0x588] sm:$0xff] }
 0x44c   : > { %v1426_v10 = vadd.f32 %v1424_v27, %v1412_v8  ;;  %v1433_v50 = vadd.f32 %v1431_v3, %v1419_v61  ;;  %v1526_v7 = vmul.f32 %v1524_v56, %v2829_v0  ;;  %v1533_v46 = vmul.f32 %v1531_v62, %v2849_v47  ;;  %v1537_v28 = vld [vmem:[#allocation2 + $0x570] sm:$0xff]  ;;  %v1578_v8 = vld [vmem:[#allocation2 + $0x598] sm:$0xff]  ;;  %v1583_v61 = vld [vmem:[#allocation2 + $0x5a8] sm:$0xff] }
 0x44d   : > { %1446 = vrot.lane.b32.xlu1 %v1443_v15, %s2165_s11  ;;  %v1500_v34 = vadd.f32 %v1498_v54, %v1486_v1  ;;  %v1507_v42 = vadd.f32 %v3551_v60, %v1493_v51  ;;  %v1540_v63 = vmul.f32 %v1538_v58, %v2869_v29  ;;  %v1473_v18 = vmul.f32 %v1471_v16, %v3552_v5  ;;  %v1590_v54 = vld [vmem:[#allocation2 + $0x5b8] sm:$0xff]  ;;  %v1597_v1 = vld [vmem:[#allocation2 + $0x5c8] sm:$0xff] }
 0x44e   : > { %v1440_v9 = vadd.f32 %v1438_v44, %v1426_v10  ;;  %v1478_v27 = vmul.f32 %v1476_v31, %v3541_v53  ;;  %v1483_v3 = vmul.f32 %v1481_v59, %v3542_v45  ;;  %v1490_v57 = vmul.f32 %v1488_v26, %v3543_v43  ;;  %v1611_v51 = vld [vmem:[#allocation2 + $0x5e8] sm:$0xff]  ;;  %v1632_v60 = vld [vmem:[#allocation2 + $0x618] sm:$0xff] }
 0x44f   : > { %v1514_v49 = vadd.f32 %v1512_v32, %v1500_v34  ;;  %v1521_v6 = vadd.f32 %v1519_v33, %v1507_v42  ;;  %v1497_v55 = vmul.f32 %v1495_v52, %v2704_v12  ;;  %v1511_v39 = vmul.f32 %v1509_v40, %v2749_v41  ;;  %v3553_v31 = vld [vmem:[#allocation12_spill] sm:$0xff] }
 0x450   : > { %v1442_v14 = vadd.f32 %v1440_v9, %v1433_v50  ;;  %v1485_v56 = vadd.f32 %v1483_v3, %v1473_v18  ;;  %v1492_v62 = vadd.f32 %v1490_v57, %v1478_v27  ;;  %v1518_v44 = vmul.f32 %v1516_v30, %v2788_v20  ;;  %v1618_v50 = vld [vmem:[#allocation2 + $0x5f8] sm:$0xff]  ;;  %v1625_v34 = vld [vmem:[#allocation2 + $0x608] sm:$0xff]  ;;  %v1572_v3 = vld [vmem:[#allocation2 + $0x580] sm:$0xff] }
 0x451   : > { %v1528_v58 = vadd.f32 %v1526_v7, %v1514_v49  ;;  %v1535_v16 = vadd.f32 %v1533_v46, %v1521_v6  ;;  %v1525_v15 = vmul.f32 %v1523_v2, %v2825_v37  ;;  %v1532_v32 = vmul.f32 %v1530_v25, %v2845_v4  ;;  %v1639_v27 = vld [vmem:[#allocation2 + $0x628] sm:$0xff]  ;;  %v1577_v49 = vld [vmem:[#allocation2 + $0x590] sm:$0xff]  ;;  %v1582_v6 = vld [vmem:[#allocation2 + $0x5a0] sm:$0xff] }
 0x452   : > { %1444 = vrot.lane.b32.xlu0 %v1442_v14, %s2165_s11  ;;  %v1499_v33 = vadd.f32 %v1497_v55, %v1485_v56  ;;  %v1506_v59 = vadd.f32 %v3553_v31, %v1492_v62  ;;  %v1539_v26 = vmul.f32 %v1537_v28, %v2865_v35  ;;  %v1575_v10 = vmul.f32 %v1573_v19, %v3550_v24  ;;  %v1589_v55 = vld [vmem:[#allocation2 + $0x5b0] sm:$0xff]  ;;  %v1596_v56 = vld [vmem:[#allocation2 + $0x5c0] sm:$0xff] }
 0x453   : > { %v1542_v52 = vadd.f32 %v1540_v63, %v1528_v58  ;;  %v1580_v7 = vmul.f32 %v1578_v8, %v2612_v11  ;;  %v1585_v46 = vmul.f32 %v1583_v61, %v2565_v21  ;;  %v1592_v40 = vmul.f32 %v1590_v54, %v2663_v23  ;;  %v1610_v62 = vld [vmem:[#allocation2 + $0x5e0] sm:$0xff]  ;;  %v3554_v8 = vld [vmem:[#allocation13_spill] sm:$0xff] }
 0x454   : > { %v1513_v42 = vadd.f32 %v1511_v39, %v1499_v33  ;;  %v1520_v18 = vadd.f32 %v1518_v44, %v1506_v59  ;;  %v1599_v30 = vmul.f32 %v1597_v1, %v2708_v13  ;;  %v1613_v9 = vmul.f32 %v1611_v51, %v2753_v48  ;;  %v1624_v33 = vld [vmem:[#allocation2 + $0x600] sm:$0xff]  ;;  %v1631_v31 = vld [vmem:[#allocation2 + $0x610] sm:$0xff] }
 0x455   : > { %v1544_v57 = vadd.f32 %v1542_v52, %v1535_v16  ;;  %v1587_v2 = vadd.f32 %v1585_v46, %v1575_v10  ;;  %v1594_v25 = vadd.f32 %v1592_v40, %v1580_v7  ;;  %v1620_v63 = vmul.f32 %v1618_v50, %v2792_v17  ;;  %v1617_v16 = vld [vmem:[#allocation2 + $0x5f0] sm:$0xff]  ;;  %v1638_v7 = vld [vmem:[#allocation2 + $0x620] sm:$0xff]  ;;  %v1673_v46 = vld [vmem:[#allocation2 + $0x638] sm:$0xff] }
 0x456   : > { %v1527_v28 = vadd.f32 %v1525_v15, %v1513_v42  ;;  %v1534_v19 = vadd.f32 %v1532_v32, %v1520_v18  ;;  %v1627_v14 = vmul.f32 %v1625_v34, %v2829_v0  ;;  %v1634_v39 = vmul.f32 %v1632_v60, %v2849_v47  ;;  %v1678_v42 = vld [vmem:[#allocation2 + $0x648] sm:$0xff]  ;;  %v1683_v18 = vld [vmem:[#allocation2 + $0x658] sm:$0xff] }
 0x457   : > { %1547 = vrot.lane.b32.xlu1 %v1544_v57, %s2166_s12  ;;  %v1601_v44 = vadd.f32 %v1599_v30, %v1587_v2  ;;  %v1608_v61 = vadd.f32 %v3554_v8, %v1594_v25  ;;  %v1641_v54 = vmul.f32 %v1639_v27, %v2869_v29  ;;  %v1574_v58 = vmul.f32 %v1572_v3, %v3552_v5  ;;  %v1690_v30 = vld [vmem:[#allocation2 + $0x668] sm:$0xff]  ;;  %v1697_v2 = vld [vmem:[#allocation2 + $0x678] sm:$0xff] }
 0x458   : > { %v1541_v1 = vadd.f32 %v1539_v26, %v1527_v28  ;;  %v1579_v15 = vmul.f32 %v1577_v49, %v3541_v53  ;;  %v1584_v32 = vmul.f32 %v1582_v6, %v3542_v45  ;;  %v1591_v51 = vmul.f32 %v1589_v55, %v3543_v43  ;;  %v1711_v25 = vld [vmem:[#allocation2 + $0x698] sm:$0xff]  ;;  %v1732_v8 = vld [vmem:[#allocation2 + $0x6c8] sm:$0xff] }
 0x459   : > { %v1615_v59 = vadd.f32 %v1613_v9, %v1601_v44  ;;  %v1622_v10 = vadd.f32 %v1620_v63, %v1608_v61  ;;  %v1598_v50 = vmul.f32 %v1596_v56, %v2704_v12  ;;  %v1612_v52 = vmul.f32 %v1610_v62, %v2749_v41  ;;  %v3555_v49 = vld [vmem:[#allocation14_spill] sm:$0xff] }
 0x45a   : > { %v1543_v40 = vadd.f32 %v1541_v1, %v1534_v19  ;;  %v1586_v34 = vadd.f32 %v1584_v32, %v1574_v58  ;;  %v1593_v60 = vadd.f32 %v1591_v51, %v1579_v15  ;;  %v1619_v26 = vmul.f32 %v1617_v16, %v2788_v20  ;;  %v1718_v19 = vld [vmem:[#allocation2 + $0x6a8] sm:$0xff]  ;;  %v1725_v44 = vld [vmem:[#allocation2 + $0x6b8] sm:$0xff]  ;;  %v1672_v32 = vld [vmem:[#allocation2 + $0x630] sm:$0xff] }
 0x45b   : > { %v1629_v27 = vadd.f32 %v1627_v14, %v1615_v59  ;;  %v1636_v3 = vadd.f32 %v1634_v39, %v1622_v10  ;;  %v1626_v57 = vmul.f32 %v1624_v33, %v2825_v37  ;;  %v1633_v9 = vmul.f32 %v1631_v31, %v2845_v4  ;;  %v1739_v15 = vld [vmem:[#allocation2 + $0x6d8] sm:$0xff]  ;;  %v1677_v59 = vld [vmem:[#allocation2 + $0x640] sm:$0xff]  ;;  %v1682_v10 = vld [vmem:[#allocation2 + $0x650] sm:$0xff] }
 0x45c   : > { %1545 = vrot.lane.b32.xlu0 %v1543_v40, %s2166_s12  ;;  %v1600_v63 = vadd.f32 %v1598_v50, %v1586_v34  ;;  %v1607_v6 = vadd.f32 %v3555_v49, %v1593_v60  ;;  %v1640_v55 = vmul.f32 %v1638_v7, %v2865_v35  ;;  %v1675_v28 = vmul.f32 %v1673_v46, %v3550_v24  ;;  %v1689_v50 = vld [vmem:[#allocation2 + $0x660] sm:$0xff]  ;;  %v1696_v34 = vld [vmem:[#allocation2 + $0x670] sm:$0xff] }
 0x45d   : > { %v1643_v56 = vadd.f32 %v1641_v54, %v1629_v27  ;;  %v1680_v14 = vmul.f32 %v1678_v42, %v2612_v11  ;;  %v1685_v39 = vmul.f32 %v1683_v18, %v2565_v21  ;;  %v1692_v62 = vmul.f32 %v1690_v30, %v2663_v23  ;;  %v1710_v60 = vld [vmem:[#allocation2 + $0x690] sm:$0xff]  ;;  %v3556_v42 = vld [vmem:[#allocation15_spill] sm:$0xff] }
 0x45e   : > { %v1614_v61 = vadd.f32 %v1612_v52, %v1600_v63  ;;  %v1621_v58 = vadd.f32 %v1619_v26, %v1607_v6  ;;  %v1699_v16 = vmul.f32 %v1697_v2, %v2708_v13  ;;  %v1713_v1 = vmul.f32 %v1711_v25, %v2753_v48  ;;  %v1724_v63 = vld [vmem:[#allocation2 + $0x6b0] sm:$0xff] }
 0x45f   : > { %v1645_v51 = vadd.f32 %v1643_v56, %v1636_v3  ;;  %v1687_v33 = vadd.f32 %v1685_v39, %v1675_v28  ;;  %v1694_v31 = vadd.f32 %v1692_v62, %v1680_v14  ;;  %v1720_v54 = vmul.f32 %v1718_v19, %v2792_v17  ;;  %v1717_v3 = vld [vmem:[#allocation2 + $0x6a0] sm:$0xff]  ;;  %v1773_v14 = vld [vmem:[#allocation2 + $0x6e8] sm:$0xff] }
 0x460   : > { %v1628_v7 = vadd.f32 %v1626_v57, %v1614_v61  ;;  %v1635_v46 = vadd.f32 %v1633_v9, %v1621_v58  ;;  %v1727_v40 = vmul.f32 %v1725_v44, %v2829_v0  ;;  %v1734_v52 = vmul.f32 %v1732_v8, %v2849_v47  ;;  %v1731_v56 = vld [vmem:[#allocation2 + $0x6c0] sm:$0xff]  ;;  %v1778_v8 = vld [vmem:[#allocation2 + $0x6f8] sm:$0xff]  ;;  %v1783_v61 = vld [vmem:[#allocation2 + $0x708] sm:$0xff] }
 0x461   : > { %1648 = vrot.lane.b32.xlu1 %v1645_v51, %s2160_s26  ;;  %v1701_v26 = vadd.f32 %v1699_v16, %v1687_v33  ;;  %v1708_v18 = vadd.f32 %v3556_v42, %v1694_v31  ;;  %v1741_v30 = vmul.f32 %v1739_v15, %v2869_v29  ;;  %v1674_v27 = vmul.f32 %v1672_v32, %v3552_v5  ;;  %v1790_v58 = vld [vmem:[#allocation2 + $0x718] sm:$0xff]  ;;  %v1797_v51 = vld [vmem:[#allocation2 + $0x728] sm:$0xff] }
 0x462   : > { %v1642_v2 = vadd.f32 %v1640_v55, %v1628_v7  ;;  %v1679_v57 = vmul.f32 %v1677_v59, %v3541_v53  ;;  %v1684_v9 = vmul.f32 %v1682_v10, %v3542_v45  ;;  %v1691_v25 = vmul.f32 %v1689_v50, %v3543_v43  ;;  %v3557_v31 = vld [vmem:[#allocation16_spill] sm:$0xff] }
 0x463   : > { %v1715_v49 = vadd.f32 %v1713_v1, %v1701_v26  ;;  %v1722_v6 = vadd.f32 %v1720_v54, %v1708_v18  ;;  %v1698_v28 = vmul.f32 %v1696_v34, %v2704_v12  ;;  %v1712_v19 = vmul.f32 %v1710_v60, %v2749_v41  ;;  %v1738_v1 = vld [vmem:[#allocation2 + $0x6d0] sm:$0xff]  ;;  %v1811_v50 = vld [vmem:[#allocation2 + $0x748] sm:$0xff]  ;;  %v1804_v34 = vld [vmem:[#allocation2 + $0x738] sm:$0xff] }
 0x464   : > { %v1644_v39 = vadd.f32 %v1642_v2, %v1635_v46  ;;  %v1686_v62 = vadd.f32 %v1684_v9, %v1674_v27  ;;  %v1693_v44 = vadd.f32 %v1691_v25, %v1679_v57  ;;  %v1719_v55 = vmul.f32 %v1717_v3, %v2788_v20  ;;  %v1818_v60 = vld [vmem:[#allocation2 + $0x758] sm:$0xff]  ;;  %v1825_v3 = vld [vmem:[#allocation2 + $0x768] sm:$0xff]  ;;  %v1772_v57 = vld [vmem:[#allocation2 + $0x6e0] sm:$0xff] }
 0x465   : > { %v1729_v16 = vadd.f32 %v1727_v40, %v1715_v49  ;;  %v1736_v15 = vadd.f32 %v1734_v52, %v1722_v6  ;;  %v1726_v32 = vmul.f32 %v1724_v63, %v2825_v37  ;;  %v1733_v59 = vmul.f32 %v1731_v56, %v2845_v4  ;;  %v1832_v2 = vld [vmem:[#allocation2 + $0x778] sm:$0xff]  ;;  %v1777_v49 = vld [vmem:[#allocation2 + $0x6f0] sm:$0xff]  ;;  %v1782_v6 = vld [vmem:[#allocation2 + $0x700] sm:$0xff] }
 0x466   : > { %1646 = vrot.lane.b32.xlu0 %v1644_v39, %s2160_s26  ;;  %v1700_v33 = vadd.f32 %v1698_v28, %v1686_v62  ;;  %v1707_v54 = vadd.f32 %v3557_v31, %v1693_v44  ;;  %v1775_v10 = vmul.f32 %v1773_v14, %v3550_v24  ;;  %v1780_v46 = vmul.f32 %v1778_v8, %v2612_v11  ;;  %v1789_v28 = vld [vmem:[#allocation2 + $0x710] sm:$0xff]  ;;  %v3558_v39 = vld [vmem:[#allocation6_spill] sm:$0xff]  ;;  %v1839_v44 = vld [vmem:[#allocation2 + $0x788] sm:$0xff] }
 0x467   : > { %v1743_v7 = vadd.f32 %v1741_v30, %v1729_v16  ;;  %v1785_v40 = vmul.f32 %v1783_v61, %v2565_v21  ;;  %v1792_v52 = vmul.f32 %v1790_v58, %v2663_v23  ;;  %v1740_v18 = vmul.f32 %v1738_v1, %v2865_v35 }
 0x468   : > { %v1714_v26 = vadd.f32 %v1712_v19, %v1700_v33  ;;  %v1721_v42 = vadd.f32 %v1719_v55, %v1707_v54  ;;  %v1799_v27 = vmul.f32 %v1797_v51, %v2708_v13  ;;  %v1813_v63 = vmul.f32 %v1811_v50, %v2753_v48  ;;  %v1796_v55 = vld [vmem:[#allocation2 + $0x720] sm:$0xff]  ;;  %v1803_v50 = vld [vmem:[#allocation2 + $0x730] sm:$0xff] }
 0x469   : > { %v1745_v9 = vadd.f32 %v1743_v7, %v1736_v15  ;;  %v1787_v25 = vadd.f32 %v1785_v40, %v1775_v10  ;;  %v1794_v30 = vadd.f32 %v1792_v52, %v1780_v46  ;;  %v1806_v19 = vmul.f32 %v1804_v34, %v3558_v39  ;;  %v1810_v15 = vld [vmem:[#allocation2 + $0x740] sm:$0xff]  ;;  %v1817_v7 = vld [vmem:[#allocation2 + $0x750] sm:$0xff] }
 0x46a   : > { %v1728_v56 = vadd.f32 %v1726_v32, %v1714_v26  ;;  %v1735_v14 = vadd.f32 %v1733_v59, %v1721_v42  ;;  %v1820_v62 = vmul.f32 %v1818_v60, %v2792_v17  ;;  %v1827_v61 = vmul.f32 %v1825_v3, %v2829_v0  ;;  %v1824_v46 = vld [vmem:[#allocation2 + $0x760] sm:$0xff] }
 0x46b   : > { %1748 = vrot.lane.b32.xlu1 %v1745_v9, %s2162_s30  ;;  %v1801_v8 = vadd.f32 %v1799_v27, %v1787_v25  ;;  %v1834_v58 = vmul.f32 %v1832_v2, %v2849_v47  ;;  %v1774_v16 = vmul.f32 %v1772_v57, %v3552_v5  ;;  %v1779_v32 = vmul.f32 %v1777_v49, %v3541_v53  ;;  %v1838_v27 = vld [vmem:[#allocation2 + $0x780] sm:$0xff]  ;;  %v3559_v2 = vld [vmem:[#allocation5_spill] sm:$0xff] }
 0x46c   : > { %v1742_v1 = vadd.f32 %v1740_v18, %v1728_v56  ;;  %v1784_v51 = vmul.f32 %v1782_v6, %v3542_v45  ;;  %v1791_v33 = vmul.f32 %v1789_v28, %v3543_v43  ;;  %v1808_v31 = vadd.f32 %v1806_v19, %v1794_v30  ;;  %v1831_v18 = vld [vmem:[#allocation2 + $0x770] sm:$0xff] }
 0x46d   : > { %v1815_v54 = vadd.f32 %v1813_v63, %v1801_v8  ;;  %v1841_v59 = vmul.f32 %v1839_v44, %v2869_v29  ;;  %v1798_v10 = vmul.f32 %v1796_v55, %v2704_v12  ;;  %v1812_v60 = vmul.f32 %v1810_v15, %v2749_v41 }
 0x46e   : > { %v1744_v40 = vadd.f32 %v1742_v1, %v1735_v14  ;;  %v1786_v52 = vadd.f32 %v1784_v51, %v1774_v16  ;;  %v1793_v34 = vadd.f32 %v1791_v33, %v1779_v32  ;;  %v1822_v26 = vadd.f32 %v1820_v62, %v1808_v31  ;;  %v3057_v16 = vld [vmem:[%s3432_s7] ss:$2 sm:$0x3] }
 0x46f   : > { %v1829_v42 = vadd.f32 %v1827_v61, %v1815_v54  ;;  %v1805_v57 = vmul.f32 %v1803_v50, %v3559_v2  ;;  %v1819_v9 = vmul.f32 %v1817_v7, %v2788_v20  ;;  %v1826_v25 = vmul.f32 %v1824_v46, %v2825_v37  ;;  %v1324_v7 = vld [vmem:[#allocation2 + $0x3c0] sm:$0xff]  ;;  %v1325_v46 = vld [vmem:[#allocation2 + $0x3c8] sm:$0xff] }
 0x470   : > { %1746 = vrot.lane.b32.xlu0 %v1744_v40, %s2162_s30  ;;  %v1800_v3 = vadd.f32 %v1798_v10, %v1786_v52  ;;  %v1836_v30 = vadd.f32 %v1834_v58, %v1822_v26  ;;  %v1833_v28 = vmul.f32 %v1831_v18, %v2845_v4  ;;  %v1840_v56 = vmul.f32 %v1838_v27, %v2865_v35  ;;  %v1293_v18 = vld [vmem:[#allocation2 + $0x370] sm:$0xff]  ;;  %v1294_v27 = vld [vmem:[#allocation2 + $0x378] sm:$0xff] }
 0x471   : > { %v1843_v63 = vadd.f32 %v1841_v59, %v1829_v42  ;;  %v1807_v49 = vadd.f32 %v1805_v57, %v1793_v34  ;;  %v869_v1 = vadd.s32 4294967291, %v3057_v16  ;;  %v1071_v51 = vadd.s32 4294967293, %v3057_v16 }
 0x472   : > { %v1814_v6 = vadd.f32 %v1812_v60, %v1800_v3  ;;  %v970_v33 = vadd.s32 4294967292, %v3057_v16  ;;  %v1172_v31 = vadd.s32 4294967294, %v3057_v16  ;;  %v1273_v59 = vadd.s32 4294967295, %v3057_v16  ;;  %v1303_v3 = vld [vmem:[#allocation2 + $0x390] sm:$0xff] }
 0x473   : > { %v1845_v14 = vadd.f32 %v1843_v63, %v1836_v30  ;;  %v1821_v19 = vadd.f32 %v1819_v9, %v1807_v49  ;;  %vm870_vm13 = vcmp.ge.s32.totalorder %v869_v1, 0  ;;  %vm871_vm14 = vcmp.lt.s32.totalorder %v869_v1, 16 }
 0x474   : > { %v1828_v62 = vadd.f32 %v1826_v25, %v1814_v6  ;;  %vm1072_vm15 = vcmp.ge.s32.totalorder %v1071_v51, 0  ;;  %vm1073_vm0 = vcmp.lt.s32.totalorder %v1071_v51, 16  ;;  %vm971_vm2 = vcmp.ge.s32.totalorder %v970_v33, 0  ;;  %vm872_vm4 = vmand %vm870_vm13, %vm871_vm14  ;;  %v1298_v6 = vld [vmem:[#allocation2 + $0x380] sm:$0xff]  ;;  %v1311_v51 = vld [vmem:[#allocation2 + $0x3a8] sm:$0xff] }
 0x475   : > { %1848 = vrot.lane.b32.xlu1 %v1845_v14, %s2161_s29  ;;  %v1835_v44 = vadd.f32 %v1833_v28, %v1821_v19  ;;  %vm972_vm3 = vcmp.lt.s32.totalorder %v970_v33, 16  ;;  %vm1173_vm7 = vcmp.ge.s32.totalorder %v1172_v31, 0  ;;  %vm1174_vm8 = vcmp.lt.s32.totalorder %v1172_v31, 16  ;;  %vm1074_vm9 = vmand %vm1072_vm15, %vm1073_vm0  ;;  %v1310_v28 = vld [vmem:[#allocation2 + $0x3a0] sm:$0xff]  ;;  %v1304_v19 = vld [vmem:[#allocation2 + $0x398] sm:$0xff] }
 0x476   : > { %v1842_v55 = vadd.f32 %v1840_v56, %v1828_v62  ;;  %vm973_vm10 = vmand %vm971_vm2, %vm972_vm3  ;;  %vm1274_vm11 = vcmp.ge.s32.totalorder %v1273_v59, 0  ;;  %vm1275_vm1 = vcmp.lt.s32.totalorder %v1273_v59, 16  ;;  %v3560_v40 = vmov 0   ;;  %v1317_v33 = vld [vmem:[#allocation2 + $0x3b0] sm:$0xff]  ;;  %v1299_v59 = vld [vmem:[#allocation2 + $0x388] sm:$0xff] }
 0x477   : > { %vm1175_vm5 = vmand %vm1173_vm7, %vm1174_vm8  ;;  %v3075_v52 = vsel %vm872_vm4, 1, %v3560_v40  ;;  %v3078_v34 = vsel %vm1074_vm9, 1, %v3560_v40  ;;  %v3081_v60 = vsel %vm973_vm10, 1, %v3560_v40  ;;  %v3089_v57 = vmul.f32 %v1324_v7, %v3559_v2  ;;  %v1345_v62 = vld [vmem:[#allocation2 + $0x3f0] sm:$0xff]  ;;  %v1346_v25 = vld [vmem:[#allocation2 + $0x3f8] sm:$0xff] }
 0x478   : > { %v1844_v8 = vadd.f32 %v1842_v55, %v1835_v44  ;;  %vm1276_vm6 = vmand %vm1274_vm11, %vm1275_vm1  ;;  %v3086_v42 = vsel %vm1175_vm5, 1, %v3560_v40  ;;  %v3092_v9 = vmul.f32 %v1325_v46, %v3558_v39  ;;  %v1079_v63 = vrot.slane %v3078_v34, %v2252_v36  ;;  %v1318_v39 = vld [vmem:[#allocation2 + $0x3b8] sm:$0xff] }
 0x479   : > { %v3107_v56 = vsel %vm1276_vm6, 1, %v3560_v40  ;;  %v1451_v14 = vadd.s32 1, %v3057_v16  ;;  %v1295_v55 = vmul.f32 %v1293_v18, %v3552_v5  ;;  %v1305_v1 = vmul.f32 %v1303_v3, %v3542_v45 }
 0x47a   : > { %1846 = vrot.lane.b32.xlu0 %v1844_v8, %s2161_s29  ;;  %v1296_v8 = vmul.f32 %v1294_v27, %v3550_v24  ;;  %v1300_v7 = vmul.f32 %v1298_v6, %v3541_v53  ;;  %v1312_v46 = vmul.f32 %v1310_v28, %v3543_v43  ;;  %v1552_v2 = vadd.s32 2, %v3057_v16  ;;  %v1331_v27 = vld [vmem:[#allocation2 + $0x3d0] sm:$0xff]  ;;  %v1332_v6 = vld [vmem:[#allocation2 + $0x3d8] sm:$0xff]  ;;  %v1338_v24 = vld [vmem:[#allocation2 + $0x3e0] sm:$0xff] }
 0x47b   : > { %v1306_v18 = vmul.f32 %v1304_v19, %v2565_v21  ;;  %v1652_v3 = vadd.s32 3, %v3057_v16  ;;  %vm1452_vm12 = vcmp.ge.s32.totalorder %v1451_v14, 0  ;;  %vm1453_vm13 = vcmp.lt.s32.totalorder %v1451_v14, 16  ;;  %v1352_v14 = vld [vmem:[#allocation2 + $0x400] sm:$0xff] }
 0x47c   : > { %v1313_v53 = vmul.f32 %v1311_v51, %v2663_v23  ;;  %v1319_v43 = vmul.f32 %v1317_v33, %v2704_v12  ;;  %v1301_v28 = vmul.f32 %v1299_v59, %v2612_v11  ;;  %v1307_v5 = vadd.f32 %v1305_v1, %v1295_v55  ;;  %vm3140_vm0 = vmand %vm1452_vm12, %vm1453_vm13  ;;  %v1339_v55 = vld [vmem:[#allocation2 + $0x3e8] sm:$0xff]  ;;  %v1360_v33 = vld [vmem:[#allocation2 + $0x418] sm:$0xff] }
 0x47d   : > { %v1320_v31 = vmul.f32 %v1318_v39, %v2708_v13  ;;  %v1752_v30 = vadd.s32 4, %v3057_v16  ;;  %v1314_v21 = vadd.f32 %v1312_v46, %v1300_v7  ;;  %v1333_v19 = vmul.f32 %v1331_v27, %v2749_v41  ;;  %v1359_v13 = vld [vmem:[#allocation2 + $0x410] sm:$0xff] }
 0x47e   : > { %vm1553_vm14 = vcmp.ge.s32.totalorder %v1552_v2, 0  ;;  %vm1554_vm15 = vcmp.lt.s32.totalorder %v1552_v2, 16  ;;  %v1308_v11 = vadd.f32 %v1306_v18, %v1296_v8  ;;  %v1334_v12 = vmul.f32 %v1332_v6, %v2753_v48  ;;  %v1353_v48 = vld [vmem:[#allocation2 + $0x408] sm:$0xff] }
 0x47f   : > { %vm1653_vm2 = vcmp.ge.s32.totalorder %v1652_v3, 0  ;;  %vm1654_vm3 = vcmp.lt.s32.totalorder %v1652_v3, 16  ;;  %vm3450_vm4 = vcmp.lt.s32.totalorder %v2305_v22, 48  ;;  %v1315_v41 = vadd.f32 %v1313_v53, %v1301_v28  ;;  %vm3153_vm7 = vmand %vm1553_vm14, %vm1554_vm15 }
 0x480   : > { %v1321_v39 = vadd.f32 %v1319_v43, %v1307_v5  ;;  %v1340_v1 = vmul.f32 %v1338_v24, %v2788_v20  ;;  %v1347_v51 = vmul.f32 %v1345_v62, %v2825_v37  ;;  %v1322_v7 = vadd.f32 %v1320_v31, %v1308_v11  ;;  %vm3166_vm1 = vmand %vm1653_vm2, %vm1654_vm3 }
 0x481   : > { %v1348_v8 = vmul.f32 %v1346_v25, %v2829_v0  ;;  %vm1753_vm8 = vcmp.ge.s32.totalorder %v1752_v30, 0  ;;  %vm1754_vm9 = vcmp.lt.s32.totalorder %v1752_v30, 16  ;;  %v1455_v20 = vsel %vm3140_vm0, 1, %v3560_v40 }
 0x482   : > { %v1328_v37 = vadd.f32 %v3089_v57, %v1314_v21  ;;  %v1335_v0 = vadd.f32 %v1333_v19, %v1321_v39  ;;  %v1361_v25 = vmul.f32 %v1359_v13, %v2865_v35  ;;  %vm3173_vm5 = vcmp.eq.s32.totalorder %v1079_v63, 1  ;;  %vm3193_vm14 = vmand %vm1753_vm8, %vm1754_vm9 }
 0x483   : > { %v3569_v31 = vrot.slane %v3078_v34, %v2254_v38  ;;  %v1336_v35 = vadd.f32 %v1334_v12, %v1322_v7  ;;  %v1341_v5 = vmul.f32 %v1339_v55, %v2792_v17  ;;  %v1354_v24 = vmul.f32 %v1352_v14, %v2845_v4 }
 0x484   : > { %v1362_v18 = vmul.f32 %v1360_v33, %v2869_v29  ;;  %v1329_v63 = vadd.f32 %v3092_v9, %v1315_v41  ;;  %v1342_v27 = vadd.f32 %v1340_v1, %v1328_v37  ;;  %v1349_v3 = vadd.f32 %v1347_v51, %v1335_v0 }
 0x485   : > { %vm3180_vm6 = vcmp.eq.s32.totalorder %v3569_v31, 1  ;;  %v1355_v34 = vmul.f32 %v1353_v48, %v2849_v47  ;;  %v3574_v17 = vrot.slane %v3075_v52, %v2252_v36  ;;  %v3577_v29 = vrot.slane %v3075_v52, %v2254_v38 }
 0x486   : > { %v3580_v47 = vrot.slane %v3086_v42, %v2252_v36  ;;  %v1350_v6 = vadd.f32 %v1348_v8, %v1336_v35  ;;  %v1556_v28 = vsel %vm3153_vm7, 1, %v3560_v40  ;;  %v1656_v52 = vsel %vm3166_vm1, 1, %v3560_v40 }
 0x487   : > { %vm3200_vm15 = vcmp.eq.s32.totalorder %v3574_v17, 1  ;;  %vm3207_vm0 = vcmp.eq.s32.totalorder %v3577_v29, 1  ;;  %v1852_v21 = vadd.s32 5, %v3057_v16  ;;  %v3583_v19 = vrot.slane %v3081_v60, %v2252_v36 }
 0x488   : > { %vm3214_vm2 = vcmp.eq.s32.totalorder %v3580_v47, 1  ;;  %v3586_v11 = vrot.slane %v3081_v60, %v2254_v38  ;;  %v3589_v13 = vrot.slane %v3086_v42, %v2254_v38  ;;  %v1459_v16 = vrot.slane %v1455_v20, %v2252_v36 }
 0x489   : > { %vm3230_vm3 = vcmp.eq.s32.totalorder %v3583_v19, 1  ;;  %v1463_v39 = vrot.slane %v1455_v20, %v2254_v38  ;;  %v1363_v55 = vadd.f32 %v1361_v25, %v1349_v3  ;;  %v3592_v1 = vrot.slane %v3107_v56, %v2252_v36 }
 0x48a   : > { %vm3237_vm8 = vcmp.eq.s32.totalorder %v3586_v11, 1  ;;  %vm3244_vm7 = vcmp.eq.s32.totalorder %v3589_v13, 1  ;;  %v3593_v60 = vmov 0  ;;  %v1343_v51 = vadd.f32 %v1341_v5, %v1329_v63 }
 0x48b   : > { %vm3253_vm9 = vcmp.eq.s32.totalorder %v3592_v1, 1  ;;  %v1356_v42 = vadd.f32 %v1354_v24, %v1342_v27  ;;  %v1364_v14 = vadd.f32 %v1362_v18, %v1350_v6  ;;  %v1756_v7 = vsel %vm3193_vm14, 1, %v3560_v40 }
 0x48c   : > { %v3594_v60 = vsel %vm3253_vm9, 4294967295, %v3593_v60  ;;  %v1560_v8 = vrot.slane %v1556_v28, %v2252_v36  ;;  %v1564_v48 = vrot.slane %v1556_v28, %v2254_v38  ;;  %v1660_v46 = vrot.slane %v1656_v52, %v2252_v36 }
 0x48d   : > { %v1664_v20 = vrot.slane %v1656_v52, %v2254_v38  ;;  %v3595_v37 = vrot.slane %v3107_v56, %v2254_v38  ;;  %v3596_v0 = vmov 0  ;;  %v1357_v25 = vadd.f32 %v1355_v34, %v1343_v51 }
 0x48e   : > { %vm3272_vm11 = vcmp.eq.s32.totalorder %v1459_v16, 1  ;;  %v3598_v2 = vmov 0  ;;  %vm3276_vm14 = vcmp.eq.s32.totalorder %v1463_v39, 1  ;;  %v3600_v31 = vmov 0 }
 0x48f   : > { %vm3268_vm1 = vcmp.eq.s32.totalorder %v3595_v37, 1  ;;  %v3599_v2 = vsel %vm3272_vm11, 4294967295, %v3598_v2  ;;  %v3601_v31 = vsel %vm3276_vm14, 4294967295, %v3600_v31  ;;  %v1365_v35 = vadd.f32 %v1363_v55, %v1356_v42 }
 0x490   : > { %v3597_v0 = vsel %vm3268_vm1, 4294967295, %v3596_v0  ;;  %v1760_v56 = vrot.slane %v1756_v7, %v2252_v36  ;;  %v1366_v18 = vadd.f32 %v1364_v14, %v1357_v25  ;;  %v1764_v27 = vrot.slane %v1756_v7, %v2254_v38 }
 0x491   : > { %vm3291_vm13 = vcmp.eq.s32.totalorder %v1560_v8, 1  ;;  %vm3295_vm10 = vcmp.eq.s32.totalorder %v1564_v48, 1  ;;  %v3604_v34 = vmov 0  ;;  %vm3299_vm12 = vcmp.eq.s32.totalorder %v1660_v46, 1 }
 0x492   : > { %v3605_v34 = vsel %vm3295_vm10, 4294967295, %v3604_v34  ;;  %v3606_v53 = vmov 0  ;;  %vm3303_vm14 = vcmp.eq.s32.totalorder %v1664_v20, 1  ;;  %v3608_v17 = vmov 0 }
 0x493   : > { %v3607_v53 = vsel %vm3299_vm12, 4294967295, %v3606_v53  ;;  %v3609_v17 = vsel %vm3303_vm14, 4294967295, %v3608_v17  ;;  %vm3611_vm11 = vcmp.ge.s32.totalorder %v1852_v21, 0  ;;  %vm3612_vm9 = vcmp.lt.s32.totalorder %v2305_v22, 80 }
 0x494   : > { %vm3613_vm10 = vmmov %vm3612_vm9  ;;  %vm3614_vm12 = vcmp.lt.s32.totalorder %v2305_v22, 32 }
 0x495   : > { %vm3615_vm14 = vmmov %vm3614_vm12 }
 0x4a1   : > { %v3052_v58 = vpop.permute.xlu0 %862 }
 0x4a2   : > { %v3050_v61 = vpop.permute.xlu1 %864 }
 0x4a5   : > { %v3062_v32 = vpop.permute.xlu0 %1064 }
 0x4a6   : > { %v3059_v15 = vpop.permute.xlu1 %1066 }
 0x4a7   : > { %v1069_v5 = vsel %vm3450_vm4, %v3062_v32, %v3059_v15  ;;  %v1070_v24 = vsel %vm3450_vm4, %v3059_v15, %v3062_v32  ;;  %vm3610_vm4 = vcmp.lt.s32.totalorder %v1852_v21, 16  ;;  %v867_v15 = vsel %vm3612_vm9, %v3052_v58, %v3050_v61 }
 0x4a8   : > { %vm1855_vm1 = vmand %vm3611_vm11, %vm3610_vm4  ;;  %v868_v32 = vsel %vm3613_vm10, %v3050_v61, %v3052_v58  ;;  %v1086_v28 = vsel %vm3173_vm5, %v1070_v24, 0.0  ;;  %v1087_v52 = vsel %vm3180_vm6, %v1069_v5, 0.0  ;;  %vm3616_vm4 = vcmp.lt.s32.totalorder %v2305_v22, 64 }
 0x4a9   : > { %v3070_v10 = vpop.permute.xlu0 %963  ;;  %vm3617_vm10 = vmmov %vm3616_vm4  ;;  %vm3337_vm11 = vcmp.eq.s32.totalorder %v1760_v56, 1  ;;  %vm3620_vm5 = vcmp.lt.s32.totalorder %v2305_v22, 16  ;;  %v885_v57 = vsel %vm3207_vm0, %v867_v15, 0.0  ;;  %vm3625_vm0 = vnez %v3597_v0 }
 0x4aa   : > { %v3067_v54 = vpop.permute.xlu1 %965  ;;  %vm3621_vm6 = vmmov %vm3620_vm5 }
 0x4ab   : > { %v968_v61 = vsel %vm3616_vm4, %v3070_v10, %v3067_v54  ;;  %v969_v58 = vsel %vm3617_vm10, %v3067_v54, %v3070_v10  ;;  %v1856_v54 = vsel %vm1855_vm1, 1, %v3560_v40  ;;  %v884_v10 = vsel %vm3200_vm15, %v868_v32, 0.0  ;;  %vm3630_vm1 = vmmov %vm3612_vm9 }
 0x4ac   : > { %v1088_v13 = vadd.f32 %v1086_v28, %v884_v10  ;;  %v986_v40 = vsel %vm3237_vm8, %v968_v61, 0.0  ;;  %vm3624_vm15 = vnez %v3594_v60  ;;  %v1860_v42 = vrot.slane %v1856_v54, %v2252_v36 }
 0x4ad   : > { %vm3632_vm4 = vnez %v3601_v31  ;;  %vm3633_vm10 = vnez %v3605_v34 }
 0x4ae   : > { %v3072_v50 = vpop.permute.xlu1 %1167 }
 0x4b0   : > { %v3083_v26 = vpop.permute.xlu0 %1165 }
 0x4b1   : > { %v1170_v29 = vsel %vm3614_vm12, %v3083_v26, %v3072_v50  ;;  %v1171_v47 = vsel %vm3615_vm14, %v3072_v50, %v3083_v26  ;;  %vm3349_vm12 = vcmp.eq.s32.totalorder %v1764_v27, 1  ;;  %vm3631_vm14 = vnez %v3599_v2 }
 0x4b2   : > { %v1187_v19 = vsel %vm3214_vm2, %v1171_v47, 0.0  ;;  %v1188_v11 = vsel %vm3244_vm7, %v1170_v29, 0.0  ;;  %vm3626_vm2 = vcmp.lt.s32.totalorder %v2305_v22, 112 }
 0x4b3   : > { %vm3627_vm7 = vmmov %vm3626_vm2  ;;  %v1190_v12 = vadd.f32 %v1188_v11, %v986_v40 }
 0x4b5   : > { %v1368_v46 = vadd.f32 %v1366_v18, %v1190_v12 }
 0x4b6   : > { %v3112_v44 = vpop.permute.xlu1 %1268 }
 0x4bb   : > { %v3126_v45 = vpop.permute.xlu0 %1266 }
 0x4bc   : > { %v1271_v50 = vsel %vm3620_vm5, %v3126_v45, %v3112_v44  ;;  %v1272_v26 = vsel %vm3621_vm6, %v3112_v44, %v3126_v45  ;;  %v1089_v44 = vadd.f32 %v1087_v52, %v885_v57  ;;  %v985_v45 = vsel %vm3230_vm3, %v969_v58, 0.0  ;;  %v1889_v52 = vld [vmem:[%s3430_s5] sm:$0xff] }
 0x4bd   : > { %v1288_v4 = vsel %vm3624_vm15, %v1272_v26, 0.0  ;;  %v1289_v9 = vsel %vm3625_vm0, %v1271_v50, 0.0  ;;  %v1189_v41 = vadd.f32 %v1187_v19, %v985_v45  ;;  %vm3628_vm3 = vcmp.lt.s32.totalorder %v2305_v22, 96 }
 0x4be   : > { %vm3629_vm8 = vmmov %vm3628_vm3  ;;  %v1291_v14 = vadd.f32 %v1289_v9, %v1089_v44  ;;  %vm3634_vm5 = vcmp.lt.s32.totalorder %v2305_v22, 64  ;;  %vm3636_vm15 = vnez %v3607_v53  ;;  %vm3637_vm0 = vnez %v3609_v17 }
 0x4bf   : > { %v3136_v49 = vpop.permute.xlu1 %1446  ;;  %vm3635_vm6 = vmmov %vm3634_vm5 }
 0x4c4   : > { %v3148_v59 = vpop.permute.xlu0 %1444 }
 0x4c5   : > { %v1449_v30 = vsel %vm3626_vm2, %v3148_v59, %v3136_v49  ;;  %v1450_v23 = vsel %vm3627_vm7, %v3136_v49, %v3148_v59  ;;  %v1864_v49 = vrot.slane %v1856_v54, %v2254_v38  ;;  %v1290_v59 = vadd.f32 %v1288_v4, %v1088_v13  ;;  %v1897_v54 = vld [vmem:[%s3431_s6] sm:$0xff] }
 0x4c6   : > { %v1466_v7 = vsel %vm3631_vm14, %v1449_v30, 0.0  ;;  %v1467_v8 = vsel %vm3632_vm4, %v1450_v23, 0.0  ;;  %v1367_v38 = vadd.f32 %v1365_v35, %v1189_v41  ;;  %vm3638_vm7 = vcmp.lt.s32.totalorder %v2305_v22, 48 }
 0x4c7   : > { %v1468_v25 = vadd.f32 %v1466_v7, %v1290_v59  ;;  %v1469_v2 = vadd.f32 %v1467_v8, %v1291_v14  ;;  %vm1866_vm2 = vcmp.eq.s32.totalorder %v1864_v49, 1 }
 0x4c9   : > { %v3218_v43 = vpop.permute.xlu1 %1547 }
 0x4ce   : > { %v1546_v33 = vpop.permute.xlu0 %1545 }
 0x4cf   : > { %v1550_v39 = vsel %vm3628_vm3, %v1546_v33, %v3218_v43  ;;  %v1551_v55 = vsel %vm3629_vm8, %v3218_v43, %v1546_v33  ;;  %vm3639_vm3 = vmmov %vm3638_vm7 }
 0x4d0   : > { %v1567_v43 = vsel %vm3291_vm13, %v1550_v39, 0.0  ;;  %v1568_v33 = vsel %vm3633_vm10, %v1551_v55, 0.0  ;;  %vm1865_vm13 = vcmp.eq.s32.totalorder %v1860_v42, 1 }
 0x4d1   : > { %v1569_v31 = vadd.f32 %v1567_v43, %v1367_v38  ;;  %v1570_v56 = vadd.f32 %v1568_v33, %v1368_v46 }
 0x4d3   : > { %v1649_v63 = vpop.permute.xlu1 %1648 }
 0x4d8   : > { %v1647_v6 = vpop.permute.xlu0 %1646 }
 0x4d9   : > { %v1650_v60 = vsel %vm3612_vm9, %v1647_v6, %v1649_v63  ;;  %v1651_v51 = vsel %vm3630_vm1, %v1649_v63, %v1647_v6 }
 0x4da   : > { %v1667_v20 = vsel %vm3636_vm15, %v1650_v60, 0.0  ;;  %v1668_v37 = vsel %vm3637_vm0, %v1651_v51, 0.0 }
 0x4db   : > { %v1669_v18 = vadd.f32 %v1667_v20, %v1468_v25  ;;  %v1670_v63 = vadd.f32 %v1668_v37, %v1469_v2 }
 0x4dd   : > { %v1749_v16 = vpop.permute.xlu1 %1748 }
 0x4e2   : > { %v1747_v1 = vpop.permute.xlu0 %1746 }
 0x4e3   : > { %v1750_v48 = vsel %vm3634_vm5, %v1747_v1, %v1749_v16  ;;  %v1751_v36 = vsel %vm3635_vm6, %v1749_v16, %v1747_v1 }
 0x4e4   : > { %v1767_v5 = vsel %vm3337_vm11, %v1750_v48, 0.0  ;;  %v1768_v35 = vsel %vm3349_vm12, %v1751_v36, 0.0 }
 0x4e5   : > { %v1769_v17 = vadd.f32 %v1767_v5, %v1569_v31  ;;  %v1770_v15 = vadd.f32 %v1768_v35, %v1570_v56 }
 0x4e7   : > { %v1849_v0 = vpop.permute.xlu1 %1848 }
 0x4ec   : > { %v1847_v24 = vpop.permute.xlu0 %1846 }
 0x4ed   : > { %v1850_v27 = vsel %vm3638_vm7, %v1847_v24, %v1849_v0  ;;  %v1851_v3 = vsel %vm3639_vm3, %v1849_v0, %v1847_v24 }
 0x4ee   : > { %v1867_v34 = vsel %vm1865_vm13, %v1850_v27, 0.0  ;;  %v1868_v53 = vsel %vm1866_vm2, %v1851_v3, 0.0 }
 0x4ef   : > { %v1869_v32 = vadd.f32 %v1867_v34, %v1669_v18  ;;  %v1870_v29 = vadd.f32 %v1868_v53, %v1670_v63 }
 0x4f1   : > { %v1871_v47 = vadd.f32 %v1869_v32, %v1769_v17  ;;  %v1872_v6 = vadd.f32 %v1870_v29, %v1770_v15 }
 0x4f3   : > { %v1873_v28 = vadd.f32 %v1872_v6, %v1871_v47 }
 0x4f5   : > { %1874 = vadd.xlane.f32.xlu0 %v1873_v28 }
 0x50b   : > { %1892 = vperm.xlu0 %2086, %v1889_v52  }
 0x57e   : > { %v1875_v61 = vpop.xlane.xlu0 %1874 }
 0x57f   : > { %v1876_v58 = vmul.f32 0.00390625, %v1875_v61 }
 0x581   : > { %v1877_v21 = vsub.f32 %v1871_v47, %v1876_v58  ;;  %v1878_v22 = vsub.f32 %v1872_v6, %v1876_v58 }
 0x583   : > { %v1879_v50 = vmul.f32 %v1877_v21, %v1877_v21  ;;  %v1880_v26 = vmul.f32 %v1878_v22, %v1878_v22 }
 0x585   : > { %v1881_v62 = vadd.f32 %v1880_v26, %v1879_v50 }
 0x586   : > { %v1893_v45 = vpop.permute.xlu0 %1892 }
 0x587   : > { %1882 = vadd.xlane.f32.xlu1 %v1881_v62 }
 0x598   : > { %1900 = vperm.xlu1 %2087, %v1897_v54  }
 0x610   : > { %v1883_v10 = vpop.xlane.xlu1 %1882 }
 0x611   : > { %v1884_v57 = vmul.f32 0.00390625, %v1883_v10 }
 0x613   : > { %v1885_v19 = vadd.f32 1e-05, %v1884_v57 }
 0x614   : > { %v1901_v4 = vpop.permute.xlu1 %1900 }
 0x615   : > { %2101 = vrsqrt.f32 %v1885_v19 }
 0x622   : > { %v2102_v11 = vpop.eup %2101 }
 0x623   : > { %v1887_v13 = vmul.f32 %v2102_v11, %v1877_v21  ;;  %v1888_v44 = vmul.f32 %v2102_v11, %v1878_v22 }
 0x625   : > { %v1895_v40 = vmul.f32 %v1893_v45, %v1887_v13  ;;  %v1896_v16 = vmul.f32 %v1893_v45, %v1888_v44 }
 0x627   : > { %v1903_v9 = vadd.f32 %v1901_v4, %v1895_v40  ;;  %v1904_v30 = vadd.f32 %v1901_v4, %v1896_v16 }
 0x629   : > { %v1905_v23 = vadd.f32 %v1904_v30, %v1903_v9 }
 0x62b   : > { %1906 = vadd.xlane.f32.xlu0 %v1905_v23 }
 0x6b4   : > { %v1907_v41 = vpop.xlane.xlu0 %1906 }
 0x6b5   : > { %v1908_v12 = vrot.slane %v1907_v41, 4 }
 0x6b7   : > { %v1909_v39 = vadd.f32 %v1908_v12, %v1907_v41 }
 0x6b9   : > { %v1910_v55 = vrot.slane %v1909_v39, 2 }
 0x6bb   : > { %v1911_v1 = vadd.f32 %v1910_v55, %v1909_v39 }
 0x6bd   : > { %v1912_v60 = vrot.slane %v1911_v1, 1 }
 0x6bf   : > { %v1913_v51 = vadd.f32 %v1912_v60, %v1911_v1 }
 0x6c1   : > { %2034 = vpush %v1913_v51 }
 0x6f2   : > { %s2035_s19 = spop %2034 }
 0x6f3   : > { %s1917_s20 = smul.f32 0.00048828125, %s2035_s19 }
 0x6f5   : > { %v1918_v42 = vstv %s1917_s20 }
 0x6f6   : > { %v1919_v49 = vsub.f32 %v1903_v9, %v1918_v42  ;;  %v1920_v59 = vsub.f32 %v1904_v30, %v1918_v42 }
 0x6f8   : > { %v1921_v14 = vmul.f32 %v1919_v49, %v1919_v49  ;;  %v1922_v7 = vmul.f32 %v1920_v59, %v1920_v59 }
 0x6fa   : > { %v1923_v8 = vadd.f32 %v1922_v7, %v1921_v14 }
 0x6fc   : > { %1924 = vadd.xlane.f32.xlu1 %v1923_v8 }
 0x785   : > { %v1925_v43 = vpop.xlane.xlu1 %1924 }
 0x786   : > { %v1926_v33 = vrot.slane %v1925_v43, 4 }
 0x788   : > { %v1927_v48 = vadd.f32 %v1926_v33, %v1925_v43 }
 0x78a   : > { %v1928_v36 = vrot.slane %v1927_v48, 2 }
 0x78c   : > { %v1929_v38 = vadd.f32 %v1928_v36, %v1927_v48 }
 0x78e   : > { %v1930_v46 = vrot.slane %v1929_v38, 1 }
 0x790   : > { %v1931_v20 = vadd.f32 %v1930_v46, %v1929_v38 }
 0x792   : > { %2036 = vpush %v1931_v20 }
 0x7c3   : > { %s2037_s21 = spop %2036 }
 0x7c4   : > { %s1935_s22 = smul.f32 0.00048828125, %s2037_s21 }
 0x7c6   : > { %s1936_s23 = sadd.f32 1e-05, %s1935_s22 }
 0x7c8   : > { %v1937_v37 = vstv %s1936_s23 }
 0x7c9   : > { %2103 = vrsqrt.f32 %v1937_v37 }
 0x7d6   : > { %v2104_v0 = vpop.eup %2103 }
 0x7d7   : > { %2038 = vpush %v2104_v0 }
 0x808   : > { %s2039_s24 = spop %2038 }
 0x809   : > { %v1940_v25 = vstv %s2039_s24 }
 0x80a   : > { %v1941_v2 = vmul.f32 %v1940_v25, %v1919_v49  ;;  %v1942_v31 = vmul.f32 %v1940_v25, %v1920_v59 }
 0x80c   : > { %1943 = vst [vmem:[%s2259_s10] sm:$0xff] %v1941_v2  ;;  %1944 = vst [vmem:[%s2259_s10 + $0x8] sm:$0xff] %v1942_v31 }
 0x80d PF: > { %s19_s27 = sadd.s32 1, %s2141_s27  }
 0x80e   : > { %p16_p1 = scmp.ge.s32.totalorder %s19_s27, 4  }
 0x810   :  { %18 = sbr.rel (!%p16_p1) target bundleno = 1 (0x1), region = 208 }
 0x815   :  { %1966 = vsyncpa [#allocation3], 1 }
 0x816   :  { %1968 = vsyncpa [#allocation3 + $0x1], 1 }

</bundles_post_ra>
